<compile_context>
chip_gen: v5e
topology: v5e:2x2
jax: 0.10.0
libtpu: 0.0.40
codegen_flags: <defaults>
</compile_context>

<pallas_src>
import numpy as np
import jax
import jax.numpy as jnp
from jax.experimental import pallas as pl
from jax.experimental.pallas import tpu as pltpu


def _l_out(l_in, kernel, padding, stride=1):
    return (l_in - kernel + 2 * padding) // stride + 1


def _round_up(x, m):
    return ((x + m - 1) // m) * m


# ----------------------------------------------------------------------------
# Shape derivation (mirrors the PyTorch module's constructor arithmetic)
# ----------------------------------------------------------------------------
def derive_shapes(in_channels, time_steps, encoding_size, fc_num_layers,
                  conv_num_layers, conv_mid_channels, conv_kernel, conv_padding):
    conv_shapes = []                    # (K, Cin, Cout, Tin, Tout) per conv layer
    cin, t_real, t_spec = in_channels, time_steps, time_steps
    for _ in range(conv_num_layers):
        t_in = t_real
        t_real = _l_out(t_real, conv_kernel, 0)             # Conv1d default padding=0
        t_spec = _l_out(t_spec, conv_kernel, conv_padding)  # what the module uses for FC sizing
        conv_shapes.append((conv_kernel, cin, conv_mid_channels, t_in, t_real))
        cin = conv_mid_channels
    if t_real != t_spec:
        # The reference torch module is itself shape-inconsistent in this case
        # (its Conv1d layers ignore conv_padding) and would fail at forward time.
        raise ValueError("conv_padding != 0 makes the reference module's "
                         "Flatten/Linear sizes inconsistent with its (padding=0) "
                         "Conv1d layers.")
    flat = t_real * conv_mid_channels
    fc_dims = np.linspace(flat, encoding_size, fc_num_layers + 1).astype(int).tolist()
    return conv_shapes, fc_dims


# ----------------------------------------------------------------------------
# Deterministic PyTorch-layout parameters
# ----------------------------------------------------------------------------
def init_params(key, cfg):
    conv_shapes, fc_dims = derive_shapes(**cfg)
    conv_params = []
    for (K, cin, cout, _, _) in conv_shapes:
        key, k1, k2 = jax.random.split(key, 3)
        bound = 1.0 / np.sqrt(cin * K)
        w = jax.random.uniform(k1, (cout, cin, K), jnp.float32, -bound, bound)  # torch (Cout,Cin,K)
        b = jax.random.uniform(k2, (cout,), jnp.float32, -bound, bound)
        conv_params.append((w, b))

    fc_params = []
    for i in range(cfg["fc_num_layers"]):
        din, dout = fc_dims[i], fc_dims[i + 1]
        key, k1, k2 = jax.random.split(key, 3)
        bound = 1.0 / np.sqrt(din)
        W = jax.random.uniform(k1, (dout, din), jnp.float32, -bound, bound)      # torch (out,in)
        b = jax.random.uniform(k2, (dout,), jnp.float32, -bound, bound)
        fc_params.append((W, b))
    return conv_params, fc_params


# ----------------------------------------------------------------------------
# Host-side re-layout of PyTorch parameters for the kernel
# ----------------------------------------------------------------------------
def pack_for_kernel(conv_params, fc_params, conv_shapes, fc_dims, encoding_size):
    """Conv layers -> block-Toeplitz dense matrices on the time-major flattened
    layout (flat index j = t*C + c); every intermediate width zero-padded to a
    multiple of 128 (math preserving); first FC weight row-permuted so the
    kernel's (t, c) flatten order matches torch's channel-major Flatten."""
    ops = []
    d_in_pad = _round_up(conv_shapes[0][3] * conv_shapes[0][1], 128)
    d_in_pad0 = d_in_pad

    for (w, b), (K, cin, cout, t_in, t_out) in zip(conv_params, conv_shapes):
        w_np = np.asarray(w, np.float32)                     # (cout, cin, K)
        b_np = np.asarray(b, np.float32)
        d_out = t_out * cout
        d_out_pad = _round_up(d_out, 128)
        W = np.zeros((d_in_pad, d_out_pad), np.float32)
        for t in range(t_out):
            for k in range(K):
                r = (t + k) * cin
                c = t * cout
                W[r:r + cin, c:c + cout] = w_np[:, :, k].T   # [ci, co] = w[co, ci, k]
        bias = np.zeros((1, d_out_pad), np.float32)
        bias[0, :d_out] = np.tile(b_np, t_out)               # flat index t*cout + co -> b[co]
        ops += [jnp.asarray(W), jnp.asarray(bias)]
        d_in_pad = d_out_pad

    # kernel flat index j = t*C + c  ->  torch Flatten index c*T + t
    _, _, c_last, _, t_last = conv_shapes[-1]
    perm = (np.arange(c_last)[None, :] * t_last +
            np.arange(t_last)[:, None]).reshape(-1)

    n_fc = len(fc_params)
    for i, (W_t, b) in enumerate(fc_params):
        W_np = np.asarray(W_t, np.float32).T                 # (din, dout)
        b_np = np.asarray(b, np.float32)
        if i == 0:
            W_np = W_np[perm, :]
        din, dout = W_np.shape
        dout_pad = dout if i == n_fc - 1 else _round_up(dout, 128)
        Wp = np.zeros((d_in_pad, dout_pad), np.float32)      # zero rows for padded lanes
        Wp[:din, :dout] = W_np
        bp = np.zeros((1, dout_pad), np.float32)
        bp[0, :dout] = b_np
        ops += [jnp.asarray(Wp), jnp.asarray(bp)]
        d_in_pad = dout_pad
    return ops, d_in_pad0


# ----------------------------------------------------------------------------
# Pallas kernel: whole forward pass for one batch block (pure dense-matmul chain)
# ----------------------------------------------------------------------------
def make_encoder_kernel(n_conv, n_fc):
    def kernel(*refs):
        z = refs[0][...]                                     # (B_TILE, d_in_pad) f32
        idx = 1
        for _ in range(n_conv):                              # Conv1d == block-Toeplitz matmul
            W, b = refs[idx][...], refs[idx + 1][...]
            idx += 2
            z = jnp.maximum(jnp.dot(z, W, preferred_element_type=jnp.float32) + b, 0.0)
        for i in range(n_fc):                                # Linear (+ ReLU except last)
            W, b = refs[idx][...], refs[idx + 1][...]
            idx += 2
            z = jnp.dot(z, W, preferred_element_type=jnp.float32) + b
            if i < n_fc - 1:
                z = jnp.maximum(z, 0.0)
        out_ref = refs[idx]                                  # (B_TILE, encoding_size)
        out_ref[...] = z.astype(out_ref.dtype)
    return kernel


# ----------------------------------------------------------------------------
# Wrapper: grid over batch blocks (parallel), weights resident across steps
# ----------------------------------------------------------------------------
def forward_pallas(x_nct, conv_params, fc_params, cfg, b_tile_max=256):
    conv_shapes, fc_dims = derive_shapes(**cfg)
    B, Cin, T0 = x_nct.shape
    enc = cfg["encoding_size"]

    weights, d_in_pad = pack_for_kernel(conv_params, fc_params, conv_shapes,
                                        fc_dims, enc)

    # Batch blocking: B_TILE samples per grid step (multiple of 8 sublanes);
    # zero-pad the batch so every block is full-size and dense.
    b_tile = min(b_tile_max, _round_up(B, 8))
    b_pad = _round_up(B, b_tile)

    # Time-major flatten per sample: x_flat[b, t*Cin + c]; zero-pad lanes to d_in_pad.
    x_flat = jnp.transpose(x_nct, (0, 2, 1)).astype(jnp.float32).reshape(B, T0 * Cin)
    x_flat = jnp.pad(x_flat, ((0, b_pad - B), (0, d_in_pad - T0 * Cin)))

    kernel = make_encoder_kernel(len(conv_params), len(fc_params))

    in_specs = [pl.BlockSpec((b_tile, d_in_pad), lambda i: (i, 0))]
    in_specs += [pl.BlockSpec(w.shape, lambda i: (0, 0)) for w in weights]
    out_spec = pl.BlockSpec((b_tile, enc), lambda i: (i, 0))

    out = pl.pallas_call(
        kernel,
        out_shape=jax.ShapeDtypeStruct((b_pad, enc), jnp.float32),
        grid_spec=pltpu.PrefetchScalarGridSpec(
            num_scalar_prefetch=0,
            grid=(b_pad // b_tile,),
            in_specs=in_specs,
            out_specs=out_spec,
        ),
        compiler_params=pltpu.CompilerParams(
            dimension_semantics=("parallel",),
            vmem_limit_bytes=32 * 1024 * 1024,
        ),
    )(x_flat, *weights)
    return out[:B]


# ----------------------------------------------------------------------------
# Pure-JAX reference with PyTorch semantics (NCT layout), for verification
# ----------------------------------------------------------------------------
def forward_ref(x_nct, conv_params, fc_params):
    h = x_nct.astype(jnp.float32)
    for (w, b) in conv_params:
        h = jax.lax.conv_general_dilated(
            h, w, window_strides=(1,), padding="VALID",
            dimension_numbers=("NCH", "OIH", "NCH"),
            precision=jax.lax.Precision.HIGHEST)
        h = jnp.maximum(h + b[None, :, None], 0.0)
    h = h.reshape(h.shape[0], -1)                            # torch Flatten: (C, T) order
    n = len(fc_params)
    for i, (W, b) in enumerate(fc_params):
        h = jnp.dot(h, W.T, precision=jax.lax.Precision.HIGHEST) + b
        if i < n - 1:
            h = jnp.maximum(h, 0.0)
    return h


if __name__ == "__main__":
    cfg = dict(in_channels=6, time_steps=60, encoding_size=256,
               fc_num_layers=3, conv_num_layers=3, conv_mid_channels=12,
               conv_kernel=5, conv_padding=0)
    B = 2

    key = jax.random.PRNGKey(0)
    key, xkey = jax.random.split(key)
    x = jax.random.normal(xkey, (B, cfg["in_channels"], cfg["time_steps"]), jnp.float32)

    conv_params, fc_params = init_params(key, cfg)

    y = jax.block_until_ready(forward_pallas(x, conv_params, fc_params, cfg))
    y_ref = forward_ref(x, conv_params, fc_params)

    assert y.shape == (B, cfg["encoding_size"]), y.shape
    np.testing.assert_allclose(np.asarray(y), np.asarray(y_ref), rtol=2e-3, atol=2e-3)

    print("KERNEL_OK")
</pallas_src>

<mosaic_0001>
module attributes {stable_mosaic.version = 11 : i64} {
  func.func @kernel(%arg0: i32, %arg1: memref<8x384xf32, #tpu.memory_space<vmem>>, %arg2: memref<384x768xf32, #tpu.memory_space<vmem>>, %arg3: memref<1x768xf32, #tpu.memory_space<vmem>>, %arg4: memref<768x640xf32, #tpu.memory_space<vmem>>, %arg5: memref<1x640xf32, #tpu.memory_space<vmem>>, %arg6: memref<640x640xf32, #tpu.memory_space<vmem>>, %arg7: memref<1x640xf32, #tpu.memory_space<vmem>>, %arg8: memref<640x512xf32, #tpu.memory_space<vmem>>, %arg9: memref<1x512xf32, #tpu.memory_space<vmem>>, %arg10: memref<512x384xf32, #tpu.memory_space<vmem>>, %arg11: memref<1x384xf32, #tpu.memory_space<vmem>>, %arg12: memref<384x256xf32, #tpu.memory_space<vmem>>, %arg13: memref<1x256xf32, #tpu.memory_space<vmem>>, %arg14: memref<8x256xf32, #tpu.memory_space<vmem>>) attributes {dimension_semantics = [#tpu.dimension_semantics<parallel>], iteration_bounds = array<i64: 1>, scalar_prefetch = 0 : i64, scratch_operands = 0 : i64, tpu.core_type = #tpu.core_type<tc>, window_params = [{transform_indices = @transform_0, window_bounds = array<i64: 8, 384>}, {pipeline_mode = #tpu.pipeline_mode<synchronous>, transform_indices = @transform_1, window_bounds = array<i64: 384, 768>}, {pipeline_mode = #tpu.pipeline_mode<synchronous>, transform_indices = @transform_2, window_bounds = array<i64: 1, 768>}, {pipeline_mode = #tpu.pipeline_mode<synchronous>, transform_indices = @transform_3, window_bounds = array<i64: 768, 640>}, {pipeline_mode = #tpu.pipeline_mode<synchronous>, transform_indices = @transform_4, window_bounds = array<i64: 1, 640>}, {pipeline_mode = #tpu.pipeline_mode<synchronous>, transform_indices = @transform_5, window_bounds = array<i64: 640, 640>}, {pipeline_mode = #tpu.pipeline_mode<synchronous>, transform_indices = @transform_6, window_bounds = array<i64: 1, 640>}, {pipeline_mode = #tpu.pipeline_mode<synchronous>, transform_indices = @transform_7, window_bounds = array<i64: 640, 512>}, {pipeline_mode = #tpu.pipeline_mode<synchronous>, transform_indices = @transform_8, window_bounds = array<i64: 1, 512>}, {pipeline_mode = #tpu.pipeline_mode<synchronous>, transform_indices = @transform_9, window_bounds = array<i64: 512, 384>}, {pipeline_mode = #tpu.pipeline_mode<synchronous>, transform_indices = @transform_10, window_bounds = array<i64: 1, 384>}, {pipeline_mode = #tpu.pipeline_mode<synchronous>, transform_indices = @transform_11, window_bounds = array<i64: 384, 256>}, {pipeline_mode = #tpu.pipeline_mode<synchronous>, transform_indices = @transform_12, window_bounds = array<i64: 1, 256>}, {transform_indices = @transform_13, window_bounds = array<i64: 8, 256>}]} {
    %c0 = arith.constant 0 : index
    %c0_0 = arith.constant 0 : index
    %0 = vector.load %arg1[%c0, %c0_0] : memref<8x384xf32, #tpu.memory_space<vmem>>, vector<8x384xf32>
    %c0_1 = arith.constant 0 : index
    %c0_2 = arith.constant 0 : index
    %1 = vector.load %arg2[%c0_1, %c0_2] : memref<384x768xf32, #tpu.memory_space<vmem>>, vector<384x768xf32>
    %c0_3 = arith.constant 0 : index
    %c0_4 = arith.constant 0 : index
    %2 = vector.load %arg3[%c0_3, %c0_4] : memref<1x768xf32, #tpu.memory_space<vmem>>, vector<1x768xf32>
    %cst = arith.constant dense<0.000000e+00> : vector<8x768xf32>
    %3 = tpu.matmul %0, %1, %cst {dimension_numbers = #tpu.dot_dimension_numbers<[1], [0], [0], [1], [0, 0, 1, 1], [], []>} : vector<8x384xf32>, vector<384x768xf32>, vector<8x768xf32> -> vector<8x768xf32>
    %4 = vector.broadcast %2 : vector<1x768xf32> to vector<8x768xf32>
    %5 = arith.addf %3, %4 : vector<8x768xf32>
    %cst_5 = arith.constant 0.000000e+00 : f32
    %6 = vector.broadcast %cst_5 : f32 to vector<8x768xf32>
    %7 = arith.maximumf %5, %6 : vector<8x768xf32>
    %c0_6 = arith.constant 0 : index
    %c0_7 = arith.constant 0 : index
    %8 = vector.load %arg4[%c0_6, %c0_7] : memref<768x640xf32, #tpu.memory_space<vmem>>, vector<768x640xf32>
    %c0_8 = arith.constant 0 : index
    %c0_9 = arith.constant 0 : index
    %9 = vector.load %arg5[%c0_8, %c0_9] : memref<1x640xf32, #tpu.memory_space<vmem>>, vector<1x640xf32>
    %cst_10 = arith.constant dense<0.000000e+00> : vector<8x640xf32>
    %10 = tpu.matmul %7, %8, %cst_10 {dimension_numbers = #tpu.dot_dimension_numbers<[1], [0], [0], [1], [0, 0, 1, 1], [], []>} : vector<8x768xf32>, vector<768x640xf32>, vector<8x640xf32> -> vector<8x640xf32>
    %11 = vector.broadcast %9 : vector<1x640xf32> to vector<8x640xf32>
    %12 = arith.addf %10, %11 : vector<8x640xf32>
    %cst_11 = arith.constant 0.000000e+00 : f32
    %13 = vector.broadcast %cst_11 : f32 to vector<8x640xf32>
    %14 = arith.maximumf %12, %13 : vector<8x640xf32>
    %c0_12 = arith.constant 0 : index
    %c0_13 = arith.constant 0 : index
    %15 = vector.load %arg6[%c0_12, %c0_13] : memref<640x640xf32, #tpu.memory_space<vmem>>, vector<640x640xf32>
    %c0_14 = arith.constant 0 : index
    %c0_15 = arith.constant 0 : index
    %16 = vector.load %arg7[%c0_14, %c0_15] : memref<1x640xf32, #tpu.memory_space<vmem>>, vector<1x640xf32>
    %cst_16 = arith.constant dense<0.000000e+00> : vector<8x640xf32>
    %17 = tpu.matmul %14, %15, %cst_16 {dimension_numbers = #tpu.dot_dimension_numbers<[1], [0], [0], [1], [0, 0, 1, 1], [], []>} : vector<8x640xf32>, vector<640x640xf32>, vector<8x640xf32> -> vector<8x640xf32>
    %18 = vector.broadcast %16 : vector<1x640xf32> to vector<8x640xf32>
    %19 = arith.addf %17, %18 : vector<8x640xf32>
    %cst_17 = arith.constant 0.000000e+00 : f32
    %20 = vector.broadcast %cst_17 : f32 to vector<8x640xf32>
    %21 = arith.maximumf %19, %20 : vector<8x640xf32>
    %c0_18 = arith.constant 0 : index
    %c0_19 = arith.constant 0 : index
    %22 = vector.load %arg8[%c0_18, %c0_19] : memref<640x512xf32, #tpu.memory_space<vmem>>, vector<640x512xf32>
    %c0_20 = arith.constant 0 : index
    %c0_21 = arith.constant 0 : index
    %23 = vector.load %arg9[%c0_20, %c0_21] : memref<1x512xf32, #tpu.memory_space<vmem>>, vector<1x512xf32>
    %cst_22 = arith.constant dense<0.000000e+00> : vector<8x512xf32>
    %24 = tpu.matmul %21, %22, %cst_22 {dimension_numbers = #tpu.dot_dimension_numbers<[1], [0], [0], [1], [0, 0, 1, 1], [], []>} : vector<8x640xf32>, vector<640x512xf32>, vector<8x512xf32> -> vector<8x512xf32>
    %25 = vector.broadcast %23 : vector<1x512xf32> to vector<8x512xf32>
    %26 = arith.addf %24, %25 : vector<8x512xf32>
    %cst_23 = arith.constant 0.000000e+00 : f32
    %27 = vector.broadcast %cst_23 : f32 to vector<8x512xf32>
    %28 = arith.maximumf %26, %27 : vector<8x512xf32>
    %c0_24 = arith.constant 0 : index
    %c0_25 = arith.constant 0 : index
    %29 = vector.load %arg10[%c0_24, %c0_25] : memref<512x384xf32, #tpu.memory_space<vmem>>, vector<512x384xf32>
    %c0_26 = arith.constant 0 : index
    %c0_27 = arith.constant 0 : index
    %30 = vector.load %arg11[%c0_26, %c0_27] : memref<1x384xf32, #tpu.memory_space<vmem>>, vector<1x384xf32>
    %cst_28 = arith.constant dense<0.000000e+00> : vector<8x384xf32>
    %31 = tpu.matmul %28, %29, %cst_28 {dimension_numbers = #tpu.dot_dimension_numbers<[1], [0], [0], [1], [0, 0, 1, 1], [], []>} : vector<8x512xf32>, vector<512x384xf32>, vector<8x384xf32> -> vector<8x384xf32>
    %32 = vector.broadcast %30 : vector<1x384xf32> to vector<8x384xf32>
    %33 = arith.addf %31, %32 : vector<8x384xf32>
    %cst_29 = arith.constant 0.000000e+00 : f32
    %34 = vector.broadcast %cst_29 : f32 to vector<8x384xf32>
    %35 = arith.maximumf %33, %34 : vector<8x384xf32>
    %c0_30 = arith.constant 0 : index
    %c0_31 = arith.constant 0 : index
    %36 = vector.load %arg12[%c0_30, %c0_31] : memref<384x256xf32, #tpu.memory_space<vmem>>, vector<384x256xf32>
    %c0_32 = arith.constant 0 : index
    %c0_33 = arith.constant 0 : index
    %37 = vector.load %arg13[%c0_32, %c0_33] : memref<1x256xf32, #tpu.memory_space<vmem>>, vector<1x256xf32>
    %cst_34 = arith.constant dense<0.000000e+00> : vector<8x256xf32>
    %38 = tpu.matmul %35, %36, %cst_34 {dimension_numbers = #tpu.dot_dimension_numbers<[1], [0], [0], [1], [0, 0, 1, 1], [], []>} : vector<8x384xf32>, vector<384x256xf32>, vector<8x256xf32> -> vector<8x256xf32>
    %39 = vector.broadcast %37 : vector<1x256xf32> to vector<8x256xf32>
    %40 = arith.addf %38, %39 : vector<8x256xf32>
    %c0_35 = arith.constant 0 : index
    %c0_36 = arith.constant 0 : index
    %41 = vector.load %arg14[%c0_35, %c0_36] : memref<8x256xf32, #tpu.memory_space<vmem>>, vector<8x256xf32>
    tpu.vector_store %arg14[%c0_35, %c0_36], %40 {strides = array<i32>} : memref<8x256xf32, #tpu.memory_space<vmem>>, vector<8x256xf32>,
    return
  }
  func.func @transform_0(%arg0: i32) -> (i32, i32) {
    %c0_i32 = arith.constant 0 : i32
    %c0_i32_0 = arith.constant 0 : i32
    return %arg0, %c0_i32 : i32, i32
  }
  func.func @transform_1(%arg0: i32) -> (i32, i32) {
    %c0_i32 = arith.constant 0 : i32
    %c0_i32_0 = arith.constant 0 : i32
    %c0_i32_1 = arith.constant 0 : i32
    return %c0_i32, %c0_i32_0 : i32, i32
  }
  func.func @transform_2(%arg0: i32) -> (i32, i32) {
    %c0_i32 = arith.constant 0 : i32
    %c0_i32_0 = arith.constant 0 : i32
    %c0_i32_1 = arith.constant 0 : i32
    return %c0_i32, %c0_i32_0 : i32, i32
  }
  func.func @transform_3(%arg0: i32) -> (i32, i32) {
    %c0_i32 = arith.constant 0 : i32
    %c0_i32_0 = arith.constant 0 : i32
    %c0_i32_1 = arith.constant 0 : i32
    return %c0_i32, %c0_i32_0 : i32, i32
  }
  func.func @transform_4(%arg0: i32) -> (i32, i32) {
    %c0_i32 = arith.constant 0 : i32
    %c0_i32_0 = arith.constant 0 : i32
    %c0_i32_1 = arith.constant 0 : i32
    return %c0_i32, %c0_i32_0 : i32, i32
  }
  func.func @transform_5(%arg0: i32) -> (i32, i32) {
    %c0_i32 = arith.constant 0 : i32
    %c0_i32_0 = arith.constant 0 : i32
    %c0_i32_1 = arith.constant 0 : i32
    return %c0_i32, %c0_i32_0 : i32, i32
  }
  func.func @transform_6(%arg0: i32) -> (i32, i32) {
    %c0_i32 = arith.constant 0 : i32
    %c0_i32_0 = arith.constant 0 : i32
    %c0_i32_1 = arith.constant 0 : i32
    return %c0_i32, %c0_i32_0 : i32, i32
  }
  func.func @transform_7(%arg0: i32) -> (i32, i32) {
    %c0_i32 = arith.constant 0 : i32
    %c0_i32_0 = arith.constant 0 : i32
    %c0_i32_1 = arith.constant 0 : i32
    return %c0_i32, %c0_i32_0 : i32, i32
  }
  func.func @transform_8(%arg0: i32) -> (i32, i32) {
    %c0_i32 = arith.constant 0 : i32
    %c0_i32_0 = arith.constant 0 : i32
    %c0_i32_1 = arith.constant 0 : i32
    return %c0_i32, %c0_i32_0 : i32, i32
  }
  func.func @transform_9(%arg0: i32) -> (i32, i32) {
    %c0_i32 = arith.constant 0 : i32
    %c0_i32_0 = arith.constant 0 : i32
    %c0_i32_1 = arith.constant 0 : i32
    return %c0_i32, %c0_i32_0 : i32, i32
  }
  func.func @transform_10(%arg0: i32) -> (i32, i32) {
    %c0_i32 = arith.constant 0 : i32
    %c0_i32_0 = arith.constant 0 : i32
    %c0_i32_1 = arith.constant 0 : i32
    return %c0_i32, %c0_i32_0 : i32, i32
  }
  func.func @transform_11(%arg0: i32) -> (i32, i32) {
    %c0_i32 = arith.constant 0 : i32
    %c0_i32_0 = arith.constant 0 : i32
    %c0_i32_1 = arith.constant 0 : i32
    return %c0_i32, %c0_i32_0 : i32, i32
  }
  func.func @transform_12(%arg0: i32) -> (i32, i32) {
    %c0_i32 = arith.constant 0 : i32
    %c0_i32_0 = arith.constant 0 : i32
    %c0_i32_1 = arith.constant 0 : i32
    return %c0_i32, %c0_i32_0 : i32, i32
  }
  func.func @transform_13(%arg0: i32) -> (i32, i32) {
    %c0_i32 = arith.constant 0 : i32
    %c0_i32_0 = arith.constant 0 : i32
    return %arg0, %c0_i32 : i32, i32
  }
}

</mosaic_0001>

<bundles_post_ra>
// kernel: tpu_custom_call.1
= control target key start
LH: loop header
LB: loop body
LE: loop exit
PB: predicated region body
PF: predicated region fallthrough
CT: control target
= control target key end

     0   :  { %18 = vsyncpa [#allocation3], 0  ;;  %s5023_s0 = inlined_call_operand.hbm [shape: f32[8,384], index: 0, kind: input, shape index: {}]   ;;  %s5024_s1 = inlined_call_operand.hbm [shape: f32[384,768], index: 1, kind: input, shape index: {}]   ;;  %s5025_s2 = inlined_call_operand.hbm [shape: f32[1,768], index: 2, kind: input, shape index: {}]   ;;  %s5026_s3 = inlined_call_operand.hbm [shape: f32[768,640], index: 3, kind: input, shape index: {}]   ;;  %s5027_s4 = inlined_call_operand.hbm [shape: f32[1,640], index: 4, kind: input, shape index: {}]   ;;  %s5028_s5 = inlined_call_operand.hbm [shape: f32[640,640], index: 5, kind: input, shape index: {}]   ;;  %s5029_s6 = inlined_call_operand.hbm [shape: f32[1,640], index: 6, kind: input, shape index: {}]   ;;  %s5030_s7 = inlined_call_operand.hbm [shape: f32[640,512], index: 7, kind: input, shape index: {}]   ;;  %s5031_s8 = inlined_call_operand.hbm [shape: f32[1,512], index: 8, kind: input, shape index: {}]   ;;  %s5032_s9 = inlined_call_operand.hbm [shape: f32[512,384], index: 9, kind: input, shape index: {}]   ;;  %s5033_s10 = inlined_call_operand.hbm [shape: f32[1,384], index: 10, kind: input, shape index: {}]   ;;  %s5034_s11 = inlined_call_operand.hbm [shape: f32[384,256], index: 11, kind: input, shape index: {}]   ;;  %s5035_s12 = inlined_call_operand.hbm [shape: f32[1,256], index: 12, kind: input, shape index: {}]   ;;  %s5036_s13 = inlined_call_operand.hbm [shape: f32[8,256], index: 13, kind: output, shape index: {}]  }
   0x1   :  { %19 = vsyncpa [#allocation6], 0 }
   0x2   :  { %20 = vsyncpa [#allocation9], 0 }
   0x3   :  { %21 = vsyncpa [#allocation12], 0 }
   0x4   :  { %22 = vsyncpa [#allocation15], 0 }
   0x5   :  { %23 = vsyncpa [#allocation18], 0 }
   0x6   :  { %24 = vsyncpa [#allocation21], 0  ;;  %s41_s27 = sshll.u32 %s5024_s1, 4  ;;  %s42_s27 = int_to_ptr.hbm [resolvable:$true] %s41_s27 }
   0x7   :  { %25 = vsyncpa [#allocation4], 0  ;;  %s4719_s28 = smov [#allocation5]   ;;  %s65_s15 = sshll.u32 %s5026_s3, 4  ;;  %s66_s15 = int_to_ptr.hbm [resolvable:$true] %s65_s15 }
   0x8   :  { %s43_s29 = sshll.u32 %s4719_s28, 4  ;;  %s4720_s16 = smov 768   ;;  %s44_s29 = int_to_ptr.vmem [resolvable:$true] %s43_s29 }
   0x9   :  { %s4721_s17 = smov 48   ;;  %s4722_s18 = smov [#allocation8]  }
   0xa   :  { %49 = dma.hbm_to_vmem [thread:$0]  %s42_s27, 36864, %s44_s29, [#allocation6], %s4720_s16, %s4720_s16, %s4721_s17  }
   0xb   :  { %s67_s19 = sshll.u32 %s4722_s18, 4  ;;  %s4723_s20 = smov 640   ;;  %s68_s19 = int_to_ptr.vmem [resolvable:$true] %s67_s19 }
   0xc   :  { %s4724_s21 = smov 40   ;;  %s89_s23 = sshll.u32 %s5028_s5, 4  ;;  %s90_s23 = int_to_ptr.hbm [resolvable:$true] %s89_s23 }
   0xd   :  { %73 = dma.hbm_to_vmem [thread:$0]  %s66_s15, 61440, %s68_s19, [#allocation9], %s4723_s20, %s4723_s20, %s4724_s21  }
   0xe   :  { %s4725_s24 = smov [#allocation11]   ;;  %s113_s28 = sshll.u32 %s5030_s7, 4  ;;  %s114_s28 = int_to_ptr.hbm [resolvable:$true] %s113_s28 }
   0xf   :  { %s91_s25 = sshll.u32 %s4725_s24, 4  ;;  %s4726_s27 = smov [#allocation14]   ;;  %s92_s25 = int_to_ptr.vmem [resolvable:$true] %s91_s25 }
  0x10   :  { %97 = dma.hbm_to_vmem [thread:$0]  %s90_s23, 51200, %s92_s25, [#allocation12], %s4723_s20, %s4723_s20, %s4724_s21  }
  0x11   :  { %s115_s29 = sshll.u32 %s4726_s27, 4  ;;  %s4727_s30 = smov 512   ;;  %s116_s29 = int_to_ptr.vmem [resolvable:$true] %s115_s29 }
  0x12   :  { %s4728_s14 = smov 32   ;;  %s137_s5 = sshll.u32 %s5032_s9, 4  ;;  %s138_s5 = int_to_ptr.hbm [resolvable:$true] %s137_s5 }
  0x13   :  { %121 = dma.hbm_to_vmem [thread:$0]  %s114_s28, 40960, %s116_s29, [#allocation15], %s4727_s30, %s4727_s30, %s4728_s14  }
  0x14   :  { %s4729_s17 = smov [#allocation17]   ;;  %s161_s7 = sshll.u32 %s5034_s11, 4  ;;  %s162_s7 = int_to_ptr.hbm [resolvable:$true] %s161_s7 }
  0x15   :  { %s139_s18 = sshll.u32 %s4729_s17, 4  ;;  %s4730_s20 = smov 384   ;;  %s140_s18 = int_to_ptr.vmem [resolvable:$true] %s139_s18 }
  0x16   :  { %s4731_s21 = smov 24   ;;  %s4732_s22 = smov [#allocation20]  }
  0x17   :  { %145 = dma.hbm_to_vmem [thread:$0]  %s138_s5, 24576, %s140_s18, [#allocation18], %s4730_s20, %s4730_s20, %s4731_s21  }
  0x18   :  { %s163_s23 = sshll.u32 %s4732_s22, 4  ;;  %s4733_s24 = smov 256   ;;  %s164_s23 = int_to_ptr.vmem [resolvable:$true] %s163_s23 }
  0x19   :  { %s4734_s25 = smov 16   ;;  %s31_s3 = sshll.u32 %s5023_s0, 4  ;;  %s32_s3 = int_to_ptr.hbm [resolvable:$true] %s31_s3 }
  0x1a   :  { %169 = dma.hbm_to_vmem [thread:$0]  %s162_s7, 12288, %s164_s23, [#allocation21], %s4733_s24, %s4733_s24, %s4734_s25  }
  0x1b   :  { %s4735_s28 = smov [#allocation2]   ;;  %s55_s30 = sshll.u32 %s5025_s2, 4  ;;  %s56_s30 = int_to_ptr.hbm [resolvable:$true] %s55_s30 }
  0x1c   :  { %s33_s27 = sshll.u32 %s4735_s28, 4  ;;  %s4736_s14 = smov [#allocation7]   ;;  %s34_s27 = int_to_ptr.vmem [resolvable:$true] %s33_s27 }
  0x1d   :  { %36 = dma.hbm_to_vmem [thread:$0]  %s32_s3, 384, %s34_s27, [#allocation3]  }
  0x1e   :  { %s57_s15 = sshll.u32 %s4736_s14, 4  ;;  %s79_s17 = sshll.u32 %s5027_s4, 4  ;;  %s58_s15 = int_to_ptr.vmem [resolvable:$true] %s57_s15  ;;  %s80_s17 = int_to_ptr.hbm [resolvable:$true] %s79_s17 }
  0x1f   :  { %60 = dma.hbm_to_vmem [thread:$0]  %s56_s30, 96, %s58_s15, [#allocation6]  }
  0x20   :  { %s103_s19 = sshll.u32 %s5029_s6, 4  ;;  %s4737_s1 = smov [#allocation10]   ;;  %s104_s19 = int_to_ptr.hbm [resolvable:$true] %s103_s19 }
  0x21   :  { %s81_s7 = sshll.u32 %s4737_s1, 4  ;;  %s4738_s2 = smov [#allocation13]   ;;  %s82_s7 = int_to_ptr.vmem [resolvable:$true] %s81_s7 }
  0x22   :  { %84 = dma.hbm_to_vmem [thread:$0]  %s80_s17, 80, %s82_s7, [#allocation9]  }
  0x23   :  { %s105_s20 = sshll.u32 %s4738_s2, 4  ;;  %s127_s23 = sshll.u32 %s5031_s8, 4  ;;  %s106_s20 = int_to_ptr.vmem [resolvable:$true] %s105_s20  ;;  %s128_s23 = int_to_ptr.hbm [resolvable:$true] %s127_s23 }
  0x24   :  { %108 = dma.hbm_to_vmem [thread:$0]  %s104_s19, 80, %s106_s20, [#allocation12]  }
  0x25   :  { %s151_s25 = sshll.u32 %s5033_s10, 4  ;;  %s4739_s26 = smov [#allocation16]   ;;  %s152_s25 = int_to_ptr.hbm [resolvable:$true] %s151_s25 }
  0x26   :  { %s129_s6 = sshll.u32 %s4739_s26, 4  ;;  %s4740_s9 = smov [#allocation19]   ;;  %s130_s6 = int_to_ptr.vmem [resolvable:$true] %s129_s6 }
  0x27   :  { %132 = dma.hbm_to_vmem [thread:$0]  %s128_s23, 64, %s130_s6, [#allocation15]  }
  0x28   :  { %s153_s3 = sshll.u32 %s4740_s9, 4  ;;  %s175_s29 = sshll.u32 %s5035_s12, 4  ;;  %s154_s3 = int_to_ptr.vmem [resolvable:$true] %s153_s3  ;;  %s176_s29 = int_to_ptr.hbm [resolvable:$true] %s175_s29 }
  0x29   :  { %156 = dma.hbm_to_vmem [thread:$0]  %s152_s25, 48, %s154_s3, [#allocation18]  }
  0x2a   :  { %s4741_s8 = smov [#allocation22]  }
  0x2b   :  { %s177_s11 = sshll.u32 %s4741_s8, 4  ;;  %s178_s11 = int_to_ptr.vmem [resolvable:$true] %s177_s11 }
  0x2c   :  { %180 = dma.hbm_to_vmem [thread:$0]  %s176_s29, 32, %s178_s11, [#allocation21]  }
  0x2d   :  { %4703 = dma.done.wait [#allocation3], 384  }
  0x2e   :  { %4704 = vsyncadd [#allocation3], 4294966912 }
  0x2f   :  { %4705 = dma.done.wait [#allocation6], 36960  }
  0x30   :  { %4706 = vsyncadd [#allocation6], 4294930336 }
  0x31   :  { %4707 = dma.done.wait [#allocation9], 61520  }
  0x32   :  { %4708 = vsyncadd [#allocation9], 4294905776 }
  0x33   :  { %4709 = dma.done.wait [#allocation12], 51280  }
  0x34   :  { %4710 = vsyncadd [#allocation12], 4294916016 }
  0x35   :  { %4711 = dma.done.wait [#allocation15], 41024  }
  0x36   :  { %4712 = vsyncadd [#allocation15], 4294926272 }
  0x37   :  { %4713 = dma.done.wait [#allocation18], 24624  }
  0x38   :  { %4714 = vsyncadd [#allocation18], 4294942672 }
  0x39   :  { %4715 = dma.done.wait [#allocation21], 12320  }
  0x3a   :  { %4716 = vsyncadd [#allocation21], 4294954976  ;;  %v326_v0 = vld [vmem:[#allocation5 + $0x2d0] sm:$0xff]  ;;  %v320_v2 = vld [vmem:[#allocation5 + $0x2a0] sm:$0xff]  ;;  %s4742_s10 = smov [#allocation23]   ;;  %s4326_s15 = sshll.u32 %s5036_s13, 4  ;;  %s4327_s15 = int_to_ptr.hbm [resolvable:$true] %s4326_s15 }
  0x3b   :  { %v518_v1 = vld [vmem:[#allocation5 + $0x8d0] sm:$0xff]  ;;  %538 = vmatpush.msra.mxu0 %v326_v0  ;;  %v512_v4 = vld [vmem:[#allocation5 + $0x8a0] sm:$0xff]  ;;  %v327_v5 = vld [vmem:[#allocation5 + $0x2d8] sm:$0xff]  ;;  %s4324_s12 = sshll.u32 %s4742_s10, 4  ;;  %s4325_s12 = int_to_ptr.vmem [resolvable:$true] %s4324_s12 }
  0x3c   :  { %578 = vmatpush.msra.mxu2 %v518_v1  ;;  %v422_v3 = vld [vmem:[#allocation5 + $0x5d0] sm:$0xff]  ;;  %598 = vmatpush.msra.mxu3 %v327_v5  ;;  %v416_v7 = vld [vmem:[#allocation5 + $0x5a0] sm:$0xff]  ;;  %v321_v9 = vld [vmem:[#allocation5 + $0x2a8] sm:$0xff] }
  0x3d   :  { %558 = vmatpush.msra.mxu1 %v422_v3  ;;  %v314_v6 = vld [vmem:[#allocation5 + $0x270] sm:$0xff]  ;;  %539 = vmatpush.msra.mxu0 %v320_v2  ;;  %v308_v11 = vld [vmem:[#allocation5 + $0x240] sm:$0xff]  ;;  %v315_v13 = vld [vmem:[#allocation5 + $0x278] sm:$0xff] }
  0x3e   :  { %v506_v8 = vld [vmem:[#allocation5 + $0x870] sm:$0xff]  ;;  %579 = vmatpush.msra.mxu2 %v512_v4  ;;  %599 = vmatpush.msra.mxu3 %v321_v9  ;;  %v500_v12 = vld [vmem:[#allocation5 + $0x840] sm:$0xff]  ;;  %v309_v15 = vld [vmem:[#allocation5 + $0x248] sm:$0xff] }
  0x3f   :  { %v410_v10 = vld [vmem:[#allocation5 + $0x570] sm:$0xff]  ;;  %559 = vmatpush.msra.mxu1 %v416_v7  ;;  %540 = vmatpush.msra.mxu0 %v314_v6  ;;  %v404_v14 = vld [vmem:[#allocation5 + $0x540] sm:$0xff]  ;;  %v303_v19 = vld [vmem:[#allocation5 + $0x218] sm:$0xff] }
  0x40   :  { %580 = vmatpush.msra.mxu2 %v506_v8  ;;  %600 = vmatpush.msra.mxu3 %v315_v13  ;;  %v302_v16 = vld [vmem:[#allocation5 + $0x210] sm:$0xff]  ;;  %v296_v20 = vld [vmem:[#allocation5 + $0x1e0] sm:$0xff]  ;;  %v297_v23 = vld [vmem:[#allocation5 + $0x1e8] sm:$0xff] }
  0x41   :  { %560 = vmatpush.msra.mxu1 %v410_v10  ;;  %v494_v17 = vld [vmem:[#allocation5 + $0x810] sm:$0xff]  ;;  %541 = vmatpush.msra.mxu0 %v308_v11  ;;  %v488_v21 = vld [vmem:[#allocation5 + $0x7e0] sm:$0xff]  ;;  %v291_v27 = vld [vmem:[#allocation5 + $0x1b8] sm:$0xff] }
  0x42   :  { %581 = vmatpush.msra.mxu2 %v500_v12  ;;  %v398_v18 = vld [vmem:[#allocation5 + $0x510] sm:$0xff]  ;;  %601 = vmatpush.msra.mxu3 %v309_v15  ;;  %v392_v22 = vld [vmem:[#allocation5 + $0x4e0] sm:$0xff]  ;;  %v285_v31 = vld [vmem:[#allocation5 + $0x188] sm:$0xff] }
  0x43   :  { %561 = vmatpush.msra.mxu1 %v404_v14  ;;  %542 = vmatpush.msra.mxu0 %v302_v16  ;;  %v290_v24 = vld [vmem:[#allocation5 + $0x1b0] sm:$0xff]  ;;  %v284_v28 = vld [vmem:[#allocation5 + $0x180] sm:$0xff]  ;;  %v279_v35 = vld [vmem:[#allocation5 + $0x158] sm:$0xff] }
  0x44   :  { %582 = vmatpush.msra.mxu2 %v494_v17  ;;  %602 = vmatpush.msra.mxu3 %v303_v19  ;;  %v482_v25 = vld [vmem:[#allocation5 + $0x7b0] sm:$0xff]  ;;  %v476_v29 = vld [vmem:[#allocation5 + $0x780] sm:$0xff]  ;;  %v273_v39 = vld [vmem:[#allocation5 + $0x128] sm:$0xff] }
  0x45   :  { %562 = vmatpush.msra.mxu1 %v398_v18  ;;  %543 = vmatpush.msra.mxu0 %v296_v20  ;;  %v386_v26 = vld [vmem:[#allocation5 + $0x4b0] sm:$0xff]  ;;  %v380_v30 = vld [vmem:[#allocation5 + $0x480] sm:$0xff]  ;;  %v267_v43 = vld [vmem:[#allocation5 + $0xf8] sm:$0xff] }
  0x46   :  { %583 = vmatpush.msra.mxu2 %v488_v21  ;;  %603 = vmatpush.msra.mxu3 %v297_v23  ;;  %v278_v32 = vld [vmem:[#allocation5 + $0x150] sm:$0xff]  ;;  %v272_v36 = vld [vmem:[#allocation5 + $0x120] sm:$0xff]  ;;  %v261_v47 = vld [vmem:[#allocation5 + $0xc8] sm:$0xff] }
  0x47   :  { %563 = vmatpush.msra.mxu1 %v392_v22  ;;  %544 = vmatpush.msra.mxu0 %v290_v24  ;;  %v470_v33 = vld [vmem:[#allocation5 + $0x750] sm:$0xff]  ;;  %v464_v37 = vld [vmem:[#allocation5 + $0x720] sm:$0xff]  ;;  %v255_v51 = vld [vmem:[#allocation5 + $0x98] sm:$0xff] }
  0x48   :  { %584 = vmatpush.msra.mxu2 %v482_v25  ;;  %604 = vmatpush.msra.mxu3 %v291_v27  ;;  %v374_v34 = vld [vmem:[#allocation5 + $0x450] sm:$0xff]  ;;  %v368_v38 = vld [vmem:[#allocation5 + $0x420] sm:$0xff]  ;;  %v249_v55 = vld [vmem:[#allocation5 + $0x68] sm:$0xff] }
  0x49   :  { %564 = vmatpush.msra.mxu1 %v386_v26  ;;  %545 = vmatpush.msra.mxu0 %v284_v28  ;;  %v266_v40 = vld [vmem:[#allocation5 + $0xf0] sm:$0xff]  ;;  %v260_v44 = vld [vmem:[#allocation5 + $0xc0] sm:$0xff]  ;;  %v243_v59 = vld [vmem:[#allocation5 + $0x38] sm:$0xff] }
  0x4a   :  { %585 = vmatpush.msra.mxu2 %v476_v29  ;;  %605 = vmatpush.msra.mxu3 %v285_v31  ;;  %v458_v41 = vld [vmem:[#allocation5 + $0x6f0] sm:$0xff]  ;;  %v452_v45 = vld [vmem:[#allocation5 + $0x6c0] sm:$0xff]  ;;  %v423_v62 = vld [vmem:[#allocation5 + $0x5d8] sm:$0xff] }
  0x4b   :  { %565 = vmatpush.msra.mxu1 %v380_v30  ;;  %546 = vmatpush.msra.mxu0 %v278_v32  ;;  %v362_v42 = vld [vmem:[#allocation5 + $0x3f0] sm:$0xff]  ;;  %v356_v46 = vld [vmem:[#allocation5 + $0x3c0] sm:$0xff]  ;;  %v237_v1 = vld [vmem:[#allocation5 + $0x8] sm:$0xff] }
  0x4c   :  { %586 = vmatpush.msra.mxu2 %v470_v33  ;;  %606 = vmatpush.msra.mxu3 %v279_v35  ;;  %v254_v48 = vld [vmem:[#allocation5 + $0x90] sm:$0xff]  ;;  %v248_v52 = vld [vmem:[#allocation5 + $0x60] sm:$0xff]  ;;  %v417_v2 = vld [vmem:[#allocation5 + $0x5a8] sm:$0xff] }
  0x4d   :  { %566 = vmatpush.msra.mxu1 %v374_v34  ;;  %547 = vmatpush.msra.mxu0 %v272_v36  ;;  %v446_v49 = vld [vmem:[#allocation5 + $0x690] sm:$0xff]  ;;  %v440_v53 = vld [vmem:[#allocation5 + $0x660] sm:$0xff]  ;;  %v519_v3 = vld [vmem:[#allocation5 + $0x8d8] sm:$0xff] }
  0x4e   :  { %587 = vmatpush.msra.mxu2 %v464_v37  ;;  %607 = vmatpush.msra.mxu3 %v273_v39  ;;  %v350_v50 = vld [vmem:[#allocation5 + $0x390] sm:$0xff]  ;;  %v344_v54 = vld [vmem:[#allocation5 + $0x360] sm:$0xff]  ;;  %v411_v6 = vld [vmem:[#allocation5 + $0x578] sm:$0xff] }
  0x4f   :  { %567 = vmatpush.msra.mxu1 %v368_v38  ;;  %548 = vmatpush.msra.mxu0 %v266_v40  ;;  %v242_v56 = vld [vmem:[#allocation5 + $0x30] sm:$0xff]  ;;  %v236_v60 = vld [vmem:[#allocation5] sm:$0xff]  ;;  %v513_v7 = vld [vmem:[#allocation5 + $0x8a8] sm:$0xff] }
  0x50   :  { %588 = vmatpush.msra.mxu2 %v458_v41  ;;  %608 = vmatpush.msra.mxu3 %v267_v43  ;;  %v434_v57 = vld [vmem:[#allocation5 + $0x630] sm:$0xff]  ;;  %v428_v61 = vld [vmem:[#allocation5 + $0x600] sm:$0xff]  ;;  %v405_v10 = vld [vmem:[#allocation5 + $0x548] sm:$0xff] }
  0x51   :  { %568 = vmatpush.msra.mxu1 %v362_v42  ;;  %549 = vmatpush.msra.mxu0 %v260_v44  ;;  %v338_v58 = vld [vmem:[#allocation5 + $0x330] sm:$0xff]  ;;  %v328_v63 = vld [vmem:[#allocation5 + $0x2e0] sm:$0xff]  ;;  %v507_v11 = vld [vmem:[#allocation5 + $0x878] sm:$0xff] }
  0x52   :  { %589 = vmatpush.msra.mxu2 %v452_v45  ;;  %609 = vmatpush.msra.mxu3 %v261_v47  ;;  %v332_v0 = vld [vmem:[#allocation5 + $0x300] sm:$0xff]  ;;  %v322_v4 = vld [vmem:[#allocation5 + $0x2b0] sm:$0xff]  ;;  %v399_v14 = vld [vmem:[#allocation5 + $0x518] sm:$0xff] }
  0x53   :  { %569 = vmatpush.msra.mxu1 %v356_v46  ;;  %550 = vmatpush.msra.mxu0 %v254_v48  ;;  %v424_v5 = vld [vmem:[#allocation5 + $0x5e0] sm:$0xff]  ;;  %v418_v9 = vld [vmem:[#allocation5 + $0x5b0] sm:$0xff]  ;;  %v501_v15 = vld [vmem:[#allocation5 + $0x848] sm:$0xff] }
  0x54   :  { %590 = vmatpush.msra.mxu2 %v446_v49  ;;  %610 = vmatpush.msra.mxu3 %v255_v51  ;;  %v316_v8 = vld [vmem:[#allocation5 + $0x280] sm:$0xff]  ;;  %v310_v12 = vld [vmem:[#allocation5 + $0x250] sm:$0xff]  ;;  %v393_v18 = vld [vmem:[#allocation5 + $0x4e8] sm:$0xff] }
  0x55   :  { %570 = vmatpush.msra.mxu1 %v350_v50  ;;  %551 = vmatpush.msra.mxu0 %v248_v52  ;;  %v412_v13 = vld [vmem:[#allocation5 + $0x580] sm:$0xff]  ;;  %v406_v17 = vld [vmem:[#allocation5 + $0x550] sm:$0xff]  ;;  %v495_v19 = vld [vmem:[#allocation5 + $0x818] sm:$0xff] }
  0x56   :  { %591 = vmatpush.msra.mxu2 %v440_v53  ;;  %611 = vmatpush.msra.mxu3 %v249_v55  ;;  %v304_v16 = vld [vmem:[#allocation5 + $0x220] sm:$0xff]  ;;  %v298_v20 = vld [vmem:[#allocation5 + $0x1f0] sm:$0xff]  ;;  %v387_v22 = vld [vmem:[#allocation5 + $0x4b8] sm:$0xff] }
  0x57   :  { %571 = vmatpush.msra.mxu1 %v344_v54  ;;  %552 = vmatpush.msra.mxu0 %v242_v56  ;;  %v400_v21 = vld [vmem:[#allocation5 + $0x520] sm:$0xff]  ;;  %v489_v23 = vld [vmem:[#allocation5 + $0x7e8] sm:$0xff]  ;;  %v394_v25 = vld [vmem:[#allocation5 + $0x4f0] sm:$0xff] }
  0x58   :  { %592 = vmatpush.msra.mxu2 %v434_v57  ;;  %612 = vmatpush.msra.mxu3 %v243_v59  ;;  %v292_v24 = vld [vmem:[#allocation5 + $0x1c0] sm:$0xff]  ;;  %v381_v26 = vld [vmem:[#allocation5 + $0x488] sm:$0xff]  ;;  %v483_v27 = vld [vmem:[#allocation5 + $0x7b8] sm:$0xff] }
  0x59   :  { %572 = vmatpush.msra.mxu1 %v338_v58  ;;  %553 = vmatpush.msra.mxu0 %v236_v60  ;;  %v286_v28 = vld [vmem:[#allocation5 + $0x190] sm:$0xff]  ;;  %v388_v29 = vld [vmem:[#allocation5 + $0x4c0] sm:$0xff]  ;;  %v375_v30 = vld [vmem:[#allocation5 + $0x458] sm:$0xff] }
  0x5a   :  { %593 = vmatpush.msra.mxu2 %v428_v61  ;;  %613 = vmatpush.msra.mxu3 %v237_v1  ;;  %v477_v31 = vld [vmem:[#allocation5 + $0x788] sm:$0xff]  ;;  %v280_v32 = vld [vmem:[#allocation5 + $0x160] sm:$0xff]  ;;  %v382_v33 = vld [vmem:[#allocation5 + $0x490] sm:$0xff] }
  0x5b   :  { %618 = vmatpush.msrb.mxu0 %v423_v62  ;;  %573 = vmatpush.msra.mxu1 %v332_v0  ;;  %v369_v34 = vld [vmem:[#allocation5 + $0x428] sm:$0xff]  ;;  %v471_v35 = vld [vmem:[#allocation5 + $0x758] sm:$0xff]  ;;  %v274_v36 = vld [vmem:[#allocation5 + $0x130] sm:$0xff] }
  0x5c   :  { %658 = vmatpush.msrb.mxu2 %v328_v63  ;;  %678 = vmatpush.msrb.mxu3 %v424_v5  ;;  %v376_v37 = vld [vmem:[#allocation5 + $0x460] sm:$0xff]  ;;  %v363_v38 = vld [vmem:[#allocation5 + $0x3f8] sm:$0xff]  ;;  %v465_v39 = vld [vmem:[#allocation5 + $0x728] sm:$0xff] }
  0x5d   :  { %619 = vmatpush.msrb.mxu0 %v417_v2  ;;  %638 = vmatpush.msrb.mxu1 %v519_v3  ;;  %v268_v40 = vld [vmem:[#allocation5 + $0x100] sm:$0xff]  ;;  %v370_v41 = vld [vmem:[#allocation5 + $0x430] sm:$0xff]  ;;  %v357_v42 = vld [vmem:[#allocation5 + $0x3c8] sm:$0xff] }
  0x5e   :  { %659 = vmatpush.msrb.mxu2 %v322_v4  ;;  %679 = vmatpush.msrb.mxu3 %v418_v9  ;;  %v459_v43 = vld [vmem:[#allocation5 + $0x6f8] sm:$0xff]  ;;  %v262_v44 = vld [vmem:[#allocation5 + $0xd0] sm:$0xff]  ;;  %v364_v45 = vld [vmem:[#allocation5 + $0x400] sm:$0xff] }
  0x5f   :  { %620 = vmatpush.msrb.mxu0 %v411_v6  ;;  %639 = vmatpush.msrb.mxu1 %v513_v7  ;;  %v351_v46 = vld [vmem:[#allocation5 + $0x398] sm:$0xff]  ;;  %v453_v47 = vld [vmem:[#allocation5 + $0x6c8] sm:$0xff]  ;;  %v256_v48 = vld [vmem:[#allocation5 + $0xa0] sm:$0xff] }
  0x60   :  { %660 = vmatpush.msrb.mxu2 %v316_v8  ;;  %680 = vmatpush.msrb.mxu3 %v412_v13  ;;  %v358_v49 = vld [vmem:[#allocation5 + $0x3d0] sm:$0xff]  ;;  %v345_v50 = vld [vmem:[#allocation5 + $0x368] sm:$0xff]  ;;  %v447_v51 = vld [vmem:[#allocation5 + $0x698] sm:$0xff] }
  0x61   :  { %621 = vmatpush.msrb.mxu0 %v405_v10  ;;  %640 = vmatpush.msrb.mxu1 %v507_v11  ;;  %v250_v52 = vld [vmem:[#allocation5 + $0x70] sm:$0xff]  ;;  %v352_v53 = vld [vmem:[#allocation5 + $0x3a0] sm:$0xff]  ;;  %v4852_v54 = vld [vmem:[#allocation2] sm:$0xff] }
  0x62   :  { %661 = vmatpush.msrb.mxu2 %v310_v12  ;;  %681 = vmatpush.msrb.mxu3 %v406_v17  ;;  %v339_v55 = vld [vmem:[#allocation5 + $0x338] sm:$0xff]  ;;  %v441_v56 = vld [vmem:[#allocation5 + $0x668] sm:$0xff]  ;;  %v244_v57 = vld [vmem:[#allocation5 + $0x40] sm:$0xff] }
  0x63   :  { %622 = vmatpush.msrb.mxu0 %v399_v14  ;;  %641 = vmatpush.msrb.mxu1 %v501_v15  ;;  %v346_v58 = vld [vmem:[#allocation5 + $0x370] sm:$0xff]  ;;  %v4858_v60 = vld [vmem:[#allocation2 + $0x10] sm:$0xff]  ;;  %v333_v61 = vld [vmem:[#allocation5 + $0x308] sm:$0xff] }
  0x64   :  { %662 = vmatpush.msrb.mxu2 %v304_v16  ;;  %682 = vmatpush.msrb.mxu3 %v400_v21  ;;  %v4856_v59 = vld [vmem:[#allocation2 + $0x8] sm:$0xff]  ;;  %v435_v62 = vld [vmem:[#allocation5 + $0x638] sm:$0xff]  ;;  %v340_v0 = vld [vmem:[#allocation5 + $0x340] sm:$0xff] }
  0x65   :  { %623 = vmatpush.msrb.mxu0 %v393_v18  ;;  %642 = vmatpush.msrb.mxu1 %v495_v19  ;;  %v238_v63 = vld [vmem:[#allocation5 + $0x10] sm:$0xff]  ;;  %v520_v1 = vld [vmem:[#allocation5 + $0x8e0] sm:$0xff]  ;;  %v425_v2 = vld [vmem:[#allocation5 + $0x5e8] sm:$0xff] }
  0x66   :  { %663 = vmatpush.msrb.mxu2 %v298_v20  ;;  %683 = vmatpush.msrb.mxu3 %v394_v25  ;;  %v429_v3 = vld [vmem:[#allocation5 + $0x608] sm:$0xff]  ;;  %v334_v4 = vld [vmem:[#allocation5 + $0x310] sm:$0xff]  ;;  %v419_v7 = vld [vmem:[#allocation5 + $0x5b8] sm:$0xff] }
  0x67   :  { %624 = vmatpush.msrb.mxu0 %v387_v22  ;;  %643 = vmatpush.msrb.mxu1 %v489_v23  ;;  %v514_v5 = vld [vmem:[#allocation5 + $0x8b0] sm:$0xff]  ;;  %v329_v6 = vld [vmem:[#allocation5 + $0x2e8] sm:$0xff]  ;;  %v323_v9 = vld [vmem:[#allocation5 + $0x2b8] sm:$0xff] }
  0x68   :  { %664 = vmatpush.msrb.mxu2 %v292_v24  ;;  %684 = vmatpush.msrb.mxu3 %v388_v29  ;;  %v521_v8 = vld [vmem:[#allocation5 + $0x8e8] sm:$0xff]  ;;  %v508_v10 = vld [vmem:[#allocation5 + $0x880] sm:$0xff]  ;;  %v515_v12 = vld [vmem:[#allocation5 + $0x8b8] sm:$0xff] }
  0x69   :  { %625 = vmatpush.msrb.mxu0 %v381_v26  ;;  %644 = vmatpush.msrb.mxu1 %v483_v27  ;;  %v413_v11 = vld [vmem:[#allocation5 + $0x588] sm:$0xff]  ;;  %v502_v13 = vld [vmem:[#allocation5 + $0x850] sm:$0xff]  ;;  %v407_v15 = vld [vmem:[#allocation5 + $0x558] sm:$0xff] }
  0x6a   :  { %665 = vmatpush.msrb.mxu2 %v286_v28  ;;  %685 = vmatpush.msrb.mxu3 %v382_v33  ;;  %v317_v14 = vld [vmem:[#allocation5 + $0x288] sm:$0xff]  ;;  %v496_v17 = vld [vmem:[#allocation5 + $0x820] sm:$0xff]  ;;  %v311_v18 = vld [vmem:[#allocation5 + $0x258] sm:$0xff] }
  0x6b   :  { %626 = vmatpush.msrb.mxu0 %v375_v30  ;;  %645 = vmatpush.msrb.mxu1 %v477_v31  ;;  %v509_v16 = vld [vmem:[#allocation5 + $0x888] sm:$0xff]  ;;  %v503_v20 = vld [vmem:[#allocation5 + $0x858] sm:$0xff]  ;;  %v490_v21 = vld [vmem:[#allocation5 + $0x7f0] sm:$0xff] }
  0x6c   :  { %666 = vmatpush.msrb.mxu2 %v280_v32  ;;  %686 = vmatpush.msrb.mxu3 %v376_v37  ;;  %v401_v19 = vld [vmem:[#allocation5 + $0x528] sm:$0xff]  ;;  %v395_v23 = vld [vmem:[#allocation5 + $0x4f8] sm:$0xff]  ;;  %v484_v25 = vld [vmem:[#allocation5 + $0x7c0] sm:$0xff] }
  0x6d   :  { %627 = vmatpush.msrb.mxu0 %v369_v34  ;;  %646 = vmatpush.msrb.mxu1 %v471_v35  ;;  %v305_v22 = vld [vmem:[#allocation5 + $0x228] sm:$0xff]  ;;  %v299_v26 = vld [vmem:[#allocation5 + $0x1f8] sm:$0xff]  ;;  %v478_v29 = vld [vmem:[#allocation5 + $0x790] sm:$0xff] }
  0x6e   :  { %667 = vmatpush.msrb.mxu2 %v274_v36  ;;  %687 = vmatpush.msrb.mxu3 %v370_v41  ;;  %v497_v24 = vld [vmem:[#allocation5 + $0x828] sm:$0xff]  ;;  %v491_v28 = vld [vmem:[#allocation5 + $0x7f8] sm:$0xff]  ;;  %v472_v33 = vld [vmem:[#allocation5 + $0x760] sm:$0xff] }
  0x6f   :  { %628 = vmatpush.msrb.mxu0 %v363_v38  ;;  %647 = vmatpush.msrb.mxu1 %v465_v39  ;;  %v389_v27 = vld [vmem:[#allocation5 + $0x4c8] sm:$0xff]  ;;  %v383_v31 = vld [vmem:[#allocation5 + $0x498] sm:$0xff]  ;;  %v466_v37 = vld [vmem:[#allocation5 + $0x730] sm:$0xff] }
  0x70   :  { %668 = vmatpush.msrb.mxu2 %v268_v40  ;;  %688 = vmatpush.msrb.mxu3 %v364_v45  ;;  %v293_v30 = vld [vmem:[#allocation5 + $0x1c8] sm:$0xff]  ;;  %v287_v34 = vld [vmem:[#allocation5 + $0x198] sm:$0xff]  ;;  %v460_v41 = vld [vmem:[#allocation5 + $0x700] sm:$0xff] }
  0x71   :  { %629 = vmatpush.msrb.mxu0 %v357_v42  ;;  %648 = vmatpush.msrb.mxu1 %v459_v43  ;;  %v485_v32 = vld [vmem:[#allocation5 + $0x7c8] sm:$0xff]  ;;  %v479_v36 = vld [vmem:[#allocation5 + $0x798] sm:$0xff]  ;;  %v454_v45 = vld [vmem:[#allocation5 + $0x6d0] sm:$0xff] }
  0x72   :  { %669 = vmatpush.msrb.mxu2 %v262_v44  ;;  %689 = vmatpush.msrb.mxu3 %v358_v49  ;;  %v377_v35 = vld [vmem:[#allocation5 + $0x468] sm:$0xff]  ;;  %v371_v39 = vld [vmem:[#allocation5 + $0x438] sm:$0xff]  ;;  %v448_v49 = vld [vmem:[#allocation5 + $0x6a0] sm:$0xff] }
  0x73   :  { %630 = vmatpush.msrb.mxu0 %v351_v46  ;;  %649 = vmatpush.msrb.mxu1 %v453_v47  ;;  %v281_v38 = vld [vmem:[#allocation5 + $0x168] sm:$0xff]  ;;  %v275_v42 = vld [vmem:[#allocation5 + $0x138] sm:$0xff] }
  0x74   :  { %670 = vmatpush.msrb.mxu2 %v256_v48  ;;  %690 = vmatpush.msrb.mxu3 %v352_v53  ;;  %v473_v40 = vld [vmem:[#allocation5 + $0x768] sm:$0xff]  ;;  %v467_v44 = vld [vmem:[#allocation5 + $0x738] sm:$0xff]  ;;  %v442_v53 = vld [vmem:[#allocation5 + $0x670] sm:$0xff] }
  0x75   :  { %631 = vmatpush.msrb.mxu0 %v345_v50  ;;  %650 = vmatpush.msrb.mxu1 %v447_v51  ;;  %v365_v43 = vld [vmem:[#allocation5 + $0x408] sm:$0xff]  ;;  %v359_v47 = vld [vmem:[#allocation5 + $0x3d8] sm:$0xff] }
  0x76   :  { %671 = vmatpush.msrb.mxu2 %v250_v52  ;;  %554 = vmatmul.f32.vlgmr.msra.gmra.mxu0 %v4852_v54  ;;  %v269_v46 = vld [vmem:[#allocation5 + $0x108] sm:$0xff]  ;;  %v263_v50 = vld [vmem:[#allocation5 + $0xd8] sm:$0xff] }
  0x77   :  { %614 = vmatmul.f32.vlgmr.msra.gmra.mxu3 %v4852_v54  ;;  %632 = vmatpush.msrb.mxu0 %v339_v55  ;;  %v461_v48 = vld [vmem:[#allocation5 + $0x708] sm:$0xff]  ;;  %v455_v52 = vld [vmem:[#allocation5 + $0x6d8] sm:$0xff] }
  0x78   :  { %651 = vmatpush.msrb.mxu1 %v441_v56  ;;  %672 = vmatpush.msrb.mxu2 %v244_v57  ;;  %v353_v51 = vld [vmem:[#allocation5 + $0x3a8] sm:$0xff]  ;;  %v347_v56 = vld [vmem:[#allocation5 + $0x378] sm:$0xff] }
  0x79   :  { %691 = vmatpush.msrb.mxu3 %v346_v58  ;;  %574 = vmatmul.f32.vlgmr.msra.gmra.mxu1 %v4856_v59  ;;  %v257_v55 = vld [vmem:[#allocation5 + $0xa8] sm:$0xff]  ;;  %v436_v58 = vld [vmem:[#allocation5 + $0x640] sm:$0xff] }
  0x7a   :  { %594 = vmatmul.f32.vlgmr.msra.gmra.mxu2 %v4858_v60  ;;  %633 = vmatpush.msrb.mxu0 %v333_v61  ;;  %v449_v57 = vld [vmem:[#allocation5 + $0x6a8] sm:$0xff]  ;;  %v251_v61 = vld [vmem:[#allocation5 + $0x78] sm:$0xff] }
  0x7b   :  { %652 = vmatpush.msrb.mxu1 %v435_v62  ;;  %673 = vmatpush.msrb.mxu2 %v238_v63  ;;  %v341_v62 = vld [vmem:[#allocation5 + $0x348] sm:$0xff]  ;;  %v443_v63 = vld [vmem:[#allocation5 + $0x678] sm:$0xff] }
  0x7c   :  { %692 = vmatpush.msrb.mxu3 %v340_v0  ;;  %698 = vmatpush.msra.mxu0 %v520_v1  ;;  %v430_v0 = vld [vmem:[#allocation5 + $0x610] sm:$0xff]  ;;  %v245_v1 = vld [vmem:[#allocation5 + $0x48] sm:$0xff] }
  0x7d   :  { %738 = vmatpush.msra.mxu2 %v425_v2  ;;  %653 = vmatpush.msrb.mxu1 %v429_v3  ;;  %v335_v2 = vld [vmem:[#allocation5 + $0x318] sm:$0xff]  ;;  %v437_v3 = vld [vmem:[#allocation5 + $0x648] sm:$0xff] }
  0x7e   :  { %693 = vmatpush.msrb.mxu3 %v334_v4  ;;  %699 = vmatpush.msra.mxu0 %v514_v5  ;;  %v330_v4 = vld [vmem:[#allocation5 + $0x2f0] sm:$0xff] }
  0x7f   :  { %718 = vmatpush.msra.mxu1 %v329_v6  ;;  %739 = vmatpush.msra.mxu2 %v419_v7  ;;  %v522_v5 = vld [vmem:[#allocation5 + $0x8f0] sm:$0xff]  ;;  %v239_v6 = vld [vmem:[#allocation5 + $0x18] sm:$0xff] }
  0x80   :  { %758 = vmatpush.msra.mxu3 %v521_v8  ;;  %634 = vmatmul.f32.vlgmr.msrb.gmra.mxu0 %v4856_v59  ;;  %v431_v7 = vld [vmem:[#allocation5 + $0x618] sm:$0xff]  ;;  %v324_v8 = vld [vmem:[#allocation5 + $0x2c0] sm:$0xff] }
  0x81   :  { %719 = vmatpush.msra.mxu1 %v323_v9  ;;  %700 = vmatpush.msra.mxu0 %v508_v10  ;;  %v426_v9 = vld [vmem:[#allocation5 + $0x5f0] sm:$0xff]  ;;  %v516_v10 = vld [vmem:[#allocation5 + $0x8c0] sm:$0xff] }
  0x82   :  { %740 = vmatpush.msra.mxu2 %v413_v11  ;;  %759 = vmatpush.msra.mxu3 %v515_v12  ;;  %v318_v11 = vld [vmem:[#allocation5 + $0x290] sm:$0xff]  ;;  %v420_v12 = vld [vmem:[#allocation5 + $0x5c0] sm:$0xff] }
  0x83   :  { %654 = vmatmul.f32.vlgmr.msrb.gmra.mxu1 %v4858_v60  ;;  %701 = vmatpush.msra.mxu0 %v502_v13  ;;  %v510_v13 = vld [vmem:[#allocation5 + $0x890] sm:$0xff] }
  0x84   :  { %720 = vmatpush.msra.mxu1 %v317_v14  ;;  %741 = vmatpush.msra.mxu2 %v407_v15  ;;  %v312_v14 = vld [vmem:[#allocation5 + $0x260] sm:$0xff]  ;;  %v331_v15 = vld [vmem:[#allocation5 + $0x2f8] sm:$0xff] }
  0x85   :  { %760 = vmatpush.msra.mxu3 %v509_v16  ;;  %702 = vmatpush.msra.mxu0 %v496_v17  ;;  %v414_v16 = vld [vmem:[#allocation5 + $0x590] sm:$0xff]  ;;  %v504_v17 = vld [vmem:[#allocation5 + $0x860] sm:$0xff] }
  0x86   :  { %721 = vmatpush.msra.mxu1 %v311_v18  ;;  %742 = vmatpush.msra.mxu2 %v401_v19  ;;  %v306_v18 = vld [vmem:[#allocation5 + $0x230] sm:$0xff]  ;;  %v325_v19 = vld [vmem:[#allocation5 + $0x2c8] sm:$0xff] }
  0x87   :  { %761 = vmatpush.msra.mxu3 %v503_v20  ;;  %703 = vmatpush.msra.mxu0 %v490_v21  ;;  %v408_v20 = vld [vmem:[#allocation5 + $0x560] sm:$0xff]  ;;  %v498_v21 = vld [vmem:[#allocation5 + $0x830] sm:$0xff] }
  0x88   :  { %722 = vmatpush.msra.mxu1 %v305_v22  ;;  %743 = vmatpush.msra.mxu2 %v395_v23  ;;  %v300_v22 = vld [vmem:[#allocation5 + $0x200] sm:$0xff]  ;;  %v319_v23 = vld [vmem:[#allocation5 + $0x298] sm:$0xff] }
  0x89   :  { %762 = vmatpush.msra.mxu3 %v497_v24  ;;  %704 = vmatpush.msra.mxu0 %v484_v25  ;;  %v402_v24 = vld [vmem:[#allocation5 + $0x530] sm:$0xff]  ;;  %v492_v25 = vld [vmem:[#allocation5 + $0x800] sm:$0xff] }
  0x8a   :  { %723 = vmatpush.msra.mxu1 %v299_v26  ;;  %744 = vmatpush.msra.mxu2 %v389_v27  ;;  %v294_v26 = vld [vmem:[#allocation5 + $0x1d0] sm:$0xff]  ;;  %v313_v27 = vld [vmem:[#allocation5 + $0x268] sm:$0xff] }
  0x8b   :  { %763 = vmatpush.msra.mxu3 %v491_v28  ;;  %705 = vmatpush.msra.mxu0 %v478_v29  ;;  %v396_v28 = vld [vmem:[#allocation5 + $0x500] sm:$0xff]  ;;  %v486_v29 = vld [vmem:[#allocation5 + $0x7d0] sm:$0xff] }
  0x8c   :  { %724 = vmatpush.msra.mxu1 %v293_v30  ;;  %745 = vmatpush.msra.mxu2 %v383_v31  ;;  %v288_v30 = vld [vmem:[#allocation5 + $0x1a0] sm:$0xff]  ;;  %v307_v31 = vld [vmem:[#allocation5 + $0x238] sm:$0xff] }
  0x8d   :  { %764 = vmatpush.msra.mxu3 %v485_v32  ;;  %706 = vmatpush.msra.mxu0 %v472_v33  ;;  %v390_v32 = vld [vmem:[#allocation5 + $0x4d0] sm:$0xff]  ;;  %v480_v33 = vld [vmem:[#allocation5 + $0x7a0] sm:$0xff] }
  0x8e   :  { %725 = vmatpush.msra.mxu1 %v287_v34  ;;  %746 = vmatpush.msra.mxu2 %v377_v35  ;;  %v282_v34 = vld [vmem:[#allocation5 + $0x170] sm:$0xff]  ;;  %v301_v35 = vld [vmem:[#allocation5 + $0x208] sm:$0xff] }
  0x8f   :  { %765 = vmatpush.msra.mxu3 %v479_v36  ;;  %707 = vmatpush.msra.mxu0 %v466_v37  ;;  %v384_v36 = vld [vmem:[#allocation5 + $0x4a0] sm:$0xff]  ;;  %v474_v37 = vld [vmem:[#allocation5 + $0x770] sm:$0xff] }
  0x90   :  { %726 = vmatpush.msra.mxu1 %v281_v38  ;;  %747 = vmatpush.msra.mxu2 %v371_v39  ;;  %v276_v38 = vld [vmem:[#allocation5 + $0x140] sm:$0xff]  ;;  %v295_v39 = vld [vmem:[#allocation5 + $0x1d8] sm:$0xff] }
  0x91   :  { %766 = vmatpush.msra.mxu3 %v473_v40  ;;  %708 = vmatpush.msra.mxu0 %v460_v41  ;;  %v378_v40 = vld [vmem:[#allocation5 + $0x470] sm:$0xff]  ;;  %v468_v41 = vld [vmem:[#allocation5 + $0x740] sm:$0xff] }
  0x92   :  { %727 = vmatpush.msra.mxu1 %v275_v42  ;;  %748 = vmatpush.msra.mxu2 %v365_v43  ;;  %v270_v42 = vld [vmem:[#allocation5 + $0x110] sm:$0xff]  ;;  %v289_v43 = vld [vmem:[#allocation5 + $0x1a8] sm:$0xff] }
  0x93   :  { %767 = vmatpush.msra.mxu3 %v467_v44  ;;  %674 = vmatmul.f32.vlgmr.msrb.gmra.mxu2 %v4852_v54  ;;  %v372_v44 = vld [vmem:[#allocation5 + $0x440] sm:$0xff] }
  0x94   :  { %709 = vmatpush.msra.mxu0 %v454_v45  ;;  %728 = vmatpush.msra.mxu1 %v269_v46  ;;  %v462_v45 = vld [vmem:[#allocation5 + $0x710] sm:$0xff]  ;;  %v264_v46 = vld [vmem:[#allocation5 + $0xe0] sm:$0xff] }
  0x95   :  { %749 = vmatpush.msra.mxu2 %v359_v47  ;;  %768 = vmatpush.msra.mxu3 %v461_v48  ;;  %v283_v47 = vld [vmem:[#allocation5 + $0x178] sm:$0xff]  ;;  %v366_v48 = vld [vmem:[#allocation5 + $0x410] sm:$0xff] }
  0x96   :  { %710 = vmatpush.msra.mxu0 %v448_v49  ;;  %694 = vmatmul.f32.vlgmr.msrb.gmra.mxu3 %v4856_v59  ;;  %v456_v49 = vld [vmem:[#allocation5 + $0x6e0] sm:$0xff] }
  0x97   :  { %729 = vmatpush.msra.mxu1 %v263_v50  ;;  %750 = vmatpush.msra.mxu2 %v353_v51  ;;  %v258_v50 = vld [vmem:[#allocation5 + $0xb0] sm:$0xff]  ;;  %v277_v51 = vld [vmem:[#allocation5 + $0x148] sm:$0xff] }
  0x98   :  { %769 = vmatpush.msra.mxu3 %v455_v52  ;;  %711 = vmatpush.msra.mxu0 %v442_v53  ;;  %v360_v52 = vld [vmem:[#allocation5 + $0x3e0] sm:$0xff]  ;;  %v450_v53 = vld [vmem:[#allocation5 + $0x6b0] sm:$0xff] }
  0x99   :  { %730 = vmatpush.msra.mxu1 %v257_v55  ;;  %751 = vmatpush.msra.mxu2 %v347_v56  ;;  %v252_v55 = vld [vmem:[#allocation5 + $0x80] sm:$0xff]  ;;  %v271_v56 = vld [vmem:[#allocation5 + $0x118] sm:$0xff] }
  0x9a   :  { %770 = vmatpush.msra.mxu3 %v449_v57  ;;  %712 = vmatpush.msra.mxu0 %v436_v58  ;;  %v354_v57 = vld [vmem:[#allocation5 + $0x3b0] sm:$0xff]  ;;  %v444_v58 = vld [vmem:[#allocation5 + $0x680] sm:$0xff] }
  0x9b   :  { %731 = vmatpush.msra.mxu1 %v251_v61  ;;  %752 = vmatpush.msra.mxu2 %v341_v62  ;;  %v246_v61 = vld [vmem:[#allocation5 + $0x50] sm:$0xff]  ;;  %v265_v62 = vld [vmem:[#allocation5 + $0xe8] sm:$0xff] }
  0x9c   :  { %771 = vmatpush.msra.mxu3 %v443_v63  ;;  %713 = vmatpush.msra.mxu0 %v430_v0  ;;  %v348_v63 = vld [vmem:[#allocation5 + $0x380] sm:$0xff]  ;;  %v438_v0 = vld [vmem:[#allocation5 + $0x650] sm:$0xff] }
  0x9d   :  { %732 = vmatpush.msra.mxu1 %v245_v1  ;;  %753 = vmatpush.msra.mxu2 %v335_v2  ;;  %v240_v1 = vld [vmem:[#allocation5 + $0x20] sm:$0xff]  ;;  %v259_v2 = vld [vmem:[#allocation5 + $0xb8] sm:$0xff] }
  0x9e   :  { %772 = vmatpush.msra.mxu3 %v437_v3  ;;  %714 = vmatmul.f32.vlgmr.msra.gmra.mxu0 %v4858_v60  ;;  %v342_v3 = vld [vmem:[#allocation5 + $0x350] sm:$0xff] }
  0x9f   :  { %754 = vmatmul.f32.vlgmr.msra.gmra.mxu2 %v4856_v59  ;;  %778 = vmatpush.msrb.mxu0 %v330_v4  ;;  %v432_v4 = vld [vmem:[#allocation5 + $0x620] sm:$0xff] }
  0xa0   :  { %818 = vmatpush.msrb.mxu2 %v522_v5  ;;  %733 = vmatpush.msra.mxu1 %v239_v6  ;;  %v427_v5 = vld [vmem:[#allocation5 + $0x5f8] sm:$0xff]  ;;  %v336_v6 = vld [vmem:[#allocation5 + $0x320] sm:$0xff] }
  0xa1   :  { %773 = vmatpush.msra.mxu3 %v431_v7  ;;  %779 = vmatpush.msrb.mxu0 %v324_v8  ;;  %v421_v7 = vld [vmem:[#allocation5 + $0x5c8] sm:$0xff]  ;;  %v523_v8 = vld [vmem:[#allocation5 + $0x8f8] sm:$0xff] }
  0xa2   :  { %774 = vmatmul.f32.vlgmr.msra.gmra.mxu3 %v4858_v60  ;;  %798 = vmatpush.msrb.mxu1 %v426_v9  ;;  %v253_v9 = vld [vmem:[#allocation5 + $0x88] sm:$0xff] }
  0xa3   :  { %819 = vmatpush.msrb.mxu2 %v516_v10  ;;  %734 = vmatmul.f32.vlgmr.msra.gmra.mxu1 %v4852_v54  ;;  %v415_v10 = vld [vmem:[#allocation5 + $0x598] sm:$0xff] }
  0xa4   :  { %780 = vmatpush.msrb.mxu0 %v318_v11  ;;  %799 = vmatpush.msrb.mxu1 %v420_v12  ;;  %v517_v11 = vld [vmem:[#allocation5 + $0x8c8] sm:$0xff]  ;;  %v247_v12 = vld [vmem:[#allocation5 + $0x58] sm:$0xff] }
  0xa5   :  { %820 = vmatpush.msrb.mxu2 %v510_v13  ;;  %838 = vmatpush.msrb.mxu3 %v331_v15  ;;  %v979_v13 = vld [vmem:[#allocation8 + $0x258] sm:$0xff] }
  0xa6   :  { %781 = vmatpush.msrb.mxu0 %v312_v14  ;;  %800 = vmatpush.msrb.mxu1 %v414_v16  ;;  %v409_v14 = vld [vmem:[#allocation5 + $0x568] sm:$0xff]  ;;  %v511_v15 = vld [vmem:[#allocation5 + $0x898] sm:$0xff] }
  0xa7   :  { %821 = vmatpush.msrb.mxu2 %v504_v17  ;;  %839 = vmatpush.msrb.mxu3 %v325_v19  ;;  %v241_v16 = vld [vmem:[#allocation5 + $0x28] sm:$0xff]  ;;  %v974_v17 = vld [vmem:[#allocation8 + $0x230] sm:$0xff] }
  0xa8   :  { %782 = vmatpush.msrb.mxu0 %v306_v18  ;;  %801 = vmatpush.msrb.mxu1 %v408_v20  ;;  %v403_v18 = vld [vmem:[#allocation5 + $0x538] sm:$0xff]  ;;  %v505_v19 = vld [vmem:[#allocation5 + $0x868] sm:$0xff] }
  0xa9   :  { %822 = vmatpush.msrb.mxu2 %v498_v21  ;;  %840 = vmatpush.msrb.mxu3 %v319_v23  ;;  %v969_v20 = vld [vmem:[#allocation8 + $0x208] sm:$0xff]  ;;  %v1059_v23 = vld [vmem:[#allocation8 + $0x4d8] sm:$0xff] }
  0xaa   :  { %783 = vmatpush.msrb.mxu0 %v300_v22  ;;  %802 = vmatpush.msrb.mxu1 %v402_v24  ;;  %v397_v21 = vld [vmem:[#allocation5 + $0x508] sm:$0xff]  ;;  %v499_v22 = vld [vmem:[#allocation5 + $0x838] sm:$0xff] }
  0xab   :  { %823 = vmatpush.msrb.mxu2 %v492_v25  ;;  %841 = vmatpush.msrb.mxu3 %v313_v27  ;;  %v964_v24 = vld [vmem:[#allocation8 + $0x1e0] sm:$0xff]  ;;  %v391_v25 = vld [vmem:[#allocation5 + $0x4d8] sm:$0xff] }
  0xac   :  { %784 = vmatpush.msrb.mxu0 %v294_v26  ;;  %803 = vmatpush.msrb.mxu1 %v396_v28  ;;  %v493_v26 = vld [vmem:[#allocation5 + $0x808] sm:$0xff]  ;;  %v1054_v27 = vld [vmem:[#allocation8 + $0x4b0] sm:$0xff]  ;;  %v959_v28 = vld [vmem:[#allocation8 + $0x1b8] sm:$0xff] }
  0xad   :  { %824 = vmatpush.msrb.mxu2 %v486_v29  ;;  %842 = vmatpush.msrb.mxu3 %v307_v31  ;;  %v385_v29 = vld [vmem:[#allocation5 + $0x4a8] sm:$0xff] }
  0xae   :  { %785 = vmatpush.msrb.mxu0 %v288_v30  ;;  %804 = vmatpush.msrb.mxu1 %v390_v32  ;;  %v487_v30 = vld [vmem:[#allocation5 + $0x7d8] sm:$0xff]  ;;  %v1049_v31 = vld [vmem:[#allocation8 + $0x488] sm:$0xff] }
  0xaf   :  { %825 = vmatpush.msrb.mxu2 %v480_v33  ;;  %843 = vmatpush.msrb.mxu3 %v301_v35  ;;  %v954_v32 = vld [vmem:[#allocation8 + $0x190] sm:$0xff]  ;;  %v949_v35 = vld [vmem:[#allocation8 + $0x168] sm:$0xff] }
  0xb0   :  { %786 = vmatpush.msrb.mxu0 %v282_v34  ;;  %805 = vmatpush.msrb.mxu1 %v384_v36  ;;  %v379_v33 = vld [vmem:[#allocation5 + $0x478] sm:$0xff]  ;;  %v481_v34 = vld [vmem:[#allocation5 + $0x7a8] sm:$0xff] }
  0xb1   :  { %826 = vmatpush.msrb.mxu2 %v474_v37  ;;  %844 = vmatpush.msrb.mxu3 %v295_v39  ;;  %v373_v36 = vld [vmem:[#allocation5 + $0x448] sm:$0xff]  ;;  %v475_v37 = vld [vmem:[#allocation5 + $0x778] sm:$0xff] }
  0xb2   :  { %787 = vmatpush.msrb.mxu0 %v276_v38  ;;  %806 = vmatpush.msrb.mxu1 %v378_v40  ;;  %v1039_v38 = vld [vmem:[#allocation8 + $0x438] sm:$0xff]  ;;  %v944_v39 = vld [vmem:[#allocation8 + $0x140] sm:$0xff] }
  0xb3   :  { %827 = vmatpush.msrb.mxu2 %v468_v41  ;;  %845 = vmatpush.msrb.mxu3 %v289_v43  ;;  %v367_v40 = vld [vmem:[#allocation5 + $0x418] sm:$0xff]  ;;  %v469_v41 = vld [vmem:[#allocation5 + $0x748] sm:$0xff] }
  0xb4   :  { %788 = vmatpush.msrb.mxu0 %v270_v42  ;;  %807 = vmatpush.msrb.mxu1 %v372_v44  ;;  %v1034_v42 = vld [vmem:[#allocation8 + $0x410] sm:$0xff]  ;;  %v939_v43 = vld [vmem:[#allocation8 + $0x118] sm:$0xff]  ;;  %v361_v44 = vld [vmem:[#allocation5 + $0x3e8] sm:$0xff] }
  0xb5   :  { %828 = vmatpush.msrb.mxu2 %v462_v45  ;;  %846 = vmatpush.msrb.mxu3 %v283_v47  ;;  %v463_v45 = vld [vmem:[#allocation5 + $0x718] sm:$0xff] }
  0xb6   :  { %789 = vmatpush.msrb.mxu0 %v264_v46  ;;  %808 = vmatpush.msrb.mxu1 %v366_v48  ;;  %v1029_v46 = vld [vmem:[#allocation8 + $0x3e8] sm:$0xff]  ;;  %v355_v47 = vld [vmem:[#allocation5 + $0x3b8] sm:$0xff] }
  0xb7   :  { %829 = vmatpush.msrb.mxu2 %v456_v49  ;;  %847 = vmatpush.msrb.mxu3 %v277_v51  ;;  %v457_v48 = vld [vmem:[#allocation5 + $0x6e8] sm:$0xff]  ;;  %v934_v49 = vld [vmem:[#allocation8 + $0xf0] sm:$0xff] }
  0xb8   :  { %790 = vmatpush.msrb.mxu0 %v258_v50  ;;  %809 = vmatpush.msrb.mxu1 %v360_v52  ;;  %v1024_v50 = vld [vmem:[#allocation8 + $0x3c0] sm:$0xff]  ;;  %v451_v52 = vld [vmem:[#allocation5 + $0x6b8] sm:$0xff] }
  0xb9   :  { %830 = vmatpush.msrb.mxu2 %v450_v53  ;;  %848 = vmatpush.msrb.mxu3 %v271_v56  ;;  %v349_v51 = vld [vmem:[#allocation5 + $0x388] sm:$0xff]  ;;  %v1019_v53 = vld [vmem:[#allocation8 + $0x398] sm:$0xff] }
  0xba   :  { %791 = vmatpush.msrb.mxu0 %v252_v55  ;;  %810 = vmatpush.msrb.mxu1 %v354_v57  ;;  %v929_v55 = vld [vmem:[#allocation8 + $0xc8] sm:$0xff]  ;;  %v343_v56 = vld [vmem:[#allocation5 + $0x358] sm:$0xff] }
  0xbb   :  { %831 = vmatpush.msrb.mxu2 %v444_v58  ;;  %849 = vmatpush.msrb.mxu3 %v265_v62  ;;  %v445_v57 = vld [vmem:[#allocation5 + $0x688] sm:$0xff] }
  0xbc   :  { %792 = vmatpush.msrb.mxu0 %v246_v61  ;;  %811 = vmatpush.msrb.mxu1 %v348_v63  ;;  %v924_v58 = vld [vmem:[#allocation8 + $0xa0] sm:$0xff]  ;;  %v1014_v61 = vld [vmem:[#allocation8 + $0x370] sm:$0xff] }
  0xbd   :  { %832 = vmatpush.msrb.mxu2 %v438_v0  ;;  %850 = vmatpush.msrb.mxu3 %v259_v2  ;;  %v337_v62 = vld [vmem:[#allocation5 + $0x328] sm:$0xff]  ;;  %v439_v63 = vld [vmem:[#allocation5 + $0x658] sm:$0xff] }
  0xbe   :  { %793 = vmatpush.msrb.mxu0 %v240_v1  ;;  %812 = vmatpush.msrb.mxu1 %v342_v3  ;;  %v919_v0 = vld [vmem:[#allocation8 + $0x78] sm:$0xff]  ;;  %v1009_v1 = vld [vmem:[#allocation8 + $0x348] sm:$0xff] }
  0xbf   :  { %833 = vmatpush.msrb.mxu2 %v432_v4  ;;  %794 = vmatmul.f32.vlgmr.msrb.gmra.mxu0 %v4852_v54  ;;  %v433_v2 = vld [vmem:[#allocation5 + $0x628] sm:$0xff]  ;;  %v1139_v3 = vld [vmem:[#allocation8 + $0x758] sm:$0xff] }
  0xc0   :  { %834 = vmatmul.f32.vlgmr.msrb.gmra.mxu2 %v4858_v60  ;;  %858 = vmatpush.msra.mxu0 %v427_v5  ;;  %v1004_v4 = vld [vmem:[#allocation8 + $0x320] sm:$0xff]  ;;  %v1134_v5 = vld [vmem:[#allocation8 + $0x730] sm:$0xff] }
  0xc1   :  { %813 = vmatpush.msrb.mxu1 %v336_v6  ;;  %851 = vmatpush.msrb.mxu3 %v253_v9  ;;  %v1219_v6 = vld [vmem:[#allocation8 + $0x9d8] sm:$0xff]  ;;  %v1129_v9 = vld [vmem:[#allocation8 + $0x708] sm:$0xff] }
  0xc2   :  { %859 = vmatpush.msra.mxu0 %v421_v7  ;;  %814 = vmatmul.f32.vlgmr.msrb.gmra.mxu1 %v4856_v59  ;;  %v914_v7 = vld [vmem:[#allocation8 + $0x50] sm:$0xff] }
  0xc3   :  { %878 = vmatpush.msra.mxu1 %v523_v8  ;;  %852 = vmatpush.msrb.mxu3 %v247_v12  ;;  %v999_v8 = vld [vmem:[#allocation8 + $0x2f8] sm:$0xff]  ;;  %v1209_v12 = vld [vmem:[#allocation8 + $0x988] sm:$0xff] }
  0xc4   :  { %860 = vmatpush.msra.mxu0 %v415_v10  ;;  %1396 = vmatpush.msra.mxu2 %v979_v13  ;;  %v1214_v10 = vld [vmem:[#allocation8 + $0x9b0] sm:$0xff]  ;;  %v909_v13 = vld [vmem:[#allocation8 + $0x28] sm:$0xff] }
  0xc5   :  { %879 = vmatpush.msra.mxu1 %v517_v11  ;;  %853 = vmatpush.msrb.mxu3 %v241_v16  ;;  %v1124_v11 = vld [vmem:[#allocation8 + $0x6e0] sm:$0xff]  ;;  %v1119_v16 = vld [vmem:[#allocation8 + $0x6b8] sm:$0xff] }
  0xc6   :  { %861 = vmatpush.msra.mxu0 %v409_v14  ;;  %1397 = vmatpush.msra.mxu2 %v974_v17  ;;  %v904_v14 = vld [vmem:[#allocation8] sm:$0xff] }
  0xc7   :  { %880 = vmatpush.msra.mxu1 %v511_v15  ;;  %854 = vmatmul.f32.vlgmr.msrb.gmra.mxu3 %v4852_v54  ;;  %v1044_v54 = vld [vmem:[#allocation8 + $0x460] sm:$0xff]  ;;  %v989_v15 = vld [vmem:[#allocation8 + $0x2a8] sm:$0xff] }
  0xc8   :  { %862 = vmatpush.msra.mxu0 %v403_v18  ;;  %1398 = vmatpush.msra.mxu2 %v969_v20  ;;  %v1204_v17 = vld [vmem:[#allocation8 + $0x960] sm:$0xff]  ;;  %v1299_v18 = vld [vmem:[#allocation8 + $0xc58] sm:$0xff] }
  0xc9   :  { %881 = vmatpush.msra.mxu1 %v505_v19  ;;  %1416 = vmatpush.msra.mxu3 %v1059_v23  ;;  %v1114_v19 = vld [vmem:[#allocation8 + $0x690] sm:$0xff]  ;;  %v1199_v20 = vld [vmem:[#allocation8 + $0x938] sm:$0xff] }
  0xca   :  { %863 = vmatpush.msra.mxu0 %v397_v21  ;;  %1399 = vmatpush.msra.mxu2 %v964_v24  ;;  %v1294_v21 = vld [vmem:[#allocation8 + $0xc30] sm:$0xff]  ;;  %v1289_v24 = vld [vmem:[#allocation8 + $0xc08] sm:$0xff] }
  0xcb   :  { %882 = vmatpush.msra.mxu1 %v499_v22  ;;  %1417 = vmatpush.msra.mxu3 %v1054_v27  ;;  %v1109_v22 = vld [vmem:[#allocation8 + $0x668] sm:$0xff]  ;;  %v1194_v23 = vld [vmem:[#allocation8 + $0x910] sm:$0xff]  ;;  %v1284_v27 = vld [vmem:[#allocation8 + $0xbe0] sm:$0xff] }
  0xcc   :  { %864 = vmatpush.msra.mxu0 %v391_v25  ;;  %1400 = vmatpush.msra.mxu2 %v959_v28  ;;  %v1104_v25 = vld [vmem:[#allocation8 + $0x640] sm:$0xff]  ;;  %v1099_v28 = vld [vmem:[#allocation8 + $0x618] sm:$0xff] }
  0xcd   :  { %883 = vmatpush.msra.mxu1 %v493_v26  ;;  %1418 = vmatpush.msra.mxu3 %v1049_v31  ;;  %v1189_v26 = vld [vmem:[#allocation8 + $0x8e8] sm:$0xff]  ;;  %v1094_v31 = vld [vmem:[#allocation8 + $0x5f0] sm:$0xff] }
  0xce   :  { %865 = vmatpush.msra.mxu0 %v385_v29  ;;  %1401 = vmatpush.msra.mxu2 %v954_v32  ;;  %v1184_v29 = vld [vmem:[#allocation8 + $0x8c0] sm:$0xff]  ;;  %v4876_v32 = vld [vmem:[#allocation7] sm:$0x3f] }
  0xcf   :  { %884 = vmatpush.msra.mxu1 %v487_v30  ;;  %1419 = vmatpush.msra.mxu3 %v1044_v54  ;;  %v1279_v30 = vld [vmem:[#allocation8 + $0xbb8] sm:$0xff]  ;;  %v1089_v54 = vld [vmem:[#allocation8 + $0x5c8] sm:$0xff] }
  0xd0   :  { %866 = vmatpush.msra.mxu0 %v379_v33  ;;  %1402 = vmatpush.msra.mxu2 %v949_v35  ;;  %v1179_v33 = vld [vmem:[#allocation8 + $0x898] sm:$0xff]  ;;  %v1174_v35 = vld [vmem:[#allocation8 + $0x870] sm:$0xff] }
  0xd1   :  { %885 = vmatpush.msra.mxu1 %v481_v34  ;;  %1420 = vmatpush.msra.mxu3 %v1039_v38  ;;  %v1274_v34 = vld [vmem:[#allocation8 + $0xb90] sm:$0xff]  ;;  %v1084_v38 = vld [vmem:[#allocation8 + $0x5a0] sm:$0xff] }
  0xd2   :  { %867 = vmatpush.msra.mxu0 %v373_v36  ;;  %1403 = vmatpush.msra.mxu2 %v944_v39  ;;  %v526_v36 = vperm.slane %v4876_v32, 0  ;;  %v1169_v39 = vld [vmem:[#allocation8 + $0x848] sm:$0xff] }
  0xd3   :  { %886 = vmatpush.msra.mxu1 %v475_v37  ;;  %1421 = vmatpush.msra.mxu3 %v1034_v42  ;;  %v1269_v37 = vld [vmem:[#allocation8 + $0xb68] sm:$0xff]  ;;  %v1079_v42 = vld [vmem:[#allocation8 + $0x578] sm:$0xff] }
  0xd4   :  { %868 = vmatpush.msra.mxu0 %v367_v40  ;;  %1404 = vmatpush.msra.mxu2 %v939_v43  ;;  %v1164_v43 = vld [vmem:[#allocation8 + $0x820] sm:$0xff] }
  0xd5   :  { %887 = vmatpush.msra.mxu1 %v469_v41  ;;  %1422 = vmatpush.msra.mxu3 %v1029_v46  ;;  %v1264_v41 = vld [vmem:[#allocation8 + $0xb40] sm:$0xff]  ;;  %v1074_v46 = vld [vmem:[#allocation8 + $0x550] sm:$0xff] }
  0xd6   :  { %869 = vmatpush.msra.mxu0 %v361_v44  ;;  %1405 = vmatpush.msra.mxu2 %v934_v49  ;;  %v1259_v49 = vld [vmem:[#allocation8 + $0xb18] sm:$0xff] }
  0xd7   :  { %888 = vmatpush.msra.mxu1 %v463_v45  ;;  %1423 = vmatpush.msra.mxu3 %v1024_v50  ;;  %v1069_v50 = vld [vmem:[#allocation8 + $0x528] sm:$0xff] }
  0xd8   :  { %870 = vmatpush.msra.mxu0 %v355_v47  ;;  %1406 = vmatpush.msra.mxu2 %v929_v55  ;;  %v527_v47 = vperm.slane %v4876_v32, 1 }
  0xd9   :  { %889 = vmatpush.msra.mxu1 %v457_v48  ;;  %1424 = vmatpush.msra.mxu3 %v1019_v53  ;;  %v1159_v48 = vld [vmem:[#allocation8 + $0x7f8] sm:$0xff] }
  0xda   :  { %871 = vmatpush.msra.mxu0 %v349_v51  ;;  %1407 = vmatpush.msra.mxu2 %v924_v58  ;;  %v1154_v51 = vld [vmem:[#allocation8 + $0x7d0] sm:$0xff] }
  0xdb   :  { %890 = vmatpush.msra.mxu1 %v451_v52  ;;  %1425 = vmatpush.msra.mxu3 %v1014_v61  ;;  %v1254_v58 = vld [vmem:[#allocation8 + $0xaf0] sm:$0xff]  ;;  %v980_v61 = vld [vmem:[#allocation8 + $0x260] sm:$0xff] }
  0xdc   :  { %872 = vmatpush.msra.mxu0 %v343_v56  ;;  %1408 = vmatpush.msra.mxu2 %v919_v0  ;;  %v1064_v56 = vld [vmem:[#allocation8 + $0x500] sm:$0xff]  ;;  %v1249_v0 = vld [vmem:[#allocation8 + $0xac8] sm:$0xff] }
  0xdd   :  { %891 = vmatpush.msra.mxu1 %v445_v57  ;;  %1426 = vmatpush.msra.mxu3 %v1009_v1  ;;  %v1149_v57 = vld [vmem:[#allocation8 + $0x7a8] sm:$0xff] }
  0xde   :  { %873 = vmatpush.msra.mxu0 %v337_v62  ;;  %1409 = vmatpush.msra.mxu2 %v914_v7 }
  0xdf   :  { %892 = vmatpush.msra.mxu1 %v439_v63  ;;  %874 = vmatmul.f32.vlgmr.msra.gmra.mxu0 %v4856_v59  ;;  %v994_v59 = vld [vmem:[#allocation8 + $0x2d0] sm:$0xff]  ;;  %v1144_v63 = vld [vmem:[#allocation8 + $0x780] sm:$0xff] }
  0xe0   :  { %1436 = vmatpush.msrb.mxu0 %v1139_v3  ;;  %1427 = vmatpush.msra.mxu3 %v1004_v4  ;;  %v975_v3 = vld [vmem:[#allocation8 + $0x238] sm:$0xff]  ;;  %v1060_v4 = vld [vmem:[#allocation8 + $0x4e0] sm:$0xff] }
  0xe1   :  { %893 = vmatpush.msra.mxu1 %v433_v2  ;;  %1410 = vmatpush.msra.mxu2 %v909_v13 }
  0xe2   :  { %894 = vmatmul.f32.vlgmr.msra.gmra.mxu1 %v4858_v60  ;;  %1437 = vmatpush.msrb.mxu0 %v1134_v5  ;;  %v984_v60 = vld [vmem:[#allocation8 + $0x280] sm:$0xff] }
  0xe3   :  { %1456 = vmatpush.msrb.mxu1 %v1219_v6  ;;  %1428 = vmatpush.msra.mxu3 %v999_v8  ;;  %v970_v8 = vld [vmem:[#allocation8 + $0x210] sm:$0xff] }
  0xe4   :  { %1438 = vmatpush.msrb.mxu0 %v1129_v9  ;;  %1411 = vmatpush.msra.mxu2 %v904_v14  ;;  %v1055_v9 = vld [vmem:[#allocation8 + $0x4b8] sm:$0xff] }
  0xe5   :  { %1457 = vmatpush.msrb.mxu1 %v1214_v10  ;;  %1429 = vmatpush.msra.mxu3 %v994_v59  ;;  %v1050_v59 = vld [vmem:[#allocation8 + $0x490] sm:$0xff]  ;;  %v1239_v14 = vld [vmem:[#allocation8 + $0xa78] sm:$0xff] }
  0xe6   :  { %1439 = vmatpush.msrb.mxu0 %v1124_v11  ;;  %1476 = vmatpush.msrb.mxu2 %v1299_v18  ;;  %v1244_v11 = vld [vmem:[#allocation8 + $0xaa0] sm:$0xff]  ;;  %v955_v18 = vld [vmem:[#allocation8 + $0x198] sm:$0xff] }
  0xe7   :  { %1458 = vmatpush.msrb.mxu1 %v1209_v12  ;;  %1430 = vmatpush.msra.mxu3 %v989_v15  ;;  %v965_v12 = vld [vmem:[#allocation8 + $0x1e8] sm:$0xff]  ;;  %v960_v15 = vld [vmem:[#allocation8 + $0x1c0] sm:$0xff] }
  0xe8   :  { %1440 = vmatpush.msrb.mxu0 %v1119_v16  ;;  %1477 = vmatpush.msrb.mxu2 %v1294_v21  ;;  %v1379_v16 = vld [vmem:[#allocation8 + $0xed8] sm:$0xff]  ;;  %v1229_v21 = vld [vmem:[#allocation8 + $0xa28] sm:$0xff] }
  0xe9   :  { %1459 = vmatpush.msrb.mxu1 %v1204_v17  ;;  %1431 = vmatpush.msra.mxu3 %v984_v60  ;;  %v1045_v17 = vld [vmem:[#allocation8 + $0x468] sm:$0xff]  ;;  %v1234_v60 = vld [vmem:[#allocation8 + $0xa50] sm:$0xff] }
  0xea   :  { %1441 = vmatpush.msrb.mxu0 %v1114_v19  ;;  %1478 = vmatpush.msrb.mxu2 %v1289_v24  ;;  %v1374_v19 = vld [vmem:[#allocation8 + $0xeb0] sm:$0xff]  ;;  %v1035_v24 = vld [vmem:[#allocation8 + $0x418] sm:$0xff] }
  0xeb   :  { %1460 = vmatpush.msrb.mxu1 %v1199_v20  ;;  %v1040_v20 = vld [vmem:[#allocation8 + $0x440] sm:$0xff]  ;;  %1496 = vmatpush.msrb.mxu3 %v1379_v16  ;;  %v1314_v16 = vld [vmem:[#allocation8 + $0xcd0] sm:$0xff] }
  0xec   :  { %1442 = vmatpush.msrb.mxu0 %v1109_v22  ;;  %1479 = vmatpush.msrb.mxu2 %v1284_v27  ;;  %v950_v22 = vld [vmem:[#allocation8 + $0x170] sm:$0xff]  ;;  %v1140_v27 = vld [vmem:[#allocation8 + $0x760] sm:$0xff] }
  0xed   :  { %1461 = vmatpush.msrb.mxu1 %v1194_v23  ;;  %v1369_v23 = vld [vmem:[#allocation8 + $0xe88] sm:$0xff]  ;;  %1497 = vmatpush.msrb.mxu3 %v1374_v19 }
  0xee   :  { %1443 = vmatpush.msrb.mxu0 %v1104_v25  ;;  %1480 = vmatpush.msrb.mxu2 %v1279_v30  ;;  %v1224_v25 = vld [vmem:[#allocation8 + $0xa00] sm:$0xff]  ;;  %v1309_v19 = vld [vmem:[#allocation8 + $0xca8] sm:$0xff] }
  0xef   :  { %1462 = vmatpush.msrb.mxu1 %v1189_v26  ;;  %v945_v26 = vld [vmem:[#allocation8 + $0x148] sm:$0xff]  ;;  %1498 = vmatpush.msrb.mxu3 %v1369_v23  ;;  %v940_v30 = vld [vmem:[#allocation8 + $0x120] sm:$0xff]  ;;  %v1290_v23 = vld [vmem:[#allocation8 + $0xc10] sm:$0xff] }
  0xf0   :  { %1444 = vmatpush.msrb.mxu0 %v1099_v28  ;;  %1481 = vmatpush.msrb.mxu2 %v1274_v34  ;;  %v1030_v28 = vld [vmem:[#allocation8 + $0x3f0] sm:$0xff]  ;;  %v1359_v34 = vld [vmem:[#allocation8 + $0xe38] sm:$0xff] }
  0xf1   :  { %1463 = vmatpush.msrb.mxu1 %v1184_v29  ;;  %v1364_v29 = vld [vmem:[#allocation8 + $0xe60] sm:$0xff] }
  0xf2   :  { %1445 = vmatpush.msrb.mxu0 %v1094_v31  ;;  %1482 = vmatpush.msrb.mxu2 %v1269_v37  ;;  %v1135_v31 = vld [vmem:[#allocation8 + $0x738] sm:$0xff]  ;;  %v1354_v37 = vld [vmem:[#allocation8 + $0xe10] sm:$0xff] }
  0xf3   :  { %1464 = vmatpush.msrb.mxu1 %v1179_v33  ;;  %v555_v40 = vpop.f32.mrf.mxu0  ;;  %v1025_v33 = vld [vmem:[#allocation8 + $0x3c8] sm:$0xff]  ;;  %1499 = vmatpush.msrb.mxu3 %v1364_v29 }
  0xf4   :  { %1446 = vmatpush.msrb.mxu0 %v1089_v54  ;;  %v556_v44 = vadd.f32 %v555_v40, %v526_v36  ;;  %1483 = vmatpush.msrb.mxu2 %v1264_v41  ;;  %v935_v54 = vld [vmem:[#allocation8 + $0xf8] sm:$0xff]  ;;  %v1020_v36 = vld [vmem:[#allocation8 + $0x3a0] sm:$0xff]  ;;  %v1349_v41 = vld [vmem:[#allocation8 + $0xde8] sm:$0xff] }
  0xf5   :  { %1465 = vmatpush.msrb.mxu1 %v1174_v35  ;;  %v1130_v35 = vld [vmem:[#allocation8 + $0x710] sm:$0xff]  ;;  %1500 = vmatpush.msrb.mxu3 %v1359_v34  ;;  %v1015_v40 = vld [vmem:[#allocation8 + $0x378] sm:$0xff]  ;;  %v1285_v29 = vld [vmem:[#allocation8 + $0xbe8] sm:$0xff] }
  0xf6   :  { %1447 = vmatpush.msrb.mxu0 %v1084_v38  ;;  %v575_v45 = vpop.f32.mrf.mxu1  ;;  %1484 = vmatpush.msrb.mxu2 %v1259_v49  ;;  %v930_v38 = vld [vmem:[#allocation8 + $0xd0] sm:$0xff]  ;;  %v1005_v49 = vld [vmem:[#allocation8 + $0x328] sm:$0xff] }
  0xf7   :  { %1466 = vmatpush.msrb.mxu1 %v1169_v39  ;;  %v576_v52 = vadd.f32 %v575_v45, %v556_v44  ;;  %v1125_v39 = vld [vmem:[#allocation8 + $0x6e8] sm:$0xff]  ;;  %1501 = vmatpush.msrb.mxu3 %v1354_v37  ;;  %v1010_v44 = vld [vmem:[#allocation8 + $0x350] sm:$0xff]  ;;  %v1344_v45 = vld [vmem:[#allocation8 + $0xdc0] sm:$0xff] }
  0xf8   :  { %1448 = vmatpush.msrb.mxu0 %v1079_v42  ;;  %1485 = vmatpush.msrb.mxu2 %v1254_v58  ;;  %v925_v42 = vld [vmem:[#allocation8 + $0xa8] sm:$0xff]  ;;  %v910_v58 = vld [vmem:[#allocation8 + $0x30] sm:$0xff] }
  0xf9   :  { %1467 = vmatpush.msrb.mxu1 %v1164_v43  ;;  %v1120_v43 = vld [vmem:[#allocation8 + $0x6c0] sm:$0xff]  ;;  %1502 = vmatpush.msrb.mxu3 %v1349_v41  ;;  %v1065_v37 = vld [vmem:[#allocation8 + $0x508] sm:$0xff]  ;;  %v1370_v41 = vld [vmem:[#allocation8 + $0xe90] sm:$0xff] }
  0xfa   :  { %1449 = vmatpush.msrb.mxu0 %v1074_v46  ;;  %v615_v53 = vpop.f32.mrf.mxu3  ;;  %1486 = vmatpush.msrb.mxu2 %v1249_v0  ;;  %v528_v46 = vperm.slane %v4876_v32, 2 }
  0xfb   :  { %1468 = vmatpush.msrb.mxu1 %v1159_v48  ;;  %v616_v55 = vadd.f32 %v615_v53, %v527_v47  ;;  %v920_v47 = vld [vmem:[#allocation8 + $0x80] sm:$0xff]  ;;  %v1115_v48 = vld [vmem:[#allocation8 + $0x698] sm:$0xff]  ;;  %1503 = vmatpush.msrb.mxu3 %v1344_v45 }
  0xfc   :  { %1450 = vmatpush.msrb.mxu0 %v1069_v50  ;;  %1487 = vmatpush.msrb.mxu2 %v1244_v11  ;;  %v1339_v50 = vld [vmem:[#allocation8 + $0xd98] sm:$0xff]  ;;  %v1200_v45 = vld [vmem:[#allocation8 + $0x940] sm:$0xff] }
  0xfd   :  { %1469 = vmatpush.msrb.mxu1 %v1154_v51  ;;  %v595_v62 = vpop.f32.mrf.mxu2  ;;  %v635_v2 = vpop.f32.mrf.mxu0  ;;  %v915_v51 = vld [vmem:[#allocation8 + $0x58] sm:$0xff]  ;;  %1504 = vmatpush.msrb.mxu3 %v1339_v50 }
  0xfe   :  { %v596_v1 = vadd.f32 %v595_v62, %v576_v52  ;;  %1451 = vmatpush.msrb.mxu0 %v1064_v56  ;;  %v636_v5 = vadd.f32 %v635_v2, %v616_v55  ;;  %1488 = vmatpush.msrb.mxu2 %v1239_v14  ;;  %v1110_v52 = vld [vmem:[#allocation8 + $0x670] sm:$0xff]  ;;  %v1000_v55 = vld [vmem:[#allocation8 + $0x300] sm:$0xff]  ;;  %v995_v62 = vld [vmem:[#allocation8 + $0x2d8] sm:$0xff] }
  0xff   :  { %1470 = vmatpush.msrb.mxu1 %v1149_v57  ;;  %v1334_v56 = vld [vmem:[#allocation8 + $0xd70] sm:$0xff]  ;;  %v1100_v2 = vld [vmem:[#allocation8 + $0x620] sm:$0xff]  ;;  %v1319_v11 = vld [vmem:[#allocation8 + $0xcf8] sm:$0xff] }
 0x100   :  { %1516 = vmatpush.msra.mxu0 %v980_v61  ;;  %v4880_v6 = vmax.f32 %v596_v1, 0.0  ;;  %v655_v7 = vpop.f32.mrf.mxu1  ;;  %1489 = vmatpush.msrb.mxu2 %v1234_v60  ;;  %v1105_v61 = vld [vmem:[#allocation8 + $0x648] sm:$0xff]  ;;  %v1355_v50 = vld [vmem:[#allocation8 + $0xe18] sm:$0xff] }
 0x101   :  { %1471 = vmatpush.msrb.mxu1 %v1144_v63  ;;  %v656_v10 = vadd.f32 %v655_v7, %v636_v5  ;;  %v1329_v63 = vld [vmem:[#allocation8 + $0xd48] sm:$0xff]  ;;  %1505 = vmatpush.msrb.mxu3 %v1334_v56  ;;  %v1324_v5 = vld [vmem:[#allocation8 + $0xd20] sm:$0xff] }
 0x102   :  { %1517 = vmatpush.msra.mxu0 %v975_v3  ;;  %1412 = vmatmul.f32.vlgmr.msra.gmra.mxu2 %v4880_v6  ;;  %v905_v1 = vld [vmem:[#allocation8 + $0x8] sm:$0xff] }
 0x103   :  { %1536 = vmatpush.msra.mxu1 %v1060_v4  ;;  %v4883_v13 = vmax.f32 %v656_v10, 0.0  ;;  %1490 = vmatpush.msrb.mxu2 %v1229_v21  ;;  %v990_v4 = vld [vmem:[#allocation8 + $0x2b0] sm:$0xff]  ;;  %v985_v10 = vld [vmem:[#allocation8 + $0x288] sm:$0xff] }
 0x104   :  { %1518 = vmatpush.msra.mxu0 %v970_v8  ;;  %1506 = vmatpush.msrb.mxu3 %v1329_v63  ;;  %v1095_v8 = vld [vmem:[#allocation8 + $0x5f8] sm:$0xff]  ;;  %v1245_v56 = vld [vmem:[#allocation8 + $0xaa8] sm:$0xff] }
 0x105   :  { %1537 = vmatpush.msra.mxu1 %v1055_v9  ;;  %1432 = vmatmul.f32.vlgmr.msra.gmra.mxu3 %v4883_v13  ;;  %v1175_v63 = vld [vmem:[#allocation8 + $0x878] sm:$0xff] }
 0x106   :  { %1519 = vmatpush.msra.mxu0 %v965_v12  ;;  %1491 = vmatpush.msrb.mxu2 %v1224_v25  ;;  %v529_v12 = vperm.slane %v4876_v32, 3 }
 0x107   :  { %1538 = vmatpush.msra.mxu1 %v1050_v59  ;;  %1507 = vmatpush.msrb.mxu3 %v1324_v5  ;;  %v1090_v59 = vld [vmem:[#allocation8 + $0x5d0] sm:$0xff] }
 0x108   :  { %1520 = vmatpush.msra.mxu0 %v960_v15  ;;  %1556 = vmatpush.msra.mxu2 %v1140_v27  ;;  %v1300_v15 = vld [vmem:[#allocation8 + $0xc60] sm:$0xff]  ;;  %v1330_v5 = vld [vmem:[#allocation8 + $0xd50] sm:$0xff] }
 0x109   :  { %1539 = vmatpush.msra.mxu1 %v1045_v17  ;;  %1508 = vmatpush.msrb.mxu3 %v1319_v11  ;;  %v1085_v17 = vld [vmem:[#allocation8 + $0x5a8] sm:$0xff]  ;;  %v1220_v27 = vld [vmem:[#allocation8 + $0x9e0] sm:$0xff] }
 0x10a   :  { %1521 = vmatpush.msra.mxu0 %v955_v18  ;;  %1557 = vmatpush.msra.mxu2 %v1135_v31  ;;  %v1295_v18 = vld [vmem:[#allocation8 + $0xc38] sm:$0xff]  ;;  %v1070_v31 = vld [vmem:[#allocation8 + $0x530] sm:$0xff]  ;;  %v1141_v11 = vld [vmem:[#allocation8 + $0x768] sm:$0xff] }
 0x10b   :  { %1540 = vmatpush.msra.mxu1 %v1040_v20  ;;  %1509 = vmatpush.msrb.mxu3 %v1314_v16  ;;  %v1320_v16 = vld [vmem:[#allocation8 + $0xd00] sm:$0xff] }
 0x10c   :  { %1522 = vmatpush.msra.mxu0 %v950_v22  ;;  %1558 = vmatpush.msra.mxu2 %v1130_v35  ;;  %v1080_v22 = vld [vmem:[#allocation8 + $0x580] sm:$0xff]  ;;  %v1215_v35 = vld [vmem:[#allocation8 + $0x9b8] sm:$0xff] }
 0x10d   :  { %1541 = vmatpush.msra.mxu1 %v1035_v24  ;;  %v1304_v24 = vld [vmem:[#allocation8 + $0xc80] sm:$0xff]  ;;  %1510 = vmatpush.msrb.mxu3 %v1309_v19  ;;  %v1315_v19 = vld [vmem:[#allocation8 + $0xcd8] sm:$0xff] }
 0x10e   :  { %1523 = vmatpush.msra.mxu0 %v945_v26  ;;  %1559 = vmatpush.msra.mxu2 %v1125_v39  ;;  %v1075_v26 = vld [vmem:[#allocation8 + $0x558] sm:$0xff]  ;;  %v1210_v39 = vld [vmem:[#allocation8 + $0x990] sm:$0xff] }
 0x10f   :  { %1542 = vmatpush.msra.mxu1 %v1030_v28  ;;  %1511 = vmatpush.msrb.mxu3 %v1304_v24  ;;  %v1310_v24 = vld [vmem:[#allocation8 + $0xcb0] sm:$0xff] }
 0x110   :  { %1524 = vmatpush.msra.mxu0 %v940_v30  ;;  %1560 = vmatpush.msra.mxu2 %v1120_v43  ;;  %v1265_v43 = vld [vmem:[#allocation8 + $0xb48] sm:$0xff] }
 0x111   :  { %1543 = vmatpush.msra.mxu1 %v1025_v33  ;;  %v1280_v33 = vld [vmem:[#allocation8 + $0xbc0] sm:$0xff]  ;;  %1576 = vmatpush.msra.mxu3 %v1220_v27  ;;  %v981_v27 = vld [vmem:[#allocation8 + $0x268] sm:$0xff] }
 0x112   :  { %1525 = vmatpush.msra.mxu0 %v935_v54  ;;  %1561 = vmatpush.msra.mxu2 %v1115_v48  ;;  %v1380_v54 = vld [vmem:[#allocation8 + $0xee0] sm:$0xff]  ;;  %v1195_v48 = vld [vmem:[#allocation8 + $0x918] sm:$0xff] }
 0x113   :  { %1544 = vmatpush.msra.mxu1 %v1020_v36  ;;  %v1275_v36 = vld [vmem:[#allocation8 + $0xb98] sm:$0xff]  ;;  %1577 = vmatpush.msra.mxu3 %v1215_v35  ;;  %v1216_v35 = vld [vmem:[#allocation8 + $0x9c0] sm:$0xff] }
 0x114   :  { %1526 = vmatpush.msra.mxu0 %v930_v38  ;;  %1562 = vmatpush.msra.mxu2 %v1110_v52  ;;  %v1375_v38 = vld [vmem:[#allocation8 + $0xeb8] sm:$0xff]  ;;  %v1250_v52 = vld [vmem:[#allocation8 + $0xad0] sm:$0xff] }
 0x115   :  { %1545 = vmatpush.msra.mxu1 %v1015_v40  ;;  %v1270_v40 = vld [vmem:[#allocation8 + $0xb70] sm:$0xff]  ;;  %1578 = vmatpush.msra.mxu3 %v1210_v39 }
 0x116   :  { %1527 = vmatpush.msra.mxu0 %v925_v42  ;;  %v675_v53 = vpop.f32.mrf.mxu2  ;;  %1563 = vmatpush.msra.mxu2 %v1105_v61  ;;  %v1205_v42 = vld [vmem:[#allocation8 + $0x968] sm:$0xff]  ;;  %v1240_v61 = vld [vmem:[#allocation8 + $0xa80] sm:$0xff]  ;;  %v966_v39 = vld [vmem:[#allocation8 + $0x1f0] sm:$0xff] }
 0x117   :  { %1546 = vmatpush.msra.mxu1 %v1010_v44  ;;  %v676_v57 = vadd.f32 %v675_v53, %v528_v46  ;;  %v1365_v44 = vld [vmem:[#allocation8 + $0xe68] sm:$0xff]  ;;  %v1260_v46 = vld [vmem:[#allocation8 + $0xb20] sm:$0xff]  ;;  %1579 = vmatpush.msra.mxu3 %v1205_v42  ;;  %v1350_v53 = vld [vmem:[#allocation8 + $0xdf0] sm:$0xff] }
 0x118   :  { %1528 = vmatpush.msra.mxu0 %v920_v47  ;;  %1564 = vmatpush.msra.mxu2 %v1100_v2  ;;  %v1360_v47 = vld [vmem:[#allocation8 + $0xe40] sm:$0xff]  ;;  %v1170_v2 = vld [vmem:[#allocation8 + $0x850] sm:$0xff] }
 0x119   :  { %1547 = vmatpush.msra.mxu1 %v1005_v49  ;;  %v695_v0 = vpop.f32.mrf.mxu3  ;;  %v1255_v49 = vld [vmem:[#allocation8 + $0xaf8] sm:$0xff]  ;;  %1580 = vmatpush.msra.mxu3 %v1200_v45  ;;  %v1206_v42 = vld [vmem:[#allocation8 + $0x970] sm:$0xff]  ;;  %v1201_v45 = vld [vmem:[#allocation8 + $0x948] sm:$0xff] }
 0x11a   :  { %1529 = vmatpush.msra.mxu0 %v915_v51  ;;  %v696_v3 = vadd.f32 %v695_v0, %v676_v57  ;;  %1565 = vmatpush.msra.mxu2 %v1095_v8  ;;  %v1190_v51 = vld [vmem:[#allocation8 + $0x8f0] sm:$0xff]  ;;  %v1345_v57 = vld [vmem:[#allocation8 + $0xdc8] sm:$0xff]  ;;  %v1235_v0 = vld [vmem:[#allocation8 + $0xa58] sm:$0xff] }
 0x11b   :  { %1548 = vmatpush.msra.mxu1 %v1000_v55  ;;  %v715_v7 = vpop.f32.mrf.mxu0  ;;  %1581 = vmatpush.msra.mxu3 %v1195_v48  ;;  %v1185_v55 = vld [vmem:[#allocation8 + $0x8c8] sm:$0xff]  ;;  %v1196_v48 = vld [vmem:[#allocation8 + $0x920] sm:$0xff] }
 0x11c   :  { %1530 = vmatpush.msra.mxu0 %v910_v58  ;;  %v716_v9 = vadd.f32 %v715_v7, %v696_v3  ;;  %1566 = vmatpush.msra.mxu2 %v1090_v59  ;;  %v1180_v58 = vld [vmem:[#allocation8 + $0x8a0] sm:$0xff]  ;;  %v530_v3 = vperm.slane %v4876_v32, 4  ;;  %v1165_v7 = vld [vmem:[#allocation8 + $0x828] sm:$0xff] }
 0x11d   :  { %1549 = vmatpush.msra.mxu1 %v995_v62  ;;  %1582 = vmatpush.msra.mxu3 %v1190_v51  ;;  %v1340_v62 = vld [vmem:[#allocation8 + $0xda0] sm:$0xff]  ;;  %v1225_v8 = vld [vmem:[#allocation8 + $0xa08] sm:$0xff]  ;;  %v1191_v51 = vld [vmem:[#allocation8 + $0x8f8] sm:$0xff] }
 0x11e   :  { %1531 = vmatpush.msra.mxu0 %v905_v1  ;;  %v4888_v14 = vmax.f32 %v716_v9, 0.0  ;;  %1567 = vmatpush.msra.mxu2 %v1085_v17  ;;  %v1335_v1 = vld [vmem:[#allocation8 + $0xd78] sm:$0xff]  ;;  %v1160_v59 = vld [vmem:[#allocation8 + $0x800] sm:$0xff] }
 0x11f   :  { %1550 = vmatpush.msra.mxu1 %v990_v4  ;;  %1583 = vmatpush.msra.mxu3 %v1185_v55  ;;  %v1230_v4 = vld [vmem:[#allocation8 + $0xa30] sm:$0xff]  ;;  %v1136_v17 = vld [vmem:[#allocation8 + $0x740] sm:$0xff]  ;;  %v941_v55 = vld [vmem:[#allocation8 + $0x128] sm:$0xff] }
 0x120   :  { %v735_v60 = vpop.f32.mrf.mxu1  ;;  %1452 = vmatmul.f32.vlgmr.msrb.gmra.mxu0 %v4888_v14  ;;  %1568 = vmatpush.msra.mxu2 %v1080_v22  ;;  %v1150_v22 = vld [vmem:[#allocation8 + $0x7b0] sm:$0xff] }
 0x121   :  { %1551 = vmatpush.msra.mxu1 %v985_v10  ;;  %v736_v20 = vadd.f32 %v735_v60, %v529_v12  ;;  %1596 = vmatpush.msrb.mxu0 %v1300_v15  ;;  %v1325_v10 = vld [vmem:[#allocation8 + $0xd28] sm:$0xff] }
 0x122   :  { %v755_v21 = vpop.f32.mrf.mxu2  ;;  %1569 = vmatpush.msra.mxu2 %v1075_v26  ;;  %1584 = vmatpush.msra.mxu3 %v1180_v58  ;;  %v1081_v58 = vld [vmem:[#allocation8 + $0x588] sm:$0xff] }
 0x123   :  { %v756_v25 = vadd.f32 %v755_v21, %v736_v20  ;;  %1597 = vmatpush.msrb.mxu0 %v1295_v18  ;;  %v1155_v18 = vld [vmem:[#allocation8 + $0x7d8] sm:$0xff] }
 0x124   :  { %1570 = vmatpush.msra.mxu2 %v1070_v31  ;;  %1585 = vmatpush.msra.mxu3 %v1175_v63  ;;  %v1131_v20 = vld [vmem:[#allocation8 + $0x718] sm:$0xff]  ;;  %v976_v31 = vld [vmem:[#allocation8 + $0x240] sm:$0xff] }
 0x125   :  { %v775_v28 = vpop.f32.mrf.mxu3  ;;  %1598 = vmatpush.msrb.mxu0 %v1290_v23 }
 0x126   :  { %v776_v30 = vadd.f32 %v775_v28, %v756_v25  ;;  %1571 = vmatpush.msra.mxu2 %v1065_v37  ;;  %1586 = vmatpush.msra.mxu3 %v1170_v2  ;;  %v1126_v25 = vld [vmem:[#allocation8 + $0x6f0] sm:$0xff]  ;;  %v1305_v28 = vld [vmem:[#allocation8 + $0xc88] sm:$0xff]  ;;  %v1111_v37 = vld [vmem:[#allocation8 + $0x678] sm:$0xff] }
 0x127   :  { %1599 = vmatpush.msrb.mxu0 %v1285_v29  ;;  %v1121_v29 = vld [vmem:[#allocation8 + $0x6c8] sm:$0xff]  ;;  %v1176_v2 = vld [vmem:[#allocation8 + $0x880] sm:$0xff] }
 0x128   :  { %v4891_v34 = vmax.f32 %v776_v30, 0.0  ;;  %1532 = vmatmul.f32.vlgmr.msra.gmra.mxu0 %v4880_v6  ;;  %1587 = vmatpush.msra.mxu3 %v1165_v7  ;;  %v1221_v30 = vld [vmem:[#allocation8 + $0x9e8] sm:$0xff] }
 0x129   :  { %1600 = vmatpush.msrb.mxu0 %v1280_v33  ;;  %v1145_v33 = vld [vmem:[#allocation8 + $0x788] sm:$0xff] }
 0x12a   :  { %1472 = vmatmul.f32.vlgmr.msrb.gmra.mxu1 %v4891_v34  ;;  %1588 = vmatpush.msra.mxu3 %v1160_v59  ;;  %v982_v59 = vld [vmem:[#allocation8 + $0x270] sm:$0xff] }
 0x12b   :  { %1616 = vmatpush.msrb.mxu1 %v1380_v54  ;;  %1601 = vmatpush.msrb.mxu0 %v1275_v36  ;;  %v1116_v54 = vld [vmem:[#allocation8 + $0x6a0] sm:$0xff]  ;;  %v971_v36 = vld [vmem:[#allocation8 + $0x218] sm:$0xff] }
 0x12c   :  { %1589 = vmatpush.msra.mxu3 %v1155_v18  ;;  %v977_v18 = vld [vmem:[#allocation8 + $0x248] sm:$0xff] }
 0x12d   :  { %1617 = vmatpush.msrb.mxu1 %v1375_v38  ;;  %1602 = vmatpush.msrb.mxu0 %v1270_v40  ;;  %v1211_v38 = vld [vmem:[#allocation8 + $0x998] sm:$0xff]  ;;  %v1106_v40 = vld [vmem:[#allocation8 + $0x650] sm:$0xff] }
 0x12e   :  { %1590 = vmatpush.msra.mxu3 %v1150_v22  ;;  %v972_v22 = vld [vmem:[#allocation8 + $0x220] sm:$0xff] }
 0x12f   :  { %1618 = vmatpush.msrb.mxu1 %v1370_v41  ;;  %1603 = vmatpush.msrb.mxu0 %v1265_v43  ;;  %v961_v41 = vld [vmem:[#allocation8 + $0x1c8] sm:$0xff] }
 0x130   :  { %1591 = vmatpush.msra.mxu3 %v1145_v33  ;;  %v1101_v43 = vld [vmem:[#allocation8 + $0x628] sm:$0xff]  ;;  %v962_v33 = vld [vmem:[#allocation8 + $0x1d0] sm:$0xff] }
 0x131   :  { %1619 = vmatpush.msrb.mxu1 %v1365_v44  ;;  %1604 = vmatpush.msrb.mxu0 %v1260_v46  ;;  %v956_v44 = vld [vmem:[#allocation8 + $0x1a0] sm:$0xff] }
 0x132   :  { %1552 = vmatmul.f32.vlgmr.msra.gmra.mxu1 %v4883_v13  ;;  %v1096_v46 = vld [vmem:[#allocation8 + $0x600] sm:$0xff] }
 0x133   :  { %1620 = vmatpush.msrb.mxu1 %v1360_v47  ;;  %1605 = vmatpush.msrb.mxu0 %v1255_v49  ;;  %v951_v47 = vld [vmem:[#allocation8 + $0x178] sm:$0xff] }
 0x134   :  { %v1091_v49 = vld [vmem:[#allocation8 + $0x5d8] sm:$0xff] }
 0x135   :  { %1621 = vmatpush.msrb.mxu1 %v1355_v50  ;;  %1606 = vmatpush.msrb.mxu0 %v1250_v52  ;;  %v946_v50 = vld [vmem:[#allocation8 + $0x150] sm:$0xff] }
 0x136   :  { %v1086_v52 = vld [vmem:[#allocation8 + $0x5b0] sm:$0xff] }
 0x137   :  { %1622 = vmatpush.msrb.mxu1 %v1350_v53  ;;  %1607 = vmatpush.msrb.mxu0 %v1245_v56  ;;  %v531_v53 = vperm.slane %v4876_v32, 5  ;;  %v1186_v56 = vld [vmem:[#allocation8 + $0x8d0] sm:$0xff]  ;;  %v1071_v32 = vld [vmem:[#allocation8 + $0x538] sm:$0xff] }
 0x139   :  { %1623 = vmatpush.msrb.mxu1 %v1345_v57  ;;  %1608 = vmatpush.msrb.mxu0 %v1240_v61  ;;  %v936_v61 = vld [vmem:[#allocation8 + $0x100] sm:$0xff] }
 0x13b   :  { %1624 = vmatpush.msrb.mxu1 %v1340_v62  ;;  %1609 = vmatpush.msrb.mxu0 %v1235_v0  ;;  %v1181_v62 = vld [vmem:[#allocation8 + $0x8a8] sm:$0xff]  ;;  %v1076_v0 = vld [vmem:[#allocation8 + $0x560] sm:$0xff] }
 0x13c   :  { %v795_v9 = vpop.f32.mrf.mxu0 }
 0x13d   :  { %1625 = vmatpush.msrb.mxu1 %v1335_v1  ;;  %1610 = vmatpush.msrb.mxu0 %v1230_v4  ;;  %v796_v12 = vadd.f32 %v795_v9, %v530_v3  ;;  %v931_v1 = vld [vmem:[#allocation8 + $0xd8] sm:$0xff]  ;;  %v926_v4 = vld [vmem:[#allocation8 + $0xb0] sm:$0xff] }
 0x13f   :  { %1626 = vmatpush.msrb.mxu1 %v1330_v5  ;;  %v815_v15 = vpop.f32.mrf.mxu1  ;;  %1611 = vmatpush.msrb.mxu0 %v1225_v8  ;;  %v1171_v5 = vld [vmem:[#allocation8 + $0x858] sm:$0xff]  ;;  %v1066_v8 = vld [vmem:[#allocation8 + $0x510] sm:$0xff] }
 0x140   :  { %v816_v60 = vadd.f32 %v815_v15, %v796_v12  ;;  %v916_v15 = vld [vmem:[#allocation8 + $0x60] sm:$0xff] }
 0x141   :  { %1627 = vmatpush.msrb.mxu1 %v1325_v10  ;;  %1676 = vmatpush.msra.mxu0 %v1141_v11  ;;  %v921_v10 = vld [vmem:[#allocation8 + $0x88] sm:$0xff]  ;;  %v1166_v11 = vld [vmem:[#allocation8 + $0x830] sm:$0xff] }
 0x143   :  { %v835_v21 = vpop.f32.mrf.mxu2  ;;  %1628 = vmatpush.msrb.mxu1 %v1320_v16  ;;  %1677 = vmatpush.msra.mxu0 %v1136_v17  ;;  %v1161_v17 = vld [vmem:[#allocation8 + $0x808] sm:$0xff] }
 0x144   :  { %v836_v23 = vadd.f32 %v835_v21, %v816_v60  ;;  %v1061_v60 = vld [vmem:[#allocation8 + $0x4e8] sm:$0xff]  ;;  %v1056_v21 = vld [vmem:[#allocation8 + $0x4c0] sm:$0xff] }
 0x145   :  { %1629 = vmatpush.msrb.mxu1 %v1315_v19  ;;  %1678 = vmatpush.msra.mxu0 %v1131_v20  ;;  %v911_v19 = vld [vmem:[#allocation8 + $0x38] sm:$0xff]  ;;  %v1156_v20 = vld [vmem:[#allocation8 + $0x7e0] sm:$0xff] }
 0x146   :  { %v4897_v26 = vmax.f32 %v836_v23, 0.0  ;;  %v906_v23 = vld [vmem:[#allocation8 + $0x10] sm:$0xff] }
 0x147   :  { %1630 = vmatpush.msrb.mxu1 %v1310_v24  ;;  %1679 = vmatpush.msra.mxu0 %v1126_v25  ;;  %v1151_v24 = vld [vmem:[#allocation8 + $0x7b8] sm:$0xff] }
 0x148   :  { %1492 = vmatmul.f32.vlgmr.msrb.gmra.mxu2 %v4897_v26  ;;  %1612 = vmatmul.f32.vlgmr.msrb.gmra.mxu0 %v4897_v26  ;;  %v1051_v25 = vld [vmem:[#allocation8 + $0x498] sm:$0xff] }
 0x149   :  { %1636 = vmatpush.msrb.mxu2 %v981_v27  ;;  %1631 = vmatpush.msrb.mxu1 %v1305_v28  ;;  %v1301_v27 = vld [vmem:[#allocation8 + $0xc68] sm:$0xff]  ;;  %v967_v28 = vld [vmem:[#allocation8 + $0x1f8] sm:$0xff] }
 0x14a   :  { %1680 = vmatpush.msra.mxu0 %v1121_v29  ;;  %v855_v57 = vpop.f32.mrf.mxu3  ;;  %v1146_v29 = vld [vmem:[#allocation8 + $0x790] sm:$0xff] }
 0x14b   :  { %1696 = vmatpush.msra.mxu1 %v1221_v30  ;;  %1637 = vmatpush.msrb.mxu2 %v976_v31  ;;  %v856_v63 = vadd.f32 %v855_v57, %v531_v53  ;;  %v1046_v30 = vld [vmem:[#allocation8 + $0x470] sm:$0xff]  ;;  %v1296_v31 = vld [vmem:[#allocation8 + $0xc40] sm:$0xff]  ;;  %v937_v53 = vld [vmem:[#allocation8 + $0x108] sm:$0xff] }
 0x14c   :  { %1681 = vmatpush.msra.mxu0 %v1116_v54  ;;  %v1062_v54 = vld [vmem:[#allocation8 + $0x4f0] sm:$0xff] }
 0x14d   :  { %1697 = vmatpush.msra.mxu1 %v1216_v35  ;;  %1638 = vmatpush.msrb.mxu2 %v971_v36  ;;  %v1041_v35 = vld [vmem:[#allocation8 + $0x448] sm:$0xff]  ;;  %v1291_v36 = vld [vmem:[#allocation8 + $0xc18] sm:$0xff]  ;;  %v1266_v57 = vld [vmem:[#allocation8 + $0xb50] sm:$0xff] }
 0x14e   :  { %1682 = vmatpush.msra.mxu0 %v1111_v37  ;;  %v957_v37 = vld [vmem:[#allocation8 + $0x1a8] sm:$0xff] }
 0x14f   :  { %1698 = vmatpush.msra.mxu1 %v1211_v38  ;;  %1639 = vmatpush.msrb.mxu2 %v966_v39  ;;  %v1057_v38 = vld [vmem:[#allocation8 + $0x4c8] sm:$0xff]  ;;  %v1036_v39 = vld [vmem:[#allocation8 + $0x420] sm:$0xff] }
 0x150   :  { %1572 = vmatmul.f32.vlgmr.msra.gmra.mxu2 %v4888_v14  ;;  %1683 = vmatpush.msra.mxu0 %v1106_v40  ;;  %v1286_v40 = vld [vmem:[#allocation8 + $0xbf0] sm:$0xff] }
 0x151   :  { %1640 = vmatpush.msrb.mxu2 %v961_v41  ;;  %1699 = vmatpush.msra.mxu1 %v1206_v42  ;;  %v952_v41 = vld [vmem:[#allocation8 + $0x180] sm:$0xff] }
 0x152   :  { %1684 = vmatpush.msra.mxu0 %v1101_v43  ;;  %v1052_v42 = vld [vmem:[#allocation8 + $0x4a0] sm:$0xff]  ;;  %v1031_v43 = vld [vmem:[#allocation8 + $0x3f8] sm:$0xff] }
 0x153   :  { %1641 = vmatpush.msrb.mxu2 %v956_v44  ;;  %1700 = vmatpush.msra.mxu1 %v1201_v45  ;;  %v1281_v44 = vld [vmem:[#allocation8 + $0xbc8] sm:$0xff]  ;;  %v947_v45 = vld [vmem:[#allocation8 + $0x158] sm:$0xff] }
 0x154   :  { %1685 = vmatpush.msra.mxu0 %v1096_v46  ;;  %v1047_v46 = vld [vmem:[#allocation8 + $0x478] sm:$0xff] }
 0x155   :  { %1642 = vmatpush.msrb.mxu2 %v951_v47  ;;  %1701 = vmatpush.msra.mxu1 %v1196_v48  ;;  %v1026_v47 = vld [vmem:[#allocation8 + $0x3d0] sm:$0xff]  ;;  %v1276_v48 = vld [vmem:[#allocation8 + $0xba0] sm:$0xff] }
 0x156   :  { %1686 = vmatpush.msra.mxu0 %v1091_v49  ;;  %v942_v49 = vld [vmem:[#allocation8 + $0x130] sm:$0xff] }
 0x157   :  { %1643 = vmatpush.msrb.mxu2 %v946_v50  ;;  %1702 = vmatpush.msra.mxu1 %v1191_v51  ;;  %v1042_v50 = vld [vmem:[#allocation8 + $0x450] sm:$0xff]  ;;  %v1021_v51 = vld [vmem:[#allocation8 + $0x3a8] sm:$0xff] }
 0x158   :  { %1687 = vmatpush.msra.mxu0 %v1086_v52  ;;  %v1271_v52 = vld [vmem:[#allocation8 + $0xb78] sm:$0xff] }
 0x159   :  { %1644 = vmatpush.msrb.mxu2 %v941_v55  ;;  %1703 = vmatpush.msra.mxu1 %v1186_v56  ;;  %v1037_v55 = vld [vmem:[#allocation8 + $0x428] sm:$0xff]  ;;  %v1016_v56 = vld [vmem:[#allocation8 + $0x380] sm:$0xff] }
 0x15a   :  { %1688 = vmatpush.msra.mxu0 %v1081_v58  ;;  %v932_v58 = vld [vmem:[#allocation8 + $0xe0] sm:$0xff] }
 0x15b   :  { %1645 = vmatpush.msrb.mxu2 %v936_v61  ;;  %1704 = vmatpush.msra.mxu1 %v1181_v62  ;;  %v1032_v61 = vld [vmem:[#allocation8 + $0x400] sm:$0xff]  ;;  %v1011_v62 = vld [vmem:[#allocation8 + $0x358] sm:$0xff] }
 0x15c   :  { %v875_v3 = vpop.f32.mrf.mxu0  ;;  %1689 = vmatpush.msra.mxu0 %v1076_v0  ;;  %v927_v0 = vld [vmem:[#allocation8 + $0xb8] sm:$0xff] }
 0x15d   :  { %v876_v7 = vadd.f32 %v875_v3, %v856_v63  ;;  %1646 = vmatpush.msrb.mxu2 %v931_v1  ;;  %1705 = vmatpush.msra.mxu1 %v1176_v2  ;;  %v1261_v63 = vld [vmem:[#allocation8 + $0xb28] sm:$0xff]  ;;  %v1027_v1 = vld [vmem:[#allocation8 + $0x3d8] sm:$0xff]  ;;  %v1006_v2 = vld [vmem:[#allocation8 + $0x330] sm:$0xff] }
 0x15e   :  { %1690 = vmatpush.msra.mxu0 %v1071_v32  ;;  %v1256_v32 = vld [vmem:[#allocation8 + $0xb00] sm:$0xff]  ;;  %v922_v3 = vld [vmem:[#allocation8 + $0x90] sm:$0xff] }
 0x15f   :  { %v895_v9 = vpop.f32.mrf.mxu1  ;;  %1647 = vmatpush.msrb.mxu2 %v926_v4  ;;  %1706 = vmatpush.msra.mxu1 %v1171_v5  ;;  %v1022_v4 = vld [vmem:[#allocation8 + $0x3b0] sm:$0xff]  ;;  %v1001_v5 = vld [vmem:[#allocation8 + $0x308] sm:$0xff] }
 0x160   :  { %v896_v12 = vadd.f32 %v895_v9, %v876_v7  ;;  %1691 = vmatpush.msra.mxu0 %v1066_v8  ;;  %v1251_v7 = vld [vmem:[#allocation8 + $0xad8] sm:$0xff]  ;;  %v917_v8 = vld [vmem:[#allocation8 + $0x68] sm:$0xff] }
 0x161   :  { %1648 = vmatpush.msrb.mxu2 %v921_v10  ;;  %1707 = vmatpush.msra.mxu1 %v1166_v11  ;;  %v1017_v9 = vld [vmem:[#allocation8 + $0x388] sm:$0xff]  ;;  %v996_v10 = vld [vmem:[#allocation8 + $0x2e0] sm:$0xff]  ;;  %v1246_v11 = vld [vmem:[#allocation8 + $0xab0] sm:$0xff] }
 0x162   :  { %v4903_v16 = vmax.f32 %v896_v12, 0.0  ;;  %1692 = vmatmul.f32.vlgmr.msra.gmra.mxu0 %v4888_v14  ;;  %v912_v12 = vld [vmem:[#allocation8 + $0x40] sm:$0xff] }
 0x163   :  { %1756 = vmatpush.msrb.mxu0 %v982_v59  ;;  %1649 = vmatpush.msrb.mxu2 %v916_v15  ;;  %v1012_v59 = vld [vmem:[#allocation8 + $0x360] sm:$0xff]  ;;  %v991_v15 = vld [vmem:[#allocation8 + $0x2b8] sm:$0xff] }
 0x164   :  { %1708 = vmatpush.msra.mxu1 %v1161_v17  ;;  %1512 = vmatmul.f32.vlgmr.msrb.gmra.mxu3 %v4903_v16  ;;  %v1241_v17 = vld [vmem:[#allocation8 + $0xa88] sm:$0xff] }
 0x165   :  { %1632 = vmatmul.f32.vlgmr.msrb.gmra.mxu1 %v4903_v16  ;;  %1656 = vmatpush.msrb.mxu3 %v1061_v60  ;;  %v907_v60 = vld [vmem:[#allocation8 + $0x18] sm:$0xff] }
 0x166   :  { %1757 = vmatpush.msrb.mxu0 %v977_v18  ;;  %1650 = vmatpush.msrb.mxu2 %v911_v19  ;;  %v1007_v18 = vld [vmem:[#allocation8 + $0x338] sm:$0xff]  ;;  %v986_v19 = vld [vmem:[#allocation8 + $0x290] sm:$0xff] }
 0x167   :  { %1709 = vmatpush.msra.mxu1 %v1156_v20  ;;  %1657 = vmatpush.msrb.mxu3 %v1056_v21  ;;  %v1302_v20 = vld [vmem:[#allocation8 + $0xc70] sm:$0xff]  ;;  %v1236_v21 = vld [vmem:[#allocation8 + $0xa60] sm:$0xff] }
 0x168   :  { %1758 = vmatpush.msrb.mxu0 %v972_v22  ;;  %1651 = vmatpush.msrb.mxu2 %v906_v23  ;;  %v1002_v22 = vld [vmem:[#allocation8 + $0x310] sm:$0xff]  ;;  %v1381_v23 = vld [vmem:[#allocation8 + $0xee8] sm:$0xff] }
 0x169   :  { %1710 = vmatpush.msra.mxu1 %v1151_v24  ;;  %1652 = vmatmul.f32.vlgmr.msrb.gmra.mxu2 %v4880_v6  ;;  %v1297_v24 = vld [vmem:[#allocation8 + $0xc48] sm:$0xff] }
 0x16a   :  { %1658 = vmatpush.msrb.mxu3 %v1051_v25  ;;  %1716 = vmatpush.msra.mxu2 %v1301_v27  ;;  %v1231_v25 = vld [vmem:[#allocation8 + $0xa38] sm:$0xff]  ;;  %v997_v27 = vld [vmem:[#allocation8 + $0x2e8] sm:$0xff] }
 0x16b   :  { %1759 = vmatpush.msrb.mxu0 %v967_v28  ;;  %1711 = vmatpush.msra.mxu1 %v1146_v29  ;;  %v1376_v28 = vld [vmem:[#allocation8 + $0xec0] sm:$0xff] }
 0x16c   :  { %1659 = vmatpush.msrb.mxu3 %v1046_v30  ;;  %1717 = vmatpush.msra.mxu2 %v1296_v31  ;;  %v1292_v29 = vld [vmem:[#allocation8 + $0xc20] sm:$0xff]  ;;  %v1226_v30 = vld [vmem:[#allocation8 + $0xa10] sm:$0xff] }
 0x16d   :  { %1760 = vmatpush.msrb.mxu0 %v962_v33  ;;  %1776 = vmatpush.msrb.mxu1 %v1062_v54  ;;  %v992_v31 = vld [vmem:[#allocation8 + $0x2c0] sm:$0xff]  ;;  %v1371_v33 = vld [vmem:[#allocation8 + $0xe98] sm:$0xff]  ;;  %v1142_v54 = vld [vmem:[#allocation8 + $0x770] sm:$0xff] }
 0x16e   :  { %1592 = vmatmul.f32.vlgmr.msra.gmra.mxu3 %v4891_v34  ;;  %1712 = vmatmul.f32.vlgmr.msra.gmra.mxu1 %v4891_v34 }
 0x16f   :  { %1660 = vmatpush.msrb.mxu3 %v1041_v35  ;;  %1718 = vmatpush.msra.mxu2 %v1291_v36  ;;  %v1287_v35 = vld [vmem:[#allocation8 + $0xbf8] sm:$0xff] }
 0x170   :  { %1761 = vmatpush.msrb.mxu0 %v957_v37  ;;  %1777 = vmatpush.msrb.mxu1 %v1057_v38  ;;  %v987_v36 = vld [vmem:[#allocation8 + $0x298] sm:$0xff]  ;;  %v1366_v37 = vld [vmem:[#allocation8 + $0xe70] sm:$0xff]  ;;  %v1137_v38 = vld [vmem:[#allocation8 + $0x748] sm:$0xff] }
 0x171   :  { %1661 = vmatpush.msrb.mxu3 %v1036_v39  ;;  %1719 = vmatpush.msra.mxu2 %v1286_v40  ;;  %v1282_v39 = vld [vmem:[#allocation8 + $0xbd0] sm:$0xff] }
 0x172   :  { %1762 = vmatpush.msrb.mxu0 %v952_v41  ;;  %1778 = vmatpush.msrb.mxu1 %v1052_v42  ;;  %v1382_v40 = vld [vmem:[#allocation8 + $0xef0] sm:$0xff]  ;;  %v1361_v41 = vld [vmem:[#allocation8 + $0xe48] sm:$0xff]  ;;  %v1132_v42 = vld [vmem:[#allocation8 + $0x720] sm:$0xff] }
 0x173   :  { %1662 = vmatpush.msrb.mxu3 %v1031_v43  ;;  %1720 = vmatpush.msra.mxu2 %v1281_v44  ;;  %v1277_v43 = vld [vmem:[#allocation8 + $0xba8] sm:$0xff] }
 0x174   :  { %1763 = vmatpush.msrb.mxu0 %v947_v45  ;;  %1779 = vmatpush.msrb.mxu1 %v1047_v46  ;;  %v1377_v44 = vld [vmem:[#allocation8 + $0xec8] sm:$0xff]  ;;  %v1356_v45 = vld [vmem:[#allocation8 + $0xe20] sm:$0xff]  ;;  %v1127_v46 = vld [vmem:[#allocation8 + $0x6f8] sm:$0xff] }
 0x175   :  { %1663 = vmatpush.msrb.mxu3 %v1026_v47  ;;  %1721 = vmatpush.msra.mxu2 %v1276_v48  ;;  %v1272_v47 = vld [vmem:[#allocation8 + $0xb80] sm:$0xff] }
 0x176   :  { %1764 = vmatpush.msrb.mxu0 %v942_v49  ;;  %1780 = vmatpush.msrb.mxu1 %v1042_v50  ;;  %v1372_v48 = vld [vmem:[#allocation8 + $0xea0] sm:$0xff]  ;;  %v1351_v49 = vld [vmem:[#allocation8 + $0xdf8] sm:$0xff]  ;;  %v1122_v50 = vld [vmem:[#allocation8 + $0x6d0] sm:$0xff] }
 0x177   :  { %1664 = vmatpush.msrb.mxu3 %v1021_v51  ;;  %1722 = vmatpush.msra.mxu2 %v1271_v52  ;;  %v1267_v51 = vld [vmem:[#allocation8 + $0xb58] sm:$0xff] }
 0x178   :  { %1765 = vmatpush.msrb.mxu0 %v937_v53  ;;  %1781 = vmatpush.msrb.mxu1 %v1037_v55  ;;  %v1367_v52 = vld [vmem:[#allocation8 + $0xe78] sm:$0xff]  ;;  %v1346_v53 = vld [vmem:[#allocation8 + $0xdd0] sm:$0xff]  ;;  %v1117_v55 = vld [vmem:[#allocation8 + $0x6a8] sm:$0xff] }
 0x179   :  { %1665 = vmatpush.msrb.mxu3 %v1016_v56  ;;  %1723 = vmatpush.msra.mxu2 %v1266_v57  ;;  %v1262_v56 = vld [vmem:[#allocation8 + $0xb30] sm:$0xff] }
 0x17a   :  { %1766 = vmatpush.msrb.mxu0 %v932_v58  ;;  %1782 = vmatpush.msrb.mxu1 %v1032_v61  ;;  %v1362_v57 = vld [vmem:[#allocation8 + $0xe50] sm:$0xff]  ;;  %v1341_v58 = vld [vmem:[#allocation8 + $0xda8] sm:$0xff]  ;;  %v1112_v61 = vld [vmem:[#allocation8 + $0x680] sm:$0xff] }
 0x17b   :  { %1666 = vmatpush.msrb.mxu3 %v1011_v62  ;;  %1724 = vmatpush.msra.mxu2 %v1261_v63  ;;  %v1257_v62 = vld [vmem:[#allocation8 + $0xb08] sm:$0xff] }
 0x17c   :  { %1767 = vmatpush.msrb.mxu0 %v927_v0  ;;  %1783 = vmatpush.msrb.mxu1 %v1027_v1  ;;  %v1357_v63 = vld [vmem:[#allocation8 + $0xe28] sm:$0xff]  ;;  %v1336_v0 = vld [vmem:[#allocation8 + $0xd80] sm:$0xff]  ;;  %v1107_v1 = vld [vmem:[#allocation8 + $0x658] sm:$0xff] }
 0x17d   :  { %1667 = vmatpush.msrb.mxu3 %v1006_v2  ;;  %1725 = vmatpush.msra.mxu2 %v1256_v32  ;;  %v1252_v2 = vld [vmem:[#allocation8 + $0xae0] sm:$0xff] }
 0x17e   :  { %1768 = vmatpush.msrb.mxu0 %v922_v3  ;;  %1784 = vmatpush.msrb.mxu1 %v1022_v4  ;;  %v1352_v32 = vld [vmem:[#allocation8 + $0xe00] sm:$0xff]  ;;  %v1331_v3 = vld [vmem:[#allocation8 + $0xd58] sm:$0xff]  ;;  %v1102_v4 = vld [vmem:[#allocation8 + $0x630] sm:$0xff] }
 0x17f   :  { %1668 = vmatpush.msrb.mxu3 %v1001_v5  ;;  %1726 = vmatpush.msra.mxu2 %v1251_v7  ;;  %v1247_v5 = vld [vmem:[#allocation8 + $0xab8] sm:$0xff] }
 0x180   :  { %1769 = vmatpush.msrb.mxu0 %v917_v8  ;;  %1785 = vmatpush.msrb.mxu1 %v1017_v9  ;;  %v1347_v7 = vld [vmem:[#allocation8 + $0xdd8] sm:$0xff]  ;;  %v1326_v8 = vld [vmem:[#allocation8 + $0xd30] sm:$0xff]  ;;  %v1097_v9 = vld [vmem:[#allocation8 + $0x608] sm:$0xff] }
 0x181   :  { %1669 = vmatpush.msrb.mxu3 %v996_v10  ;;  %1727 = vmatpush.msra.mxu2 %v1246_v11  ;;  %v1242_v10 = vld [vmem:[#allocation8 + $0xa90] sm:$0xff] }
 0x182   :  { %1770 = vmatpush.msrb.mxu0 %v912_v12  ;;  %1786 = vmatpush.msrb.mxu1 %v1012_v59  ;;  %v1342_v11 = vld [vmem:[#allocation8 + $0xdb0] sm:$0xff]  ;;  %v1321_v12 = vld [vmem:[#allocation8 + $0xd08] sm:$0xff]  ;;  %v1092_v59 = vld [vmem:[#allocation8 + $0x5e0] sm:$0xff] }
 0x183   :  { %1670 = vmatpush.msrb.mxu3 %v991_v15  ;;  %1728 = vmatpush.msra.mxu2 %v1241_v17  ;;  %v1237_v15 = vld [vmem:[#allocation8 + $0xa68] sm:$0xff] }
 0x184   :  { %1771 = vmatpush.msrb.mxu0 %v907_v60  ;;  %1787 = vmatpush.msrb.mxu1 %v1007_v18  ;;  %v1337_v17 = vld [vmem:[#allocation8 + $0xd88] sm:$0xff]  ;;  %v1316_v60 = vld [vmem:[#allocation8 + $0xce0] sm:$0xff]  ;;  %v1087_v18 = vld [vmem:[#allocation8 + $0x5b8] sm:$0xff] }
 0x185   :  { %1772 = vmatmul.f32.vlgmr.msrb.gmra.mxu0 %v4880_v6  ;;  %1671 = vmatpush.msrb.mxu3 %v986_v19  ;;  %v1232_v19 = vld [vmem:[#allocation8 + $0xa40] sm:$0xff] }
 0x186   :  { %1836 = vmatpush.msra.mxu0 %v1302_v20  ;;  %1729 = vmatpush.msra.mxu2 %v1236_v21  ;;  %v1332_v20 = vld [vmem:[#allocation8 + $0xd60] sm:$0xff]  ;;  %v1311_v21 = vld [vmem:[#allocation8 + $0xcb8] sm:$0xff] }
 0x187   :  { %1788 = vmatpush.msrb.mxu1 %v1002_v22  ;;  %1672 = vmatmul.f32.vlgmr.msrb.gmra.mxu3 %v4883_v13  ;;  %v1082_v22 = vld [vmem:[#allocation8 + $0x590] sm:$0xff] }
 0x188   :  { %1736 = vmatpush.msra.mxu3 %v1381_v23  ;;  %1837 = vmatpush.msra.mxu0 %v1297_v24  ;;  %v1227_v23 = vld [vmem:[#allocation8 + $0xa18] sm:$0xff] }
 0x189   :  { %1730 = vmatpush.msra.mxu2 %v1231_v25  ;;  %1789 = vmatpush.msrb.mxu1 %v997_v27  ;;  %v1327_v24 = vld [vmem:[#allocation8 + $0xd38] sm:$0xff]  ;;  %v1306_v25 = vld [vmem:[#allocation8 + $0xc90] sm:$0xff] }
 0x18a   :  { %1737 = vmatpush.msra.mxu3 %v1376_v28  ;;  %1838 = vmatpush.msra.mxu0 %v1292_v29  ;;  %v1143_v27 = vld [vmem:[#allocation8 + $0x778] sm:$0xff]  ;;  %v1077_v28 = vld [vmem:[#allocation8 + $0x568] sm:$0xff]  ;;  %v1322_v29 = vld [vmem:[#allocation8 + $0xd10] sm:$0xff] }
 0x18b   :  { %1731 = vmatpush.msra.mxu2 %v1226_v30  ;;  %1790 = vmatpush.msrb.mxu1 %v992_v31  ;;  %v1222_v30 = vld [vmem:[#allocation8 + $0x9f0] sm:$0xff] }
 0x18c   :  { %1732 = vmatmul.f32.vlgmr.msra.gmra.mxu2 %v4897_v26  ;;  %1738 = vmatpush.msra.mxu3 %v1371_v33  ;;  %v1138_v31 = vld [vmem:[#allocation8 + $0x750] sm:$0xff]  ;;  %v1072_v33 = vld [vmem:[#allocation8 + $0x540] sm:$0xff] }
 0x18d   :  { %1796 = vmatpush.msrb.mxu2 %v1142_v54  ;;  %1839 = vmatpush.msra.mxu0 %v1287_v35  ;;  %v1317_v54 = vld [vmem:[#allocation8 + $0xce8] sm:$0xff] }
 0x18e   :  { %1791 = vmatpush.msrb.mxu1 %v987_v36  ;;  %1739 = vmatpush.msra.mxu3 %v1366_v37  ;;  %v1217_v35 = vld [vmem:[#allocation8 + $0x9c8] sm:$0xff]  ;;  %v1067_v37 = vld [vmem:[#allocation8 + $0x518] sm:$0xff] }
 0x18f   :  { %1792 = vmatmul.f32.vlgmr.msrb.gmra.mxu1 %v4883_v13  ;;  %1797 = vmatpush.msrb.mxu2 %v1137_v38  ;;  %v1133_v36 = vld [vmem:[#allocation8 + $0x728] sm:$0xff]  ;;  %v1312_v38 = vld [vmem:[#allocation8 + $0xcc0] sm:$0xff] }
 0x190   :  { %1840 = vmatpush.msra.mxu0 %v1282_v39  ;;  %1856 = vmatpush.msra.mxu1 %v1382_v40  ;;  %v1212_v39 = vld [vmem:[#allocation8 + $0x9a0] sm:$0xff]  ;;  %v983_v40 = vld [vmem:[#allocation8 + $0x278] sm:$0xff] }
 0x191   :  { %1740 = vmatpush.msra.mxu3 %v1361_v41  ;;  %1798 = vmatpush.msrb.mxu2 %v1132_v42  ;;  %v1128_v41 = vld [vmem:[#allocation8 + $0x700] sm:$0xff]  ;;  %v1307_v42 = vld [vmem:[#allocation8 + $0xc98] sm:$0xff] }
 0x192   :  { %1841 = vmatpush.msra.mxu0 %v1277_v43  ;;  %1857 = vmatpush.msra.mxu1 %v1377_v44  ;;  %v1207_v43 = vld [vmem:[#allocation8 + $0x978] sm:$0xff]  ;;  %v978_v44 = vld [vmem:[#allocation8 + $0x250] sm:$0xff] }
 0x193   :  { %1741 = vmatpush.msra.mxu3 %v1356_v45  ;;  %1799 = vmatpush.msrb.mxu2 %v1127_v46  ;;  %v1123_v45 = vld [vmem:[#allocation8 + $0x6d8] sm:$0xff] }
 0x194   :  { %1842 = vmatpush.msra.mxu0 %v1272_v47  ;;  %1858 = vmatpush.msra.mxu1 %v1372_v48  ;;  %v1223_v46 = vld [vmem:[#allocation8 + $0x9f8] sm:$0xff]  ;;  %v1202_v47 = vld [vmem:[#allocation8 + $0x950] sm:$0xff]  ;;  %v973_v48 = vld [vmem:[#allocation8 + $0x228] sm:$0xff] }
 0x195   :  { %1742 = vmatpush.msra.mxu3 %v1351_v49  ;;  %1800 = vmatpush.msrb.mxu2 %v1122_v50  ;;  %v1118_v49 = vld [vmem:[#allocation8 + $0x6b0] sm:$0xff] }
 0x196   :  { %1843 = vmatpush.msra.mxu0 %v1267_v51  ;;  %1859 = vmatpush.msra.mxu1 %v1367_v52  ;;  %v1218_v50 = vld [vmem:[#allocation8 + $0x9d0] sm:$0xff]  ;;  %v1197_v51 = vld [vmem:[#allocation8 + $0x928] sm:$0xff]  ;;  %v968_v52 = vld [vmem:[#allocation8 + $0x200] sm:$0xff] }
 0x197   :  { %1743 = vmatpush.msra.mxu3 %v1346_v53  ;;  %1801 = vmatpush.msrb.mxu2 %v1117_v55  ;;  %v1113_v53 = vld [vmem:[#allocation8 + $0x688] sm:$0xff] }
 0x198   :  { %1844 = vmatpush.msra.mxu0 %v1262_v56  ;;  %1860 = vmatpush.msra.mxu1 %v1362_v57  ;;  %v1213_v55 = vld [vmem:[#allocation8 + $0x9a8] sm:$0xff]  ;;  %v1192_v56 = vld [vmem:[#allocation8 + $0x900] sm:$0xff]  ;;  %v963_v57 = vld [vmem:[#allocation8 + $0x1d8] sm:$0xff] }
 0x199   :  { %1744 = vmatpush.msra.mxu3 %v1341_v58  ;;  %1802 = vmatpush.msrb.mxu2 %v1112_v61  ;;  %v1108_v58 = vld [vmem:[#allocation8 + $0x660] sm:$0xff] }
 0x19a   :  { %1845 = vmatpush.msra.mxu0 %v1257_v62  ;;  %1861 = vmatpush.msra.mxu1 %v1357_v63  ;;  %v1208_v61 = vld [vmem:[#allocation8 + $0x980] sm:$0xff]  ;;  %v1187_v62 = vld [vmem:[#allocation8 + $0x8d8] sm:$0xff]  ;;  %v958_v63 = vld [vmem:[#allocation8 + $0x1b0] sm:$0xff] }
 0x19b   :  { %1745 = vmatpush.msra.mxu3 %v1336_v0  ;;  %1803 = vmatpush.msrb.mxu2 %v1107_v1  ;;  %v1103_v0 = vld [vmem:[#allocation8 + $0x638] sm:$0xff] }
 0x19c   :  { %1846 = vmatpush.msra.mxu0 %v1252_v2  ;;  %1862 = vmatpush.msra.mxu1 %v1352_v32  ;;  %v1203_v1 = vld [vmem:[#allocation8 + $0x958] sm:$0xff]  ;;  %v1182_v2 = vld [vmem:[#allocation8 + $0x8b0] sm:$0xff]  ;;  %v953_v32 = vld [vmem:[#allocation8 + $0x188] sm:$0xff] }
 0x19d   :  { %1746 = vmatpush.msra.mxu3 %v1331_v3  ;;  %1804 = vmatpush.msrb.mxu2 %v1102_v4  ;;  %v1098_v3 = vld [vmem:[#allocation8 + $0x610] sm:$0xff] }
 0x19e   :  { %1847 = vmatpush.msra.mxu0 %v1247_v5  ;;  %1863 = vmatpush.msra.mxu1 %v1347_v7  ;;  %v1198_v4 = vld [vmem:[#allocation8 + $0x930] sm:$0xff]  ;;  %v1177_v5 = vld [vmem:[#allocation8 + $0x888] sm:$0xff]  ;;  %v948_v7 = vld [vmem:[#allocation8 + $0x160] sm:$0xff] }
 0x19f   :  { %1747 = vmatpush.msra.mxu3 %v1326_v8  ;;  %1805 = vmatpush.msrb.mxu2 %v1097_v9  ;;  %v1093_v8 = vld [vmem:[#allocation8 + $0x5e8] sm:$0xff] }
 0x1a0   :  { %1848 = vmatpush.msra.mxu0 %v1242_v10  ;;  %1864 = vmatpush.msra.mxu1 %v1342_v11  ;;  %v1193_v9 = vld [vmem:[#allocation8 + $0x908] sm:$0xff]  ;;  %v1172_v10 = vld [vmem:[#allocation8 + $0x860] sm:$0xff]  ;;  %v943_v11 = vld [vmem:[#allocation8 + $0x138] sm:$0xff] }
 0x1a1   :  { %1748 = vmatpush.msra.mxu3 %v1321_v12  ;;  %1806 = vmatpush.msrb.mxu2 %v1092_v59  ;;  %v1088_v12 = vld [vmem:[#allocation8 + $0x5c0] sm:$0xff] }
 0x1a2   :  { %1849 = vmatpush.msra.mxu0 %v1237_v15  ;;  %1865 = vmatpush.msra.mxu1 %v1337_v17  ;;  %v1188_v59 = vld [vmem:[#allocation8 + $0x8e0] sm:$0xff]  ;;  %v1167_v15 = vld [vmem:[#allocation8 + $0x838] sm:$0xff]  ;;  %v938_v17 = vld [vmem:[#allocation8 + $0x110] sm:$0xff] }
 0x1a3   :  { %1749 = vmatpush.msra.mxu3 %v1316_v60  ;;  %1807 = vmatpush.msrb.mxu2 %v1087_v18  ;;  %v1083_v60 = vld [vmem:[#allocation8 + $0x598] sm:$0xff] }
 0x1a4   :  { %1850 = vmatpush.msra.mxu0 %v1232_v19  ;;  %1866 = vmatpush.msra.mxu1 %v1332_v20  ;;  %v1183_v18 = vld [vmem:[#allocation8 + $0x8b8] sm:$0xff]  ;;  %v1162_v19 = vld [vmem:[#allocation8 + $0x810] sm:$0xff]  ;;  %v933_v20 = vld [vmem:[#allocation8 + $0xe8] sm:$0xff] }
 0x1a5   :  { %1750 = vmatpush.msra.mxu3 %v1311_v21  ;;  %1808 = vmatpush.msrb.mxu2 %v1082_v22  ;;  %v1078_v21 = vld [vmem:[#allocation8 + $0x570] sm:$0xff] }
 0x1a6   :  { %1851 = vmatpush.msra.mxu0 %v1227_v23  ;;  %1867 = vmatpush.msra.mxu1 %v1327_v24  ;;  %v1178_v22 = vld [vmem:[#allocation8 + $0x890] sm:$0xff]  ;;  %v1157_v23 = vld [vmem:[#allocation8 + $0x7e8] sm:$0xff]  ;;  %v928_v24 = vld [vmem:[#allocation8 + $0xc0] sm:$0xff] }
 0x1a7   :  { %1852 = vmatmul.f32.vlgmr.msra.gmra.mxu0 %v4897_v26  ;;  %1751 = vmatpush.msra.mxu3 %v1306_v25  ;;  %v1073_v25 = vld [vmem:[#allocation8 + $0x548] sm:$0xff] }
 0x1a8   :  { %1916 = vmatpush.msrb.mxu0 %v1143_v27  ;;  %1809 = vmatpush.msrb.mxu2 %v1077_v28  ;;  %v1173_v27 = vld [vmem:[#allocation8 + $0x868] sm:$0xff]  ;;  %v1152_v28 = vld [vmem:[#allocation8 + $0x7c0] sm:$0xff] }
 0x1a9   :  { %1868 = vmatpush.msra.mxu1 %v1322_v29  ;;  %1752 = vmatmul.f32.vlgmr.msra.gmra.mxu3 %v4903_v16  ;;  %v923_v29 = vld [vmem:[#allocation8 + $0x98] sm:$0xff] }
 0x1aa   :  { %1816 = vmatpush.msrb.mxu3 %v1222_v30  ;;  %1917 = vmatpush.msrb.mxu0 %v1138_v31  ;;  %v1068_v30 = vld [vmem:[#allocation8 + $0x520] sm:$0xff] }
 0x1ab   :  { %1810 = vmatpush.msrb.mxu2 %v1072_v33  ;;  %1869 = vmatpush.msra.mxu1 %v1317_v54  ;;  %v1168_v31 = vld [vmem:[#allocation8 + $0x840] sm:$0xff]  ;;  %v1147_v33 = vld [vmem:[#allocation8 + $0x798] sm:$0xff]  ;;  %v918_v54 = vld [vmem:[#allocation8 + $0x70] sm:$0xff] }
 0x1ac   :  { %1817 = vmatpush.msrb.mxu3 %v1217_v35  ;;  %1918 = vmatpush.msrb.mxu0 %v1133_v36  ;;  %v1163_v35 = vld [vmem:[#allocation8 + $0x818] sm:$0xff] }
 0x1ad   :  { %1811 = vmatpush.msrb.mxu2 %v1067_v37  ;;  %1870 = vmatpush.msra.mxu1 %v1312_v38  ;;  %v2076_v36 = vld [vmem:[#allocation11 + $0x258] sm:$0xff]  ;;  %v913_v38 = vld [vmem:[#allocation8 + $0x48] sm:$0xff] }
 0x1ae   :  { %1812 = vmatmul.f32.vlgmr.msrb.gmra.mxu2 %v4888_v14  ;;  %1818 = vmatpush.msrb.mxu3 %v1212_v39  ;;  %v1063_v37 = vld [vmem:[#allocation8 + $0x4f8] sm:$0xff]  ;;  %v1158_v39 = vld [vmem:[#allocation8 + $0x7f0] sm:$0xff] }
 0x1af   :  { %1876 = vmatpush.msra.mxu2 %v983_v40  ;;  %1919 = vmatpush.msrb.mxu0 %v1128_v41  ;;  %v2071_v40 = vld [vmem:[#allocation11 + $0x230] sm:$0xff] }
 0x1b0   :  { %1871 = vmatpush.msra.mxu1 %v1307_v42  ;;  %1819 = vmatpush.msrb.mxu3 %v1207_v43  ;;  %v1058_v41 = vld [vmem:[#allocation8 + $0x4d0] sm:$0xff]  ;;  %v908_v42 = vld [vmem:[#allocation8 + $0x20] sm:$0xff]  ;;  %v1153_v43 = vld [vmem:[#allocation8 + $0x7c8] sm:$0xff] }
 0x1b1   :  { %1872 = vmatmul.f32.vlgmr.msra.gmra.mxu1 %v4903_v16  ;;  %1877 = vmatpush.msra.mxu2 %v978_v44  ;;  %v1053_v44 = vld [vmem:[#allocation8 + $0x4a8] sm:$0xff] }
 0x1b2   :  { %1920 = vmatpush.msrb.mxu0 %v1123_v45  ;;  %1936 = vmatpush.msrb.mxu1 %v1223_v46  ;;  %v1303_v45 = vld [vmem:[#allocation8 + $0xc78] sm:$0xff]  ;;  %v2066_v46 = vld [vmem:[#allocation11 + $0x208] sm:$0xff] }
 0x1b3   :  { %1820 = vmatpush.msrb.mxu3 %v1202_v47  ;;  %1878 = vmatpush.msra.mxu2 %v973_v48  ;;  %v1048_v47 = vld [vmem:[#allocation8 + $0x480] sm:$0xff]  ;;  %v1298_v48 = vld [vmem:[#allocation8 + $0xc50] sm:$0xff] }
 0x1b4   :  { %1921 = vmatpush.msrb.mxu0 %v1118_v49  ;;  %1937 = vmatpush.msrb.mxu1 %v1218_v50  ;;  %v2156_v49 = vld [vmem:[#allocation11 + $0x4d8] sm:$0xff] }
 0x1b5   :  { %1821 = vmatpush.msrb.mxu3 %v1197_v51  ;;  %1879 = vmatpush.msra.mxu2 %v968_v52  ;;  %v1043_v50 = vld [vmem:[#allocation8 + $0x458] sm:$0xff]  ;;  %v2061_v51 = vld [vmem:[#allocation11 + $0x1e0] sm:$0xff] }
 0x1b6   :  { %1922 = vmatpush.msrb.mxu0 %v1113_v53  ;;  %1938 = vmatpush.msrb.mxu1 %v1213_v55  ;;  %v1293_v52 = vld [vmem:[#allocation8 + $0xc28] sm:$0xff]  ;;  %v2151_v53 = vld [vmem:[#allocation11 + $0x4b0] sm:$0xff] }
 0x1b7   :  { %1822 = vmatpush.msrb.mxu3 %v1192_v56  ;;  %1880 = vmatpush.msra.mxu2 %v963_v57  ;;  %v1038_v55 = vld [vmem:[#allocation8 + $0x430] sm:$0xff]  ;;  %v2056_v56 = vld [vmem:[#allocation11 + $0x1b8] sm:$0xff] }
 0x1b8   :  { %1923 = vmatpush.msrb.mxu0 %v1108_v58  ;;  %1939 = vmatpush.msrb.mxu1 %v1208_v61  ;;  %v2146_v57 = vld [vmem:[#allocation11 + $0x488] sm:$0xff]  ;;  %v4923_v58 = vld [vmem:[#allocation10] sm:$0x1f] }
 0x1b9   :  { %1823 = vmatpush.msrb.mxu3 %v1187_v62  ;;  %1881 = vmatpush.msra.mxu2 %v958_v63  ;;  %v1033_v61 = vld [vmem:[#allocation8 + $0x408] sm:$0xff]  ;;  %v2051_v62 = vld [vmem:[#allocation11 + $0x190] sm:$0xff] }
 0x1ba   :  { %1924 = vmatpush.msrb.mxu0 %v1103_v0  ;;  %1940 = vmatpush.msrb.mxu1 %v1203_v1  ;;  %v1283_v63 = vld [vmem:[#allocation8 + $0xbd8] sm:$0xff]  ;;  %v2141_v0 = vld [vmem:[#allocation11 + $0x460] sm:$0xff]  ;;  %v2046_v1 = vld [vmem:[#allocation11 + $0x168] sm:$0xff] }
 0x1bb   :  { %1824 = vmatpush.msrb.mxu3 %v1182_v2  ;;  %1882 = vmatpush.msra.mxu2 %v953_v32  ;;  %v1386_v2 = vperm.slane %v4923_v58, 0  ;;  %v1278_v32 = vld [vmem:[#allocation8 + $0xbb0] sm:$0xff] }
 0x1bc   :  { %1925 = vmatpush.msrb.mxu0 %v1098_v3  ;;  %1941 = vmatpush.msrb.mxu1 %v1198_v4  ;;  %v2136_v3 = vld [vmem:[#allocation11 + $0x438] sm:$0xff]  ;;  %v1413_v4 = vpop.f32.mrf.mxu2 }
 0x1bd   :  { %1825 = vmatpush.msrb.mxu3 %v1177_v5  ;;  %1883 = vmatpush.msra.mxu2 %v948_v7  ;;  %v1023_v5 = vld [vmem:[#allocation8 + $0x3b8] sm:$0xff]  ;;  %v2041_v7 = vld [vmem:[#allocation11 + $0x140] sm:$0xff] }
 0x1be   :  { %1926 = vmatpush.msrb.mxu0 %v1093_v8  ;;  %1942 = vmatpush.msrb.mxu1 %v1193_v9  ;;  %v1273_v8 = vld [vmem:[#allocation8 + $0xb88] sm:$0xff]  ;;  %v2131_v9 = vld [vmem:[#allocation11 + $0x410] sm:$0xff] }
 0x1bf   :  { %1826 = vmatpush.msrb.mxu3 %v1172_v10  ;;  %1884 = vmatpush.msra.mxu2 %v943_v11  ;;  %v1018_v10 = vld [vmem:[#allocation8 + $0x390] sm:$0xff]  ;;  %v2036_v11 = vld [vmem:[#allocation11 + $0x118] sm:$0xff] }
 0x1c0   :  { %1927 = vmatpush.msrb.mxu0 %v1088_v12  ;;  %1943 = vmatpush.msrb.mxu1 %v1188_v59  ;;  %v1414_v12 = vadd.f32 %v1413_v4, %v1386_v2  ;;  %v1268_v59 = vld [vmem:[#allocation8 + $0xb60] sm:$0xff] }
 0x1c1   :  { %1827 = vmatpush.msrb.mxu3 %v1167_v15  ;;  %1885 = vmatpush.msra.mxu2 %v938_v17  ;;  %v2126_v15 = vld [vmem:[#allocation11 + $0x3e8] sm:$0xff]  ;;  %v1433_v17 = vpop.f32.mrf.mxu3  ;;  %v2081_v4 = vld [vmem:[#allocation11 + $0x280] sm:$0xff] }
 0x1c2   :  { %1928 = vmatpush.msrb.mxu0 %v1083_v60  ;;  %1944 = vmatpush.msrb.mxu1 %v1183_v18  ;;  %v1013_v60 = vld [vmem:[#allocation8 + $0x368] sm:$0xff]  ;;  %v2031_v18 = vld [vmem:[#allocation11 + $0xf0] sm:$0xff] }
 0x1c3   :  { %1828 = vmatpush.msrb.mxu3 %v1162_v19  ;;  %1886 = vmatpush.msra.mxu2 %v933_v20  ;;  %v1263_v19 = vld [vmem:[#allocation8 + $0xb38] sm:$0xff]  ;;  %v2121_v20 = vld [vmem:[#allocation11 + $0x3c0] sm:$0xff] }
 0x1c4   :  { %1929 = vmatpush.msrb.mxu0 %v1078_v21  ;;  %1945 = vmatpush.msrb.mxu1 %v1178_v22  ;;  %v1453_v21 = vpop.f32.mrf.mxu0  ;;  %v1008_v22 = vld [vmem:[#allocation8 + $0x340] sm:$0xff] }
 0x1c5   :  { %1829 = vmatpush.msrb.mxu3 %v1157_v23  ;;  %1887 = vmatpush.msra.mxu2 %v928_v24  ;;  %v2026_v23 = vld [vmem:[#allocation11 + $0xc8] sm:$0xff]  ;;  %v1434_v24 = vadd.f32 %v1433_v17, %v1414_v12 }
 0x1c6   :  { %1930 = vmatpush.msrb.mxu0 %v1073_v25  ;;  %1946 = vmatpush.msrb.mxu1 %v1173_v27  ;;  %v1258_v25 = vld [vmem:[#allocation8 + $0xb10] sm:$0xff]  ;;  %v2116_v27 = vld [vmem:[#allocation11 + $0x398] sm:$0xff] }
 0x1c7   :  { %1830 = vmatpush.msrb.mxu3 %v1152_v28  ;;  %1888 = vmatpush.msra.mxu2 %v923_v29  ;;  %v1473_v28 = vpop.f32.mrf.mxu1  ;;  %v1003_v29 = vld [vmem:[#allocation8 + $0x318] sm:$0xff]  ;;  %v1358_v17 = vld [vmem:[#allocation8 + $0xe30] sm:$0xff] }
 0x1c8   :  { %1931 = vmatpush.msrb.mxu0 %v1068_v30  ;;  %1947 = vmatpush.msrb.mxu1 %v1168_v31  ;;  %v2021_v30 = vld [vmem:[#allocation11 + $0xa0] sm:$0xff]  ;;  %v1454_v31 = vadd.f32 %v1453_v21, %v1434_v24  ;;  %v2062_v21 = vld [vmem:[#allocation11 + $0x1e8] sm:$0xff] }
 0x1c9   :  { %1932 = vmatmul.f32.vlgmr.msrb.gmra.mxu0 %v4888_v14  ;;  %1831 = vmatpush.msrb.mxu3 %v1147_v33  ;;  %v1148_v14 = vld [vmem:[#allocation8 + $0x7a0] sm:$0xff]  ;;  %v1253_v33 = vld [vmem:[#allocation8 + $0xae8] sm:$0xff] }
 0x1ca   :  { %1889 = vmatpush.msra.mxu2 %v918_v54  ;;  %1948 = vmatpush.msrb.mxu1 %v1163_v35  ;;  %v2111_v54 = vld [vmem:[#allocation11 + $0x370] sm:$0xff]  ;;  %v1348_v24 = vld [vmem:[#allocation8 + $0xde0] sm:$0xff] }
 0x1cb   :  { %1832 = vmatmul.f32.vlgmr.msrb.gmra.mxu3 %v4891_v34  ;;  %2413 = vmatpush.msra.mxu0 %v2076_v36  ;;  %v1493_v35 = vpop.f32.mrf.mxu2  ;;  %v998_v36 = vld [vmem:[#allocation8 + $0x2f0] sm:$0xff] }
 0x1cc   :  { %1896 = vmatpush.msra.mxu3 %v1063_v37  ;;  %1890 = vmatpush.msra.mxu2 %v913_v38  ;;  %v2016_v37 = vld [vmem:[#allocation11 + $0x78] sm:$0xff]  ;;  %v1474_v38 = vadd.f32 %v1473_v28, %v1454_v31  ;;  %v2211_v28 = vld [vmem:[#allocation11 + $0x690] sm:$0xff]  ;;  %v2206_v31 = vld [vmem:[#allocation11 + $0x668] sm:$0xff] }
 0x1cd   :  { %1949 = vmatpush.msrb.mxu1 %v1158_v39  ;;  %2414 = vmatpush.msra.mxu0 %v2071_v40  ;;  %v1248_v39 = vld [vmem:[#allocation8 + $0xac0] sm:$0xff]  ;;  %v2106_v40 = vld [vmem:[#allocation11 + $0x348] sm:$0xff] }
 0x1ce   :  { %1897 = vmatpush.msra.mxu3 %v1058_v41  ;;  %1891 = vmatpush.msra.mxu2 %v908_v42  ;;  %v993_v41 = vld [vmem:[#allocation8 + $0x2c8] sm:$0xff]  ;;  %v2011_v42 = vld [vmem:[#allocation11 + $0x50] sm:$0xff] }
 0x1cf   :  { %1950 = vmatpush.msrb.mxu1 %v1153_v43  ;;  %1892 = vmatmul.f32.vlgmr.msra.gmra.mxu2 %v4880_v6  ;;  %v1288_v6 = vld [vmem:[#allocation8 + $0xc00] sm:$0xff]  ;;  %v1494_v43 = vadd.f32 %v1493_v35, %v1474_v38 }
 0x1d0   :  { %1898 = vmatpush.msra.mxu3 %v1053_v44  ;;  %1956 = vmatpush.msrb.mxu2 %v1303_v45  ;;  %v1243_v44 = vld [vmem:[#allocation8 + $0xa98] sm:$0xff]  ;;  %v2101_v45 = vld [vmem:[#allocation11 + $0x320] sm:$0xff] }
 0x1d1   :  { %1951 = vmatpush.msrb.mxu1 %v1148_v14  ;;  %2415 = vmatpush.msra.mxu0 %v2066_v46  ;;  %v988_v14 = vld [vmem:[#allocation8 + $0x2a0] sm:$0xff] }
 0x1d2   :  { %1899 = vmatpush.msra.mxu3 %v1048_v47  ;;  %1952 = vmatmul.f32.vlgmr.msrb.gmra.mxu1 %v4891_v34  ;;  %v1028_v34 = vld [vmem:[#allocation8 + $0x3e0] sm:$0xff]  ;;  %v2006_v47 = vld [vmem:[#allocation11 + $0x28] sm:$0xff] }
 0x1d3   :  { %1957 = vmatpush.msrb.mxu2 %v1298_v48  ;;  %2433 = vmatpush.msra.mxu1 %v2156_v49  ;;  %v1387_v48 = vperm.slane %v4923_v58, 1  ;;  %v1238_v49 = vld [vmem:[#allocation8 + $0xa70] sm:$0xff]  ;;  %v2201_v35 = vld [vmem:[#allocation11 + $0x640] sm:$0xff]  ;;  %v2196_v38 = vld [vmem:[#allocation11 + $0x618] sm:$0xff] }
 0x1d4   :  { %1900 = vmatpush.msra.mxu3 %v1043_v50  ;;  %2416 = vmatpush.msra.mxu0 %v2061_v51  ;;  %v2096_v50 = vld [vmem:[#allocation11 + $0x2f8] sm:$0xff] }
 0x1d5   :  { %1958 = vmatpush.msrb.mxu2 %v1293_v52  ;;  %2434 = vmatpush.msra.mxu1 %v2151_v53  ;;  %v1533_v52 = vpop.f32.mrf.mxu0  ;;  %v2001_v53 = vld [vmem:[#allocation11] sm:$0xff] }
 0x1d6   :  { %1901 = vmatpush.msra.mxu3 %v1038_v55  ;;  %2417 = vmatpush.msra.mxu0 %v2056_v56  ;;  %v1383_v55 = vld [vmem:[#allocation8 + $0xef8] sm:$0xff]  ;;  %v1233_v56 = vld [vmem:[#allocation8 + $0xa48] sm:$0xff] }
 0x1d7   :  { %1959 = vmatpush.msrb.mxu2 %v1288_v6  ;;  %2435 = vmatpush.msra.mxu1 %v2146_v57  ;;  %v1553_v57 = vpop.f32.mrf.mxu1 }
 0x1d8   :  { %1902 = vmatpush.msra.mxu3 %v1033_v61  ;;  %2418 = vmatpush.msra.mxu0 %v2051_v62  ;;  %v2091_v61 = vld [vmem:[#allocation11 + $0x2d0] sm:$0xff]  ;;  %v1534_v62 = vadd.f32 %v1533_v52, %v1387_v48  ;;  %v2022_v48 = vld [vmem:[#allocation11 + $0xa8] sm:$0xff] }
 0x1d9   :  { %1960 = vmatpush.msrb.mxu2 %v1283_v63  ;;  %2436 = vmatpush.msra.mxu1 %v2141_v0  ;;  %v1378_v63 = vld [vmem:[#allocation8 + $0xed0] sm:$0xff]  ;;  %v1228_v0 = vld [vmem:[#allocation8 + $0xa20] sm:$0xff] }
 0x1da   :  { %1903 = vmatpush.msra.mxu3 %v1028_v34  ;;  %2419 = vmatpush.msra.mxu0 %v2046_v1  ;;  %v1573_v34 = vpop.f32.mrf.mxu2  ;;  %v2086_v1 = vld [vmem:[#allocation11 + $0x2a8] sm:$0xff]  ;;  %v1554_v2 = vadd.f32 %v1553_v57, %v1534_v62  ;;  %v2171_v52 = vld [vmem:[#allocation11 + $0x550] sm:$0xff]  ;;  %v2161_v62 = vld [vmem:[#allocation11 + $0x500] sm:$0xff] }
 0x1db   :  { %1961 = vmatpush.msrb.mxu2 %v1278_v32  ;;  %2437 = vmatpush.msra.mxu1 %v2136_v3  ;;  %v1373_v32 = vld [vmem:[#allocation8 + $0xea8] sm:$0xff]  ;;  %v2236_v3 = vld [vmem:[#allocation11 + $0x758] sm:$0xff]  ;;  %v2007_v57 = vld [vmem:[#allocation11 + $0x30] sm:$0xff] }
 0x1dc   :  { %1904 = vmatpush.msra.mxu3 %v1023_v5  ;;  %2420 = vmatpush.msra.mxu0 %v2041_v7  ;;  %v1574_v5 = vadd.f32 %v1573_v34, %v1554_v2  ;;  %v2077_v7 = vld [vmem:[#allocation11 + $0x260] sm:$0xff]  ;;  %v2306_v34 = vld [vmem:[#allocation11 + $0x988] sm:$0xff] }
 0x1dd   :  { %1962 = vmatpush.msrb.mxu2 %v1273_v8  ;;  %2438 = vmatpush.msra.mxu1 %v2131_v9  ;;  %v2231_v8 = vld [vmem:[#allocation11 + $0x730] sm:$0xff]  ;;  %v2301_v2 = vld [vmem:[#allocation11 + $0x960] sm:$0xff] }
 0x1de   :  { %1905 = vmatpush.msra.mxu3 %v1018_v10  ;;  %2421 = vmatpush.msra.mxu0 %v2036_v11  ;;  %v1363_v10 = vld [vmem:[#allocation8 + $0xe58] sm:$0xff] }
 0x1df   :  { %1963 = vmatpush.msrb.mxu2 %v1268_v59  ;;  %2439 = vmatpush.msra.mxu1 %v2126_v15  ;;  %v2072_v11 = vld [vmem:[#allocation11 + $0x238] sm:$0xff]  ;;  %v1613_v59 = vpop.f32.mrf.mxu0  ;;  %v2226_v15 = vld [vmem:[#allocation11 + $0x708] sm:$0xff] }
 0x1e0   :  { %1906 = vmatpush.msra.mxu3 %v1013_v60  ;;  %2422 = vmatpush.msra.mxu0 %v2031_v18  ;;  %v2067_v60 = vld [vmem:[#allocation11 + $0x210] sm:$0xff] }
 0x1e1   :  { %1964 = vmatpush.msrb.mxu2 %v1263_v19  ;;  %2440 = vmatpush.msra.mxu1 %v2121_v20  ;;  %v1353_v20 = vld [vmem:[#allocation8 + $0xe08] sm:$0xff] }
 0x1e2   :  { %1907 = vmatpush.msra.mxu3 %v1008_v22  ;;  %2423 = vmatpush.msra.mxu0 %v2026_v23  ;;  %v1633_v19 = vpop.f32.mrf.mxu1  ;;  %v2216_v23 = vld [vmem:[#allocation11 + $0x6b8] sm:$0xff] }
 0x1e3   :  { %1965 = vmatpush.msrb.mxu2 %v1258_v25  ;;  %2441 = vmatpush.msra.mxu1 %v2116_v27  ;;  %v2057_v25 = vld [vmem:[#allocation11 + $0x1c0] sm:$0xff] }
 0x1e4   :  { %1908 = vmatpush.msra.mxu3 %v1003_v29  ;;  %2424 = vmatpush.msra.mxu0 %v2021_v30  ;;  %v1343_v29 = vld [vmem:[#allocation8 + $0xdb8] sm:$0xff] }
 0x1e5   :  { %1966 = vmatpush.msrb.mxu2 %v1253_v33  ;;  %2442 = vmatpush.msra.mxu1 %v2111_v54  ;;  %v2052_v30 = vld [vmem:[#allocation11 + $0x198] sm:$0xff]  ;;  %v1338_v33 = vld [vmem:[#allocation8 + $0xd90] sm:$0xff] }
 0x1e6   :  { %1909 = vmatpush.msra.mxu3 %v998_v36  ;;  %2425 = vmatpush.msra.mxu0 %v2016_v37  ;;  %v2047_v54 = vld [vmem:[#allocation11 + $0x170] sm:$0xff]  ;;  %v1333_v36 = vld [vmem:[#allocation8 + $0xd68] sm:$0xff] }
 0x1e7   :  { %1967 = vmatpush.msrb.mxu2 %v1248_v39  ;;  %2443 = vmatpush.msra.mxu1 %v2106_v40  ;;  %v1513_v46 = vpop.f32.mrf.mxu3  ;;  %v2042_v37 = vld [vmem:[#allocation11 + $0x148] sm:$0xff]  ;;  %v1328_v39 = vld [vmem:[#allocation8 + $0xd40] sm:$0xff] }
 0x1e8   :  { %1910 = vmatpush.msra.mxu3 %v993_v41  ;;  %v1514_v51 = vadd.f32 %v1513_v46, %v1494_v43  ;;  %2426 = vmatpush.msra.mxu0 %v2011_v42  ;;  %v2037_v40 = vld [vmem:[#allocation11 + $0x120] sm:$0xff]  ;;  %v2191_v41 = vld [vmem:[#allocation11 + $0x5f0] sm:$0xff]  ;;  %v2032_v43 = vld [vmem:[#allocation11 + $0xf8] sm:$0xff] }
 0x1e9   :  { %1968 = vmatpush.msrb.mxu2 %v1243_v44  ;;  %2444 = vmatpush.msra.mxu1 %v2101_v45  ;;  %v1323_v42 = vld [vmem:[#allocation8 + $0xd18] sm:$0xff]  ;;  %v2186_v44 = vld [vmem:[#allocation11 + $0x5c8] sm:$0xff]  ;;  %v2181_v46 = vld [vmem:[#allocation11 + $0x5a0] sm:$0xff] }
 0x1ea   :  { %1911 = vmatpush.msra.mxu3 %v988_v14  ;;  %v4927_v6 = vmax.f32 %v1514_v51, 0.0  ;;  %2427 = vmatpush.msra.mxu0 %v2006_v47  ;;  %v1318_v45 = vld [vmem:[#allocation8 + $0xcf0] sm:$0xff]  ;;  %v1313_v47 = vld [vmem:[#allocation8 + $0xcc8] sm:$0xff] }
 0x1eb   :  { %1969 = vmatpush.msrb.mxu2 %v1238_v49  ;;  %2445 = vmatpush.msra.mxu1 %v2096_v50  ;;  %v2027_v14 = vld [vmem:[#allocation11 + $0xd0] sm:$0xff]  ;;  %v2176_v49 = vld [vmem:[#allocation11 + $0x578] sm:$0xff]  ;;  %v2017_v51 = vld [vmem:[#allocation11 + $0x80] sm:$0xff] }
 0x1ec   :  { %1912 = vmatmul.f32.vlgmr.msra.gmra.mxu3 %v4883_v13  ;;  %2428 = vmatpush.msra.mxu0 %v2001_v53  ;;  %v1368_v13 = vld [vmem:[#allocation8 + $0xe80] sm:$0xff] }
 0x1ed   :  { %1976 = vmatpush.msrb.mxu3 %v1383_v55  ;;  %1970 = vmatpush.msrb.mxu2 %v1233_v56  ;;  %v1308_v50 = vld [vmem:[#allocation8 + $0xca0] sm:$0xff]  ;;  %v2166_v56 = vld [vmem:[#allocation11 + $0x528] sm:$0xff] }
 0x1ee   :  { %2446 = vmatpush.msra.mxu1 %v2091_v61  ;;  %2429 = vmatmul.f32.vlgmr.msra.gmra.mxu0 %v4927_v6  ;;  %v2012_v53 = vld [vmem:[#allocation11 + $0x58] sm:$0xff]  ;;  %v2311_v61 = vld [vmem:[#allocation11 + $0x9b0] sm:$0xff] }
 0x1ef   :  { %1977 = vmatpush.msrb.mxu3 %v1378_v63  ;;  %1971 = vmatpush.msrb.mxu2 %v1228_v0  ;;  %v2316_v55 = vld [vmem:[#allocation11 + $0x9d8] sm:$0xff]  ;;  %v2002_v63 = vld [vmem:[#allocation11 + $0x8] sm:$0xff]  ;;  %v2157_v0 = vld [vmem:[#allocation11 + $0x4e0] sm:$0xff] }
 0x1f0   :  { %2447 = vmatpush.msra.mxu1 %v2086_v1  ;;  %1972 = vmatmul.f32.vlgmr.msrb.gmra.mxu2 %v4897_v26  ;;  %v2221_v26 = vld [vmem:[#allocation11 + $0x6e0] sm:$0xff]  ;;  %v2152_v1 = vld [vmem:[#allocation11 + $0x4b8] sm:$0xff] }
 0x1f1   :  { %1978 = vmatpush.msrb.mxu3 %v1373_v32  ;;  %2453 = vmatpush.msra.mxu2 %v2236_v3  ;;  %v1593_v9 = vpop.f32.mrf.mxu3  ;;  %v2296_v32 = vld [vmem:[#allocation11 + $0x938] sm:$0xff]  ;;  %v2142_v3 = vld [vmem:[#allocation11 + $0x468] sm:$0xff] }
 0x1f2   :  { %2448 = vmatpush.msra.mxu1 %v2081_v4  ;;  %v1594_v12 = vadd.f32 %v1593_v9, %v1574_v5  ;;  %v2291_v4 = vld [vmem:[#allocation11 + $0x910] sm:$0xff]  ;;  %v2137_v5 = vld [vmem:[#allocation11 + $0x440] sm:$0xff] }
 0x1f3   :  { %1979 = vmatpush.msrb.mxu3 %v1368_v13  ;;  %2454 = vmatpush.msra.mxu2 %v2231_v8  ;;  %v2286_v13 = vld [vmem:[#allocation11 + $0x8e8] sm:$0xff]  ;;  %v1388_v8 = vperm.slane %v4923_v58, 2  ;;  %v2281_v9 = vld [vmem:[#allocation11 + $0x8c0] sm:$0xff] }
 0x1f4   :  { %2513 = vmatpush.msrb.mxu1 %v2077_v7  ;;  %v1614_v18 = vadd.f32 %v1613_v59, %v1594_v12  ;;  %v2132_v7 = vld [vmem:[#allocation11 + $0x418] sm:$0xff] }
 0x1f5   :  { %1980 = vmatpush.msrb.mxu3 %v1363_v10  ;;  %2455 = vmatpush.msra.mxu2 %v2226_v15  ;;  %v1653_v10 = vpop.f32.mrf.mxu2  ;;  %v2276_v12 = vld [vmem:[#allocation11 + $0x898] sm:$0xff]  ;;  %v2122_v15 = vld [vmem:[#allocation11 + $0x3c8] sm:$0xff] }
 0x1f6   :  { %2514 = vmatpush.msrb.mxu1 %v2072_v11  ;;  %v1634_v22 = vadd.f32 %v1633_v19, %v1614_v18  ;;  %v2127_v11 = vld [vmem:[#allocation11 + $0x3f0] sm:$0xff]  ;;  %v2117_v18 = vld [vmem:[#allocation11 + $0x3a0] sm:$0xff] }
 0x1f7   :  { %1981 = vmatpush.msrb.mxu3 %v1358_v17  ;;  %2456 = vmatpush.msra.mxu2 %v2221_v26  ;;  %v1654_v17 = vadd.f32 %v1653_v10, %v1388_v8  ;;  %v2266_v26 = vld [vmem:[#allocation11 + $0x848] sm:$0xff]  ;;  %v2187_v8 = vld [vmem:[#allocation11 + $0x5d0] sm:$0xff] }
 0x1f8   :  { %2515 = vmatpush.msrb.mxu1 %v2067_v60  ;;  %v4932_v27 = vmax.f32 %v1634_v22, 0.0  ;;  %v2271_v60 = vld [vmem:[#allocation11 + $0x870] sm:$0xff]  ;;  %v1693_v22 = vpop.f32.mrf.mxu0  ;;  %v2038_v10 = vld [vmem:[#allocation11 + $0x128] sm:$0xff] }
 0x1f9   :  { %1982 = vmatpush.msrb.mxu3 %v1353_v20  ;;  %2457 = vmatpush.msra.mxu2 %v2216_v23  ;;  %v2112_v20 = vld [vmem:[#allocation11 + $0x378] sm:$0xff]  ;;  %v2107_v23 = vld [vmem:[#allocation11 + $0x350] sm:$0xff] }
 0x1fa   :  { %2516 = vmatpush.msrb.mxu1 %v2062_v21  ;;  %v2261_v21 = vld [vmem:[#allocation11 + $0x820] sm:$0xff] }
 0x1fb   :  { %2449 = vmatmul.f32.vlgmr.msra.gmra.mxu1 %v4932_v27  ;;  %1983 = vmatpush.msrb.mxu3 %v1348_v24 }
 0x1fc   :  { %2517 = vmatpush.msrb.mxu1 %v2057_v25  ;;  %2458 = vmatpush.msra.mxu2 %v2211_v28  ;;  %v2256_v25 = vld [vmem:[#allocation11 + $0x7f8] sm:$0xff]  ;;  %v2102_v28 = vld [vmem:[#allocation11 + $0x328] sm:$0xff] }
 0x1fd   :  { %1984 = vmatpush.msrb.mxu3 %v1343_v29  ;;  %v2251_v29 = vld [vmem:[#allocation11 + $0x7d0] sm:$0xff] }
 0x1fe   :  { %2518 = vmatpush.msrb.mxu1 %v2052_v30  ;;  %2459 = vmatpush.msra.mxu2 %v2206_v31  ;;  %v1713_v30 = vpop.f32.mrf.mxu1  ;;  %v2097_v31 = vld [vmem:[#allocation11 + $0x300] sm:$0xff] }
 0x1ff   :  { %1985 = vmatpush.msrb.mxu3 %v1338_v33 }
 0x200   :  { %2519 = vmatpush.msrb.mxu1 %v2047_v54  ;;  %2460 = vmatpush.msra.mxu2 %v2201_v35  ;;  %v2246_v54 = vld [vmem:[#allocation11 + $0x7a8] sm:$0xff]  ;;  %v2092_v35 = vld [vmem:[#allocation11 + $0x2d8] sm:$0xff] }
 0x201   :  { %1986 = vmatpush.msrb.mxu3 %v1333_v36  ;;  %v2241_v36 = vld [vmem:[#allocation11 + $0x780] sm:$0xff] }
 0x202   :  { %2520 = vmatpush.msrb.mxu1 %v2042_v37  ;;  %2461 = vmatpush.msra.mxu2 %v2196_v38  ;;  %v2087_v38 = vld [vmem:[#allocation11 + $0x2b0] sm:$0xff] }
 0x203   :  { %1987 = vmatpush.msrb.mxu3 %v1328_v39  ;;  %v2237_v39 = vld [vmem:[#allocation11 + $0x760] sm:$0xff] }
 0x204   :  { %2521 = vmatpush.msrb.mxu1 %v2037_v40  ;;  %2462 = vmatpush.msra.mxu2 %v2191_v41 }
 0x205   :  { %1988 = vmatpush.msrb.mxu3 %v1323_v42  ;;  %v2082_v42 = vld [vmem:[#allocation11 + $0x288] sm:$0xff] }
 0x206   :  { %2522 = vmatpush.msrb.mxu1 %v2032_v43  ;;  %2463 = vmatpush.msra.mxu2 %v2186_v44  ;;  %v2232_v43 = vld [vmem:[#allocation11 + $0x738] sm:$0xff] }
 0x207   :  { %1989 = vmatpush.msrb.mxu3 %v1318_v45  ;;  %v2227_v45 = vld [vmem:[#allocation11 + $0x710] sm:$0xff] }
 0x208   :  { %2523 = vmatpush.msrb.mxu1 %v2027_v14  ;;  %2464 = vmatpush.msra.mxu2 %v2181_v46  ;;  %v2078_v46 = vld [vmem:[#allocation11 + $0x268] sm:$0xff] }
 0x209   :  { %1990 = vmatpush.msrb.mxu3 %v1313_v47  ;;  %v2222_v47 = vld [vmem:[#allocation11 + $0x6e8] sm:$0xff] }
 0x20a   :  { %2524 = vmatpush.msrb.mxu1 %v2022_v48  ;;  %2465 = vmatpush.msra.mxu2 %v2176_v49  ;;  %v1673_v59 = vpop.f32.mrf.mxu3  ;;  %v2073_v48 = vld [vmem:[#allocation11 + $0x240] sm:$0xff] }
 0x20b   :  { %1991 = vmatpush.msrb.mxu3 %v1308_v50  ;;  %v1674_v19 = vadd.f32 %v1673_v59, %v1654_v17  ;;  %v2217_v49 = vld [vmem:[#allocation11 + $0x6c0] sm:$0xff]  ;;  %v2068_v50 = vld [vmem:[#allocation11 + $0x218] sm:$0xff]  ;;  %v2366_v59 = vld [vmem:[#allocation11 + $0xb68] sm:$0xff] }
 0x20c   :  { %2525 = vmatpush.msrb.mxu1 %v2017_v51  ;;  %1992 = vmatmul.f32.vlgmr.msrb.gmra.mxu3 %v4903_v16  ;;  %v2147_v16 = vld [vmem:[#allocation11 + $0x490] sm:$0xff]  ;;  %v2212_v51 = vld [vmem:[#allocation11 + $0x698] sm:$0xff] }
 0x20d   :  { %2466 = vmatpush.msra.mxu2 %v2171_v52  ;;  %2473 = vmatpush.msra.mxu3 %v2316_v55  ;;  %v1694_v24 = vadd.f32 %v1693_v22, %v1674_v19  ;;  %v2063_v52 = vld [vmem:[#allocation11 + $0x1f0] sm:$0xff]  ;;  %v2397_v55 = vld [vmem:[#allocation11 + $0xc60] sm:$0xff]  ;;  %v2028_v19 = vld [vmem:[#allocation11 + $0xd8] sm:$0xff]  ;;  %v1389_v22 = vperm.slane %v4923_v58, 3 }
 0x20e   :  { %2526 = vmatpush.msrb.mxu1 %v2012_v53  ;;  %v2396_v53 = vld [vmem:[#allocation11 + $0xc58] sm:$0xff]  ;;  %v2367_v17 = vld [vmem:[#allocation11 + $0xb70] sm:$0xff]  ;;  %v2013_v58 = vld [vmem:[#allocation11 + $0x60] sm:$0xff] }
 0x20f   :  { %2467 = vmatpush.msra.mxu2 %v2166_v56  ;;  %2474 = vmatpush.msra.mxu3 %v2311_v61  ;;  %v1714_v33 = vadd.f32 %v1713_v30, %v1694_v24  ;;  %v1733_v37 = vpop.f32.mrf.mxu2  ;;  %v2207_v56 = vld [vmem:[#allocation11 + $0x670] sm:$0xff]  ;;  %v2058_v61 = vld [vmem:[#allocation11 + $0x1c8] sm:$0xff]  ;;  %v2357_v24 = vld [vmem:[#allocation11 + $0xb20] sm:$0xff] }
 0x210   :  { %2527 = vmatpush.msrb.mxu1 %v2007_v57  ;;  %2493 = vmatpush.msrb.mxu0 %v2396_v53  ;;  %v2391_v57 = vld [vmem:[#allocation11 + $0xc30] sm:$0xff]  ;;  %v2018_v30 = vld [vmem:[#allocation11 + $0x88] sm:$0xff] }
 0x211   :  { %2468 = vmatpush.msra.mxu2 %v2161_v62  ;;  %2475 = vmatpush.msra.mxu3 %v2306_v34  ;;  %v1734_v40 = vadd.f32 %v1733_v37, %v1714_v33  ;;  %v2392_v62 = vld [vmem:[#allocation11 + $0xc38] sm:$0xff]  ;;  %v2053_v34 = vld [vmem:[#allocation11 + $0x1a0] sm:$0xff]  ;;  %v1793_v33 = vpop.f32.mrf.mxu1  ;;  %v2347_v37 = vld [vmem:[#allocation11 + $0xad0] sm:$0xff] }
 0x212   :  { %2528 = vmatpush.msrb.mxu1 %v2002_v63  ;;  %v2202_v63 = vld [vmem:[#allocation11 + $0x648] sm:$0xff]  ;;  %2494 = vmatpush.msrb.mxu0 %v2391_v57  ;;  %v2327_v57 = vld [vmem:[#allocation11 + $0xa30] sm:$0xff] }
 0x213   :  { %2533 = vmatpush.msrb.mxu2 %v2157_v0  ;;  %2529 = vmatmul.f32.vlgmr.msrb.gmra.mxu1 %v4927_v6  ;;  %v2386_v0 = vld [vmem:[#allocation11 + $0xc08] sm:$0xff] }
 0x214   :  { %2476 = vmatpush.msra.mxu3 %v2301_v2  ;;  %2593 = vmatpush.msra.mxu1 %v2397_v55  ;;  %v2197_v2 = vld [vmem:[#allocation11 + $0x620] sm:$0xff] }
 0x215   :  { %2534 = vmatpush.msrb.mxu2 %v2152_v1  ;;  %v2387_v1 = vld [vmem:[#allocation11 + $0xc10] sm:$0xff]  ;;  %2495 = vmatpush.msrb.mxu0 %v2386_v0  ;;  %v2393_v55 = vld [vmem:[#allocation11 + $0xc40] sm:$0xff] }
 0x216   :  { %2477 = vmatpush.msra.mxu3 %v2296_v32  ;;  %2594 = vmatpush.msra.mxu1 %v2392_v62  ;;  %v2048_v32 = vld [vmem:[#allocation11 + $0x178] sm:$0xff]  ;;  %v2321_v0 = vld [vmem:[#allocation11 + $0xa00] sm:$0xff] }
 0x217   :  { %2535 = vmatpush.msrb.mxu2 %v2147_v16  ;;  %v2381_v16 = vld [vmem:[#allocation11 + $0xbe0] sm:$0xff] }
 0x218   :  { %2478 = vmatpush.msra.mxu3 %v2291_v4  ;;  %v2192_v4 = vld [vmem:[#allocation11 + $0x5f8] sm:$0xff]  ;;  %2595 = vmatpush.msra.mxu1 %v2387_v1  ;;  %v2317_v1 = vld [vmem:[#allocation11 + $0x9e0] sm:$0xff] }
 0x219   :  { %2536 = vmatpush.msrb.mxu2 %v2142_v3  ;;  %v2382_v3 = vld [vmem:[#allocation11 + $0xbe8] sm:$0xff]  ;;  %2496 = vmatpush.msrb.mxu0 %v2381_v16 }
 0x21a   :  { %2479 = vmatpush.msra.mxu3 %v2286_v13  ;;  %v2043_v13 = vld [vmem:[#allocation11 + $0x150] sm:$0xff]  ;;  %2596 = vmatpush.msra.mxu1 %v2382_v3  ;;  %v2158_v16 = vld [vmem:[#allocation11 + $0x4e8] sm:$0xff] }
 0x21b   :  { %2537 = vmatpush.msrb.mxu2 %v2137_v5  ;;  %v2376_v5 = vld [vmem:[#allocation11 + $0xbb8] sm:$0xff]  ;;  %v2318_v3 = vld [vmem:[#allocation11 + $0x9e8] sm:$0xff] }
 0x21c   :  { %2480 = vmatpush.msra.mxu3 %v2281_v9  ;;  %v2371_v9 = vld [vmem:[#allocation11 + $0xb90] sm:$0xff]  ;;  %2497 = vmatpush.msrb.mxu0 %v2376_v5  ;;  %v2153_v5 = vld [vmem:[#allocation11 + $0x4c0] sm:$0xff] }
 0x21d   :  { %2538 = vmatpush.msrb.mxu2 %v2132_v7  ;;  %v2377_v7 = vld [vmem:[#allocation11 + $0xbc0] sm:$0xff] }
 0x21e   :  { %2481 = vmatpush.msra.mxu3 %v2276_v12  ;;  %v2182_v12 = vld [vmem:[#allocation11 + $0x5a8] sm:$0xff]  ;;  %2597 = vmatpush.msra.mxu1 %v2377_v7  ;;  %v2313_v7 = vld [vmem:[#allocation11 + $0x9c0] sm:$0xff] }
 0x21f   :  { %2539 = vmatpush.msrb.mxu2 %v2127_v11  ;;  %v2372_v11 = vld [vmem:[#allocation11 + $0xb98] sm:$0xff]  ;;  %2498 = vmatpush.msrb.mxu0 %v2371_v9 }
 0x220   :  { %2482 = vmatpush.msra.mxu3 %v2271_v60  ;;  %v2177_v60 = vld [vmem:[#allocation11 + $0x580] sm:$0xff]  ;;  %2598 = vmatpush.msra.mxu1 %v2372_v11  ;;  %v2148_v9 = vld [vmem:[#allocation11 + $0x498] sm:$0xff] }
 0x221   :  { %2540 = vmatpush.msrb.mxu2 %v2122_v15  ;;  %v2033_v15 = vld [vmem:[#allocation11 + $0x100] sm:$0xff]  ;;  %2499 = vmatpush.msrb.mxu0 %v2366_v59  ;;  %v2308_v11 = vld [vmem:[#allocation11 + $0x998] sm:$0xff]  ;;  %v2143_v59 = vld [vmem:[#allocation11 + $0x470] sm:$0xff] }
 0x222   :  { %2483 = vmatpush.msra.mxu3 %v2266_v26  ;;  %v2362_v26 = vld [vmem:[#allocation11 + $0xb48] sm:$0xff]  ;;  %2599 = vmatpush.msra.mxu1 %v2367_v17  ;;  %v2303_v17 = vld [vmem:[#allocation11 + $0x970] sm:$0xff] }
 0x223   :  { %2541 = vmatpush.msrb.mxu2 %v2117_v18  ;;  %v2361_v18 = vld [vmem:[#allocation11 + $0xb40] sm:$0xff] }
 0x224   :  { %2484 = vmatpush.msra.mxu3 %v2261_v21  ;;  %v2356_v21 = vld [vmem:[#allocation11 + $0xb18] sm:$0xff]  ;;  %2500 = vmatpush.msrb.mxu0 %v2361_v18  ;;  %v2363_v18 = vld [vmem:[#allocation11 + $0xb50] sm:$0xff] }
 0x225   :  { %2542 = vmatpush.msrb.mxu2 %v2112_v20  ;;  %v2172_v20 = vld [vmem:[#allocation11 + $0x558] sm:$0xff]  ;;  %2600 = vmatpush.msra.mxu1 %v2362_v26  ;;  %v2298_v26 = vld [vmem:[#allocation11 + $0x948] sm:$0xff] }
 0x226   :  { %2485 = vmatpush.msra.mxu3 %v2256_v25  ;;  %v1773_v25 = vpop.f32.mrf.mxu0  ;;  %2501 = vmatpush.msrb.mxu0 %v2356_v21  ;;  %v2358_v21 = vld [vmem:[#allocation11 + $0xb28] sm:$0xff] }
 0x227   :  { %2543 = vmatpush.msrb.mxu2 %v2107_v23  ;;  %v2023_v23 = vld [vmem:[#allocation11 + $0xb0] sm:$0xff]  ;;  %2601 = vmatpush.msra.mxu1 %v2357_v24  ;;  %v2128_v24 = vld [vmem:[#allocation11 + $0x3f8] sm:$0xff] }
 0x228   :  { %2486 = vmatpush.msra.mxu3 %v2251_v29  ;;  %v2351_v29 = vld [vmem:[#allocation11 + $0xaf0] sm:$0xff] }
 0x229   :  { %2544 = vmatpush.msrb.mxu2 %v2102_v28  ;;  %v2167_v28 = vld [vmem:[#allocation11 + $0x530] sm:$0xff]  ;;  %2502 = vmatpush.msrb.mxu0 %v2351_v29  ;;  %v2288_v29 = vld [vmem:[#allocation11 + $0x8f8] sm:$0xff] }
 0x22a   :  { %2487 = vmatpush.msra.mxu3 %v2246_v54  ;;  %v2162_v54 = vld [vmem:[#allocation11 + $0x508] sm:$0xff] }
 0x22b   :  { %2545 = vmatpush.msrb.mxu2 %v2097_v31  ;;  %v2352_v31 = vld [vmem:[#allocation11 + $0xaf8] sm:$0xff] }
 0x22c   :  { %v1753_v41 = vpop.f32.mrf.mxu3  ;;  %2488 = vmatpush.msra.mxu3 %v2241_v36  ;;  %v1774_v36 = vadd.f32 %v1773_v25, %v1389_v22  ;;  %2602 = vmatpush.msra.mxu1 %v2352_v31  ;;  %v2292_v22 = vld [vmem:[#allocation11 + $0x918] sm:$0xff]  ;;  %v2353_v25 = vld [vmem:[#allocation11 + $0xb00] sm:$0xff] }
 0x22d   :  { %2546 = vmatpush.msrb.mxu2 %v2092_v35  ;;  %v1754_v44 = vadd.f32 %v1753_v41, %v1734_v40  ;;  %v2346_v35 = vld [vmem:[#allocation11 + $0xac8] sm:$0xff]  ;;  %v2008_v41 = vld [vmem:[#allocation11 + $0x38] sm:$0xff] }
 0x22e   :  { %2553 = vmatpush.msrb.mxu3 %v2237_v39  ;;  %v2341_v39 = vld [vmem:[#allocation11 + $0xaa0] sm:$0xff]  ;;  %v1794_v40 = vadd.f32 %v1793_v33, %v1774_v36  ;;  %2503 = vmatpush.msrb.mxu0 %v2346_v35  ;;  %v2348_v31 = vld [vmem:[#allocation11 + $0xad8] sm:$0xff]  ;;  %v2282_v33 = vld [vmem:[#allocation11 + $0x8c8] sm:$0xff] }
 0x22f   :  { %2547 = vmatpush.msrb.mxu2 %v2087_v38  ;;  %v4938_v14 = vmax.f32 %v1754_v44, 0.0  ;;  %2603 = vmatpush.msra.mxu1 %v2347_v37  ;;  %v2118_v35 = vld [vmem:[#allocation11 + $0x3a8] sm:$0xff]  ;;  %v2343_v36 = vld [vmem:[#allocation11 + $0xab0] sm:$0xff] }
 0x230   :  { %2554 = vmatpush.msrb.mxu3 %v2232_v43  ;;  %v2336_v43 = vld [vmem:[#allocation11 + $0xa78] sm:$0xff]  ;;  %2504 = vmatpush.msrb.mxu0 %v2341_v39  ;;  %v2278_v37 = vld [vmem:[#allocation11 + $0x8a8] sm:$0xff] }
 0x231   :  { %2548 = vmatpush.msrb.mxu2 %v2082_v42  ;;  %v1813_v38 = vpop.f32.mrf.mxu2  ;;  %v2342_v42 = vld [vmem:[#allocation11 + $0xaa8] sm:$0xff] }
 0x232   :  { %2469 = vmatmul.f32.vlgmr.msra.gmra.mxu2 %v4938_v14  ;;  %2555 = vmatpush.msrb.mxu3 %v2227_v45  ;;  %v1814_v44 = vadd.f32 %v1813_v38, %v1794_v40  ;;  %v2003_v45 = vld [vmem:[#allocation11 + $0x10] sm:$0xff]  ;;  %v2113_v38 = vld [vmem:[#allocation11 + $0x380] sm:$0xff]  ;;  %v2338_v39 = vld [vmem:[#allocation11 + $0xa88] sm:$0xff] }
 0x233   :  { %2613 = vmatpush.msra.mxu2 %v2078_v46  ;;  %v2337_v46 = vld [vmem:[#allocation11 + $0xa80] sm:$0xff]  ;;  %2604 = vmatpush.msra.mxu1 %v2342_v42  ;;  %v2272_v40 = vld [vmem:[#allocation11 + $0x878] sm:$0xff] }
 0x234   :  { %2556 = vmatpush.msrb.mxu3 %v2222_v47  ;;  %2505 = vmatpush.msrb.mxu0 %v2336_v43  ;;  %v2108_v42 = vld [vmem:[#allocation11 + $0x358] sm:$0xff]  ;;  %v2333_v43 = vld [vmem:[#allocation11 + $0xa60] sm:$0xff] }
 0x235   :  { %2614 = vmatpush.msra.mxu2 %v2073_v48  ;;  %2605 = vmatpush.msra.mxu1 %v2337_v46  ;;  %v2103_v46 = vld [vmem:[#allocation11 + $0x330] sm:$0xff] }
 0x236   :  { %2557 = vmatpush.msrb.mxu3 %v2217_v49  ;;  %v2398_v49 = vld [vmem:[#allocation11 + $0xc68] sm:$0xff] }
 0x237   :  { %2615 = vmatpush.msra.mxu2 %v2068_v50  ;;  %v2331_v50 = vld [vmem:[#allocation11 + $0xa50] sm:$0xff] }
 0x238   :  { %2558 = vmatpush.msrb.mxu3 %v2212_v51  ;;  %v2332_v51 = vld [vmem:[#allocation11 + $0xa58] sm:$0xff]  ;;  %2506 = vmatpush.msrb.mxu0 %v2331_v50  ;;  %v2098_v50 = vld [vmem:[#allocation11 + $0x308] sm:$0xff] }
 0x239   :  { %2616 = vmatpush.msra.mxu2 %v2063_v52  ;;  %v1853_v52 = vpop.f32.mrf.mxu0  ;;  %2606 = vmatpush.msra.mxu1 %v2332_v51  ;;  %v2323_v51 = vld [vmem:[#allocation11 + $0xa10] sm:$0xff] }
 0x23a   :  { %2549 = vmatmul.f32.vlgmr.msrb.gmra.mxu2 %v4932_v27  ;;  %2559 = vmatpush.msrb.mxu3 %v2207_v56  ;;  %v2326_v56 = vld [vmem:[#allocation11 + $0xa28] sm:$0xff] }
 0x23b   :  { %2617 = vmatpush.msra.mxu2 %v2058_v61  ;;  %v1873_v61 = vpop.f32.mrf.mxu1  ;;  %2507 = vmatpush.msrb.mxu0 %v2326_v56  ;;  %v2258_v56 = vld [vmem:[#allocation11 + $0x808] sm:$0xff] }
 0x23c   :  { %2560 = vmatpush.msrb.mxu3 %v2202_v63  ;;  %v2388_v63 = vld [vmem:[#allocation11 + $0xc18] sm:$0xff]  ;;  %2607 = vmatpush.msra.mxu1 %v2327_v57  ;;  %v2314_v57 = vld [vmem:[#allocation11 + $0x9c8] sm:$0xff] }
 0x23d   :  { %2618 = vmatpush.msra.mxu2 %v2053_v34  ;;  %v2322_v34 = vld [vmem:[#allocation11 + $0xa08] sm:$0xff]  ;;  %2508 = vmatpush.msrb.mxu0 %v2321_v0  ;;  %v2309_v0 = vld [vmem:[#allocation11 + $0x9a0] sm:$0xff] }
 0x23e   :  { %2561 = vmatpush.msrb.mxu3 %v2197_v2  ;;  %2608 = vmatpush.msra.mxu1 %v2322_v34  ;;  %v2247_v34 = vld [vmem:[#allocation11 + $0x7b0] sm:$0xff] }
 0x23f   :  { %2619 = vmatpush.msra.mxu2 %v2048_v32  ;;  %v2383_v32 = vld [vmem:[#allocation11 + $0xbf0] sm:$0xff]  ;;  %2573 = vmatpush.msra.mxu0 %v2317_v1 }
 0x240   :  { %2562 = vmatpush.msrb.mxu3 %v2192_v4  ;;  %v2312_v4 = vld [vmem:[#allocation11 + $0x9b8] sm:$0xff]  ;;  %2673 = vmatpush.msrb.mxu1 %v2318_v3  ;;  %v2083_v1 = vld [vmem:[#allocation11 + $0x290] sm:$0xff] }
 0x241   :  { %2620 = vmatpush.msra.mxu2 %v2043_v13  ;;  %v2378_v13 = vld [vmem:[#allocation11 + $0xbc8] sm:$0xff]  ;;  %2574 = vmatpush.msra.mxu0 %v2312_v4  ;;  %v2079_v3 = vld [vmem:[#allocation11 + $0x270] sm:$0xff] }
 0x242   :  { %2563 = vmatpush.msrb.mxu3 %v2187_v8  ;;  %v2307_v8 = vld [vmem:[#allocation11 + $0x990] sm:$0xff]  ;;  %2674 = vmatpush.msrb.mxu1 %v2313_v7  ;;  %v2242_v4 = vld [vmem:[#allocation11 + $0x788] sm:$0xff] }
 0x243   :  { %2621 = vmatpush.msra.mxu2 %v2038_v10  ;;  %v2373_v10 = vld [vmem:[#allocation11 + $0xba0] sm:$0xff]  ;;  %2575 = vmatpush.msra.mxu0 %v2307_v8  ;;  %v2074_v7 = vld [vmem:[#allocation11 + $0x248] sm:$0xff] }
 0x244   :  { %2564 = vmatpush.msrb.mxu3 %v2182_v12  ;;  %v2302_v12 = vld [vmem:[#allocation11 + $0x968] sm:$0xff]  ;;  %2675 = vmatpush.msrb.mxu1 %v2308_v11  ;;  %v2064_v11 = vld [vmem:[#allocation11 + $0x1f8] sm:$0xff] }
 0x245   :  { %2622 = vmatpush.msra.mxu2 %v2033_v15  ;;  %v2368_v15 = vld [vmem:[#allocation11 + $0xb78] sm:$0xff]  ;;  %2576 = vmatpush.msra.mxu0 %v2302_v12  ;;  %v2294_v8 = vld [vmem:[#allocation11 + $0x928] sm:$0xff] }
 0x246   :  { %2565 = vmatpush.msrb.mxu3 %v2177_v60  ;;  %v2138_v60 = vld [vmem:[#allocation11 + $0x448] sm:$0xff]  ;;  %2676 = vmatpush.msrb.mxu1 %v2303_v17  ;;  %v4366_v12 = vld [vmem:[#allocation10] sm:$0x1f] }
 0x247   :  { %2623 = vmatpush.msra.mxu2 %v2028_v19  ;;  %v2297_v19 = vld [vmem:[#allocation11 + $0x940] sm:$0xff] }
 0x248   :  { %2566 = vmatpush.msrb.mxu3 %v2172_v20  ;;  %v2133_v20 = vld [vmem:[#allocation11 + $0x420] sm:$0xff]  ;;  %2577 = vmatpush.msra.mxu0 %v2297_v19 }
 0x249   :  { %2624 = vmatpush.msra.mxu2 %v2023_v23  ;;  %v2293_v23 = vld [vmem:[#allocation11 + $0x920] sm:$0xff]  ;;  %2677 = vmatpush.msrb.mxu1 %v2298_v26  ;;  %v2054_v26 = vld [vmem:[#allocation11 + $0x1a8] sm:$0xff] }
 0x24a   :  { %2567 = vmatpush.msrb.mxu3 %v2167_v28  ;;  %v2287_v28 = vld [vmem:[#allocation11 + $0x8f0] sm:$0xff]  ;;  %2578 = vmatpush.msra.mxu0 %v2292_v22  ;;  %v2049_v22 = vld [vmem:[#allocation11 + $0x180] sm:$0xff] }
 0x24b   :  { %2625 = vmatpush.msra.mxu2 %v2018_v30  ;;  %v2123_v30 = vld [vmem:[#allocation11 + $0x3d0] sm:$0xff]  ;;  %2678 = vmatpush.msrb.mxu1 %v2293_v23 }
 0x24c   :  { %2568 = vmatpush.msrb.mxu3 %v2162_v54  ;;  %v2283_v54 = vld [vmem:[#allocation11 + $0x8d0] sm:$0xff]  ;;  %2579 = vmatpush.msra.mxu0 %v2287_v28  ;;  %v2264_v28 = vld [vmem:[#allocation11 + $0x838] sm:$0xff] }
 0x24d   :  { %2626 = vmatpush.msra.mxu2 %v2013_v58  ;;  %2679 = vmatpush.msrb.mxu1 %v2288_v29  ;;  %v2277_v58 = vld [vmem:[#allocation11 + $0x8a0] sm:$0xff]  ;;  %v1933_v29 = vpop.f32.mrf.mxu0 }
 0x24e   :  { %v1833_v47 = vpop.f32.mrf.mxu3  ;;  %2580 = vmatpush.msra.mxu0 %v2282_v33  ;;  %v2259_v33 = vld [vmem:[#allocation11 + $0x810] sm:$0xff] }
 0x24f   :  { %2627 = vmatpush.msra.mxu2 %v2008_v41  ;;  %v1834_v48 = vadd.f32 %v1833_v47, %v1814_v44  ;;  %2680 = vmatpush.msrb.mxu1 %v2283_v54  ;;  %v2273_v41 = vld [vmem:[#allocation11 + $0x880] sm:$0xff]  ;;  %v2267_v44 = vld [vmem:[#allocation11 + $0x850] sm:$0xff]  ;;  %v2328_v47 = vld [vmem:[#allocation11 + $0xa38] sm:$0xff] }
 0x250   :  { %2581 = vmatpush.msra.mxu0 %v2277_v58  ;;  %v2034_v54 = vld [vmem:[#allocation11 + $0x108] sm:$0xff]  ;;  %v2029_v58 = vld [vmem:[#allocation11 + $0xe0] sm:$0xff] }
 0x251   :  { %2628 = vmatpush.msra.mxu2 %v2003_v45  ;;  %v1854_v53 = vadd.f32 %v1853_v52, %v1834_v48  ;;  %2681 = vmatpush.msrb.mxu1 %v2278_v37  ;;  %v2268_v45 = vld [vmem:[#allocation11 + $0x858] sm:$0xff]  ;;  %v2262_v48 = vld [vmem:[#allocation11 + $0x828] sm:$0xff]  ;;  %v2319_v52 = vld [vmem:[#allocation11 + $0x9f0] sm:$0xff] }
 0x252   :  { %2629 = vmatmul.f32.vlgmr.msra.gmra.mxu2 %v4927_v6  ;;  %2582 = vmatpush.msra.mxu0 %v2272_v40  ;;  %v1893_v17 = vpop.f32.mrf.mxu2  ;;  %v2244_v40 = vld [vmem:[#allocation11 + $0x798] sm:$0xff] }
 0x253   :  { %2693 = vmatpush.msrb.mxu2 %v2398_v49  ;;  %v1874_v62 = vadd.f32 %v1873_v61, %v1854_v53  ;;  %2682 = vmatpush.msrb.mxu1 %v2273_v41  ;;  %v2263_v49 = vld [vmem:[#allocation11 + $0x830] sm:$0xff]  ;;  %v2257_v53 = vld [vmem:[#allocation11 + $0x800] sm:$0xff]  ;;  %v2252_v61 = vld [vmem:[#allocation11 + $0x7d8] sm:$0xff] }
 0x254   :  { %2583 = vmatpush.msra.mxu0 %v2267_v44 }
 0x255   :  { %2694 = vmatpush.msrb.mxu2 %v2393_v55  ;;  %v4944_v2 = vmax.f32 %v1874_v62, 0.0  ;;  %2683 = vmatpush.msrb.mxu1 %v2268_v45  ;;  %v2093_v55 = vld [vmem:[#allocation11 + $0x2e0] sm:$0xff]  ;;  %v2088_v62 = vld [vmem:[#allocation11 + $0x2b8] sm:$0xff]  ;;  %v2014_v45 = vld [vmem:[#allocation11 + $0x68] sm:$0xff] }
 0x256   :  { %2584 = vmatpush.msra.mxu0 %v2262_v48  ;;  %v2238_v48 = vld [vmem:[#allocation11 + $0x768] sm:$0xff] }
 0x257   :  { %2695 = vmatpush.msrb.mxu2 %v2388_v63  ;;  %2489 = vmatmul.f32.vlgmr.msra.gmra.mxu3 %v4944_v2  ;;  %v2253_v63 = vld [vmem:[#allocation11 + $0x7e0] sm:$0xff] }
 0x258   :  { %2633 = vmatpush.msra.mxu3 %v2158_v16  ;;  %2684 = vmatpush.msrb.mxu1 %v2263_v49  ;;  %v2248_v16 = vld [vmem:[#allocation11 + $0x7b8] sm:$0xff]  ;;  %v2239_v49 = vld [vmem:[#allocation11 + $0x770] sm:$0xff] }
 0x259   :  { %2696 = vmatpush.msrb.mxu2 %v2383_v32  ;;  %2585 = vmatpush.msra.mxu0 %v2257_v53  ;;  %v2304_v32 = vld [vmem:[#allocation11 + $0x978] sm:$0xff]  ;;  %v2234_v53 = vld [vmem:[#allocation11 + $0x748] sm:$0xff] }
 0x25a   :  { %2634 = vmatpush.msra.mxu3 %v2153_v5  ;;  %2685 = vmatpush.msrb.mxu1 %v2258_v56  ;;  %v2299_v5 = vld [vmem:[#allocation11 + $0x950] sm:$0xff]  ;;  %v2004_v56 = vld [vmem:[#allocation11 + $0x18] sm:$0xff] }
 0x25b   :  { %2697 = vmatpush.msrb.mxu2 %v2378_v13  ;;  %2586 = vmatpush.msra.mxu0 %v2252_v61  ;;  %v2243_v13 = vld [vmem:[#allocation11 + $0x790] sm:$0xff]  ;;  %v2229_v61 = vld [vmem:[#allocation11 + $0x720] sm:$0xff] }
 0x25c   :  { %2635 = vmatpush.msra.mxu3 %v2148_v9  ;;  %2686 = vmatpush.msrb.mxu1 %v2253_v63  ;;  %v2069_v9 = vld [vmem:[#allocation11 + $0x220] sm:$0xff]  ;;  %v2230_v63 = vld [vmem:[#allocation11 + $0x728] sm:$0xff] }
 0x25d   :  { %2698 = vmatpush.msrb.mxu2 %v2373_v10  ;;  %2587 = vmatpush.msra.mxu0 %v2247_v34  ;;  %v2289_v10 = vld [vmem:[#allocation11 + $0x900] sm:$0xff]  ;;  %v2224_v34 = vld [vmem:[#allocation11 + $0x6f8] sm:$0xff] }
 0x25e   :  { %2636 = vmatpush.msra.mxu3 %v2143_v59  ;;  %2687 = vmatpush.msrb.mxu1 %v2248_v16  ;;  %v1390_v59 = vperm.slane %v4366_v12, 4  ;;  %v2225_v16 = vld [vmem:[#allocation11 + $0x700] sm:$0xff]  ;;  %v2379_v12 = vld [vmem:[#allocation11 + $0xbd0] sm:$0xff] }
 0x25f   :  { %2699 = vmatpush.msrb.mxu2 %v2368_v15  ;;  %2569 = vmatmul.f32.vlgmr.msrb.gmra.mxu3 %v4938_v14  ;;  %v2284_v15 = vld [vmem:[#allocation11 + $0x8d8] sm:$0xff] }
 0x260   :  { %2637 = vmatpush.msra.mxu3 %v2138_v60  ;;  %2588 = vmatpush.msra.mxu0 %v2242_v4  ;;  %v2059_v60 = vld [vmem:[#allocation11 + $0x1d0] sm:$0xff]  ;;  %v2389_v4 = vld [vmem:[#allocation11 + $0xc20] sm:$0xff] }
 0x261   :  { %2700 = vmatpush.msrb.mxu2 %v2363_v18  ;;  %2688 = vmatpush.msrb.mxu1 %v2243_v13  ;;  %v2279_v18 = vld [vmem:[#allocation11 + $0x8b0] sm:$0xff]  ;;  %v2213_v13 = vld [vmem:[#allocation11 + $0x6a0] sm:$0xff] }
 0x262   :  { %2638 = vmatpush.msra.mxu3 %v2133_v20  ;;  %v1894_v20 = vadd.f32 %v1893_v17, %v1390_v59  ;;  %v2210_v59 = vld [vmem:[#allocation11 + $0x688] sm:$0xff]  ;;  %v2204_v17 = vld [vmem:[#allocation11 + $0x658] sm:$0xff] }
 0x263   :  { %2701 = vmatpush.msrb.mxu2 %v2358_v21  ;;  %v2274_v21 = vld [vmem:[#allocation11 + $0x888] sm:$0xff] }
 0x264   :  { %2639 = vmatpush.msra.mxu3 %v2128_v24  ;;  %v2269_v24 = vld [vmem:[#allocation11 + $0x860] sm:$0xff] }
 0x265   :  { %2702 = vmatpush.msrb.mxu2 %v2353_v25  ;;  %v2044_v25 = vld [vmem:[#allocation11 + $0x158] sm:$0xff] }
 0x266   :  { %2640 = vmatpush.msra.mxu3 %v2123_v30  ;;  %v2039_v30 = vld [vmem:[#allocation11 + $0x130] sm:$0xff] }
 0x267   :  { %2703 = vmatpush.msrb.mxu2 %v2348_v31 }
 0x268   :  { %2641 = vmatpush.msra.mxu3 %v2118_v35  ;;  %v2254_v35 = vld [vmem:[#allocation11 + $0x7e8] sm:$0xff] }
 0x269   :  { %2704 = vmatpush.msrb.mxu2 %v2343_v36  ;;  %v1953_v36 = vpop.f32.mrf.mxu1 }
 0x26a   :  { %2642 = vmatpush.msra.mxu3 %v2113_v38  ;;  %v2249_v38 = vld [vmem:[#allocation11 + $0x7c0] sm:$0xff] }
 0x26b   :  { %2705 = vmatpush.msrb.mxu2 %v2338_v39  ;;  %v2024_v39 = vld [vmem:[#allocation11 + $0xb8] sm:$0xff] }
 0x26c   :  { %2643 = vmatpush.msra.mxu3 %v2108_v42  ;;  %v2019_v42 = vld [vmem:[#allocation11 + $0x90] sm:$0xff] }
 0x26d   :  { %2706 = vmatpush.msrb.mxu2 %v2333_v43 }
 0x26e   :  { %2644 = vmatpush.msra.mxu3 %v2103_v46 }
 0x26f   :  { %2707 = vmatpush.msrb.mxu2 %v2328_v47  ;;  %v1913_v19 = vpop.f32.mrf.mxu3 }
 0x270   :  { %2645 = vmatpush.msra.mxu3 %v2098_v50  ;;  %v1914_v23 = vadd.f32 %v1913_v19, %v1894_v20  ;;  %v2240_v50 = vld [vmem:[#allocation11 + $0x778] sm:$0xff]  ;;  %v2198_v19 = vld [vmem:[#allocation11 + $0x628] sm:$0xff]  ;;  %v2369_v20 = vld [vmem:[#allocation11 + $0xb80] sm:$0xff] }
 0x271   :  { %2708 = vmatpush.msrb.mxu2 %v2323_v51  ;;  %v2009_v51 = vld [vmem:[#allocation11 + $0x40] sm:$0xff] }
 0x272   :  { %2646 = vmatpush.msra.mxu3 %v2093_v55  ;;  %v1934_v31 = vadd.f32 %v1933_v29, %v1914_v23  ;;  %v2235_v55 = vld [vmem:[#allocation11 + $0x750] sm:$0xff]  ;;  %v2194_v23 = vld [vmem:[#allocation11 + $0x608] sm:$0xff]  ;;  %v2189_v29 = vld [vmem:[#allocation11 + $0x5e0] sm:$0xff] }
 0x273   :  { %2773 = vmatpush.msra.mxu2 %v2319_v52  ;;  %v1973_v41 = vpop.f32.mrf.mxu2  ;;  %v2233_v52 = vld [vmem:[#allocation11 + $0x740] sm:$0xff] }
 0x274   :  { %2647 = vmatpush.msra.mxu3 %v2088_v62  ;;  %v1954_v37 = vadd.f32 %v1953_v36, %v1934_v31  ;;  %v2399_v62 = vld [vmem:[#allocation11 + $0xc70] sm:$0xff]  ;;  %v2190_v31 = vld [vmem:[#allocation11 + $0x5e8] sm:$0xff]  ;;  %v2185_v36 = vld [vmem:[#allocation11 + $0x5c0] sm:$0xff] }
 0x275   :  { %2774 = vmatpush.msra.mxu2 %v2314_v57  ;;  %v2228_v57 = vld [vmem:[#allocation11 + $0x718] sm:$0xff] }
 0x276   :  { %2648 = vmatpush.msra.mxu3 %v2083_v1  ;;  %v1974_v43 = vadd.f32 %v1973_v41, %v1954_v37  ;;  %v2394_v1 = vld [vmem:[#allocation11 + $0xc48] sm:$0xff]  ;;  %v2179_v37 = vld [vmem:[#allocation11 + $0x590] sm:$0xff] }
 0x277   :  { %2775 = vmatpush.msra.mxu2 %v2309_v0  ;;  %2649 = vmatmul.f32.vlgmr.msra.gmra.mxu3 %v4932_v27  ;;  %v2223_v0 = vld [vmem:[#allocation11 + $0x6f0] sm:$0xff]  ;;  %v2174_v41 = vld [vmem:[#allocation11 + $0x568] sm:$0xff] }
 0x278   :  { %2713 = vmatpush.msrb.mxu3 %v2079_v3  ;;  %v2219_v3 = vld [vmem:[#allocation11 + $0x6d0] sm:$0xff] }
 0x279   :  { %2776 = vmatpush.msra.mxu2 %v2304_v32  ;;  %v2218_v32 = vld [vmem:[#allocation11 + $0x6c8] sm:$0xff] }
 0x27a   :  { %2714 = vmatpush.msrb.mxu3 %v2074_v7  ;;  %v2214_v7 = vld [vmem:[#allocation11 + $0x6a8] sm:$0xff] }
 0x27b   :  { %2777 = vmatpush.msra.mxu2 %v2299_v5  ;;  %v2220_v5 = vld [vmem:[#allocation11 + $0x6d8] sm:$0xff] }
 0x27c   :  { %2715 = vmatpush.msrb.mxu3 %v2069_v9  ;;  %v2215_v9 = vld [vmem:[#allocation11 + $0x6b0] sm:$0xff] }
 0x27d   :  { %2778 = vmatpush.msra.mxu2 %v2294_v8  ;;  %v2384_v8 = vld [vmem:[#allocation11 + $0xbf8] sm:$0xff] }
 0x27e   :  { %2716 = vmatpush.msrb.mxu3 %v2064_v11  ;;  %v2209_v11 = vld [vmem:[#allocation11 + $0x680] sm:$0xff] }
 0x27f   :  { %2779 = vmatpush.msra.mxu2 %v2289_v10  ;;  %v2208_v10 = vld [vmem:[#allocation11 + $0x678] sm:$0xff] }
 0x280   :  { %2717 = vmatpush.msrb.mxu3 %v2059_v60  ;;  %v2374_v60 = vld [vmem:[#allocation11 + $0xba8] sm:$0xff] }
 0x281   :  { %2780 = vmatpush.msra.mxu2 %v2284_v15  ;;  %v2203_v15 = vld [vmem:[#allocation11 + $0x650] sm:$0xff] }
 0x282   :  { %2718 = vmatpush.msrb.mxu3 %v2054_v26  ;;  %v2199_v26 = vld [vmem:[#allocation11 + $0x630] sm:$0xff] }
 0x283   :  { %2781 = vmatpush.msra.mxu2 %v2279_v18  ;;  %v2205_v18 = vld [vmem:[#allocation11 + $0x660] sm:$0xff] }
 0x284   :  { %2719 = vmatpush.msrb.mxu3 %v2049_v22  ;;  %v2193_v22 = vld [vmem:[#allocation11 + $0x600] sm:$0xff] }
 0x285   :  { %2782 = vmatpush.msra.mxu2 %v2274_v21  ;;  %v2200_v21 = vld [vmem:[#allocation11 + $0x638] sm:$0xff] }
 0x286   :  { %2720 = vmatpush.msrb.mxu3 %v2044_v25  ;;  %v2195_v25 = vld [vmem:[#allocation11 + $0x610] sm:$0xff] }
 0x287   :  { %2783 = vmatpush.msra.mxu2 %v2269_v24  ;;  %v2364_v24 = vld [vmem:[#allocation11 + $0xb58] sm:$0xff] }
 0x288   :  { %2721 = vmatpush.msrb.mxu3 %v2039_v30  ;;  %v2359_v30 = vld [vmem:[#allocation11 + $0xb30] sm:$0xff] }
 0x289   :  { %2784 = vmatpush.msra.mxu2 %v2264_v28  ;;  %v2188_v28 = vld [vmem:[#allocation11 + $0x5d8] sm:$0xff] }
 0x28a   :  { %2722 = vmatpush.msrb.mxu3 %v2034_v54  ;;  %v2184_v54 = vld [vmem:[#allocation11 + $0x5b8] sm:$0xff] }
 0x28b   :  { %2785 = vmatpush.msra.mxu2 %v2259_v33  ;;  %v2183_v33 = vld [vmem:[#allocation11 + $0x5b0] sm:$0xff] }
 0x28c   :  { %2723 = vmatpush.msrb.mxu3 %v2029_v58  ;;  %v2178_v58 = vld [vmem:[#allocation11 + $0x588] sm:$0xff] }
 0x28d   :  { %2786 = vmatpush.msra.mxu2 %v2254_v35  ;;  %v2354_v35 = vld [vmem:[#allocation11 + $0xb08] sm:$0xff] }
 0x28e   :  { %2724 = vmatpush.msrb.mxu3 %v2024_v39  ;;  %v2180_v39 = vld [vmem:[#allocation11 + $0x598] sm:$0xff] }
 0x28f   :  { %2787 = vmatpush.msra.mxu2 %v2249_v38  ;;  %v1993_v44 = vpop.f32.mrf.mxu3  ;;  %v2349_v38 = vld [vmem:[#allocation11 + $0xae0] sm:$0xff] }
 0x290   :  { %v1994_v46 = vadd.f32 %v1993_v44, %v1974_v43  ;;  %2725 = vmatpush.msrb.mxu3 %v2019_v42  ;;  %v2344_v42 = vld [vmem:[#allocation11 + $0xab8] sm:$0xff]  ;;  %v2175_v43 = vld [vmem:[#allocation11 + $0x570] sm:$0xff] }
 0x291   :  { %2788 = vmatpush.msra.mxu2 %v2244_v40  ;;  %v2173_v40 = vld [vmem:[#allocation11 + $0x560] sm:$0xff]  ;;  %v2168_v44 = vld [vmem:[#allocation11 + $0x538] sm:$0xff] }
 0x292   :  { %v4949_v47 = vmax.f32 %v1994_v46, 0.0  ;;  %2726 = vmatpush.msrb.mxu3 %v2014_v45  ;;  %v2169_v45 = vld [vmem:[#allocation11 + $0x540] sm:$0xff]  ;;  %v2339_v46 = vld [vmem:[#allocation11 + $0xa90] sm:$0xff] }
 0x294   :  { %2509 = vmatmul.f32.vlgmr.msrb.gmra.mxu0 %v4949_v47  ;;  %2609 = vmatmul.f32.vlgmr.msra.gmra.mxu1 %v4949_v47 }
 0x295   :  { %2653 = vmatpush.msrb.mxu0 %v2238_v48  ;;  %2709 = vmatmul.f32.vlgmr.msrb.gmra.mxu2 %v4949_v47  ;;  %v2170_v48 = vld [vmem:[#allocation11 + $0x548] sm:$0xff] }
 0x296   :  { %2753 = vmatpush.msra.mxu1 %v2239_v49  ;;  %2853 = vmatpush.msrb.mxu2 %v2240_v50  ;;  %v2163_v49 = vld [vmem:[#allocation11 + $0x510] sm:$0xff]  ;;  %v2164_v50 = vld [vmem:[#allocation11 + $0x518] sm:$0xff] }
 0x297   :  { %2727 = vmatpush.msrb.mxu3 %v2009_v51  ;;  %2654 = vmatpush.msrb.mxu0 %v2233_v52  ;;  %v2334_v51 = vld [vmem:[#allocation11 + $0xa68] sm:$0xff]  ;;  %v2165_v52 = vld [vmem:[#allocation11 + $0x520] sm:$0xff] }
 0x298   :  { %2754 = vmatpush.msra.mxu1 %v2234_v53  ;;  %2854 = vmatpush.msrb.mxu2 %v2235_v55  ;;  %v2159_v53 = vld [vmem:[#allocation11 + $0x4f0] sm:$0xff]  ;;  %v2160_v55 = vld [vmem:[#allocation11 + $0x4f8] sm:$0xff] }
 0x299   :  { %2728 = vmatpush.msrb.mxu3 %v2004_v56  ;;  %2655 = vmatpush.msrb.mxu0 %v2228_v57  ;;  %v2329_v56 = vld [vmem:[#allocation11 + $0xa40] sm:$0xff]  ;;  %v2154_v57 = vld [vmem:[#allocation11 + $0x4c8] sm:$0xff] }
 0x29a   :  { %2729 = vmatmul.f32.vlgmr.msrb.gmra.mxu3 %v4927_v6  ;;  %2755 = vmatpush.msra.mxu1 %v2229_v61  ;;  %v2155_v61 = vld [vmem:[#allocation11 + $0x4d0] sm:$0xff] }
 0x29b   :  { %2793 = vmatpush.msra.mxu3 %v2399_v62  ;;  %2855 = vmatpush.msrb.mxu2 %v2230_v63  ;;  %v2324_v62 = vld [vmem:[#allocation11 + $0xa18] sm:$0xff]  ;;  %v2149_v63 = vld [vmem:[#allocation11 + $0x4a0] sm:$0xff] }
 0x29c   :  { %2656 = vmatpush.msrb.mxu0 %v2223_v0  ;;  %2756 = vmatpush.msra.mxu1 %v2224_v34  ;;  %v2150_v0 = vld [vmem:[#allocation11 + $0x4a8] sm:$0xff]  ;;  %v2320_v34 = vld [vmem:[#allocation11 + $0x9f8] sm:$0xff] }
 0x29d   :  { %2794 = vmatpush.msra.mxu3 %v2394_v1  ;;  %2856 = vmatpush.msrb.mxu2 %v2225_v16  ;;  %v2144_v1 = vld [vmem:[#allocation11 + $0x478] sm:$0xff]  ;;  %v2145_v16 = vld [vmem:[#allocation11 + $0x480] sm:$0xff] }
 0x29e   :  { %2589 = vmatmul.f32.vlgmr.msra.gmra.mxu0 %v4944_v2  ;;  %2689 = vmatmul.f32.vlgmr.msrb.gmra.mxu1 %v4944_v2 }
 0x29f   :  { %2657 = vmatpush.msrb.mxu0 %v2218_v32  ;;  %2757 = vmatpush.msra.mxu1 %v2219_v3  ;;  %v2315_v32 = vld [vmem:[#allocation11 + $0x9d0] sm:$0xff] }
 0x2a0   :  { %2789 = vmatmul.f32.vlgmr.msra.gmra.mxu2 %v4944_v2  ;;  %2795 = vmatpush.msra.mxu3 %v2389_v4  ;;  %v2139_v3 = vld [vmem:[#allocation11 + $0x450] sm:$0xff]  ;;  %v2140_v4 = vld [vmem:[#allocation11 + $0x458] sm:$0xff] }
 0x2a1   :  { %2857 = vmatpush.msrb.mxu2 %v2220_v5  ;;  %2658 = vmatpush.msrb.mxu0 %v2213_v13  ;;  %v2134_v5 = vld [vmem:[#allocation11 + $0x428] sm:$0xff]  ;;  %v2135_v13 = vld [vmem:[#allocation11 + $0x430] sm:$0xff] }
 0x2a2   :  { %2758 = vmatpush.msra.mxu1 %v2214_v7  ;;  %2796 = vmatpush.msra.mxu3 %v2384_v8  ;;  %v2305_v7 = vld [vmem:[#allocation11 + $0x980] sm:$0xff] }
 0x2a3   :  { %2858 = vmatpush.msrb.mxu2 %v2215_v9  ;;  %2659 = vmatpush.msrb.mxu0 %v2208_v10  ;;  %v2129_v8 = vld [vmem:[#allocation11 + $0x400] sm:$0xff]  ;;  %v2130_v9 = vld [vmem:[#allocation11 + $0x408] sm:$0xff]  ;;  %v2300_v10 = vld [vmem:[#allocation11 + $0x958] sm:$0xff] }
 0x2a4   :  { %2759 = vmatpush.msra.mxu1 %v2209_v11  ;;  %2797 = vmatpush.msra.mxu3 %v2379_v12  ;;  %v2124_v11 = vld [vmem:[#allocation11 + $0x3d8] sm:$0xff]  ;;  %v2125_v12 = vld [vmem:[#allocation11 + $0x3e0] sm:$0xff] }
 0x2a5   :  { %2859 = vmatpush.msrb.mxu2 %v2210_v59  ;;  %2660 = vmatpush.msrb.mxu0 %v2203_v15  ;;  %v2295_v59 = vld [vmem:[#allocation11 + $0x930] sm:$0xff] }
 0x2a6   :  { %2760 = vmatpush.msra.mxu1 %v2204_v17  ;;  %2798 = vmatpush.msra.mxu3 %v2374_v60  ;;  %v2119_v15 = vld [vmem:[#allocation11 + $0x3b0] sm:$0xff]  ;;  %v2120_v17 = vld [vmem:[#allocation11 + $0x3b8] sm:$0xff]  ;;  %v2290_v60 = vld [vmem:[#allocation11 + $0x908] sm:$0xff] }
 0x2a7   :  { %2860 = vmatpush.msrb.mxu2 %v2205_v18  ;;  %2661 = vmatpush.msrb.mxu0 %v2198_v19  ;;  %v2114_v18 = vld [vmem:[#allocation11 + $0x388] sm:$0xff]  ;;  %v2115_v19 = vld [vmem:[#allocation11 + $0x390] sm:$0xff] }
 0x2a8   :  { %2761 = vmatpush.msra.mxu1 %v2199_v26  ;;  %2799 = vmatpush.msra.mxu3 %v2369_v20  ;;  %v2285_v26 = vld [vmem:[#allocation11 + $0x8e0] sm:$0xff] }
 0x2a9   :  { %2861 = vmatpush.msrb.mxu2 %v2200_v21  ;;  %2662 = vmatpush.msrb.mxu0 %v2193_v22  ;;  %v2109_v20 = vld [vmem:[#allocation11 + $0x360] sm:$0xff]  ;;  %v2110_v21 = vld [vmem:[#allocation11 + $0x368] sm:$0xff]  ;;  %v2280_v22 = vld [vmem:[#allocation11 + $0x8b8] sm:$0xff] }
 0x2aa   :  { %2762 = vmatpush.msra.mxu1 %v2194_v23  ;;  %2800 = vmatpush.msra.mxu3 %v2364_v24  ;;  %v2104_v23 = vld [vmem:[#allocation11 + $0x338] sm:$0xff]  ;;  %v2105_v24 = vld [vmem:[#allocation11 + $0x340] sm:$0xff] }
 0x2ab   :  { %2862 = vmatpush.msrb.mxu2 %v2195_v25  ;;  %2663 = vmatpush.msrb.mxu0 %v2188_v28  ;;  %v2275_v25 = vld [vmem:[#allocation11 + $0x890] sm:$0xff] }
 0x2ac   :  { %2763 = vmatpush.msra.mxu1 %v2189_v29  ;;  %2801 = vmatpush.msra.mxu3 %v2359_v30  ;;  %v2099_v28 = vld [vmem:[#allocation11 + $0x310] sm:$0xff]  ;;  %v2100_v29 = vld [vmem:[#allocation11 + $0x318] sm:$0xff]  ;;  %v2270_v30 = vld [vmem:[#allocation11 + $0x868] sm:$0xff] }
 0x2ad   :  { %2863 = vmatpush.msrb.mxu2 %v2190_v31  ;;  %2664 = vmatpush.msrb.mxu0 %v2183_v33  ;;  %v2094_v31 = vld [vmem:[#allocation11 + $0x2e8] sm:$0xff]  ;;  %v2095_v33 = vld [vmem:[#allocation11 + $0x2f0] sm:$0xff] }
 0x2ae   :  { %2764 = vmatpush.msra.mxu1 %v2184_v54  ;;  %2802 = vmatpush.msra.mxu3 %v2354_v35  ;;  %v3042_v54 = vld [vmem:[#allocation14 + $0x3e0] sm:$0xff] }
 0x2af   :  { %2864 = vmatpush.msrb.mxu2 %v2185_v36  ;;  %2665 = vmatpush.msrb.mxu0 %v2178_v58  ;;  %v2265_v35 = vld [vmem:[#allocation11 + $0x840] sm:$0xff]  ;;  %v2090_v58 = vld [vmem:[#allocation11 + $0x2c8] sm:$0xff] }
 0x2b0   :  { %2765 = vmatpush.msra.mxu1 %v2179_v37  ;;  %2803 = vmatpush.msra.mxu3 %v2349_v38  ;;  %v2089_v36 = vld [vmem:[#allocation11 + $0x2c0] sm:$0xff]  ;;  %v2260_v38 = vld [vmem:[#allocation11 + $0x818] sm:$0xff] }
 0x2b1   :  { %2865 = vmatpush.msrb.mxu2 %v2180_v39  ;;  %2666 = vmatpush.msrb.mxu0 %v2173_v40  ;;  %v3038_v37 = vld [vmem:[#allocation14 + $0x3c0] sm:$0xff]  ;;  %v2084_v39 = vld [vmem:[#allocation11 + $0x298] sm:$0xff] }
 0x2b2   :  { %2766 = vmatpush.msra.mxu1 %v2174_v41  ;;  %2804 = vmatpush.msra.mxu3 %v2344_v42  ;;  %v2085_v40 = vld [vmem:[#allocation11 + $0x2a0] sm:$0xff]  ;;  %v2255_v42 = vld [vmem:[#allocation11 + $0x7f0] sm:$0xff] }
 0x2b3   :  { %2866 = vmatpush.msrb.mxu2 %v2175_v43  ;;  %2667 = vmatpush.msrb.mxu0 %v2168_v44  ;;  %v3034_v41 = vld [vmem:[#allocation14 + $0x3a0] sm:$0xff]  ;;  %v2080_v43 = vld [vmem:[#allocation11 + $0x278] sm:$0xff] }
 0x2b4   :  { %2767 = vmatpush.msra.mxu1 %v2169_v45  ;;  %2805 = vmatpush.msra.mxu3 %v2339_v46  ;;  %v3030_v44 = vld [vmem:[#allocation14 + $0x380] sm:$0xff]  ;;  %v2075_v46 = vld [vmem:[#allocation11 + $0x250] sm:$0xff] }
 0x2b5   :  { %2867 = vmatpush.msrb.mxu2 %v2170_v48  ;;  %2668 = vmatpush.msrb.mxu0 %v2163_v49  ;;  %v2250_v45 = vld [vmem:[#allocation11 + $0x7c8] sm:$0xff]  ;;  %v2245_v49 = vld [vmem:[#allocation11 + $0x7a0] sm:$0xff] }
 0x2b6   :  { %2768 = vmatpush.msra.mxu1 %v2164_v50  ;;  %2806 = vmatpush.msra.mxu3 %v2334_v51  ;;  %v3026_v48 = vld [vmem:[#allocation14 + $0x360] sm:$0xff] }
 0x2b7   :  { %2868 = vmatpush.msrb.mxu2 %v2165_v52  ;;  %2669 = vmatmul.f32.vlgmr.msrb.gmra.mxu0 %v4938_v14  ;;  %v2070_v50 = vld [vmem:[#allocation11 + $0x228] sm:$0xff]  ;;  %v2065_v52 = vld [vmem:[#allocation11 + $0x200] sm:$0xff] }
 0x2b8   :  { %2733 = vmatpush.msra.mxu0 %v2159_v53  ;;  %2769 = vmatmul.f32.vlgmr.msra.gmra.mxu1 %v4938_v14  ;;  %v3022_v51 = vld [vmem:[#allocation14 + $0x340] sm:$0xff] }
 0x2b9   :  { %2833 = vmatpush.msrb.mxu1 %v2160_v55  ;;  %2869 = vmatmul.f32.vlgmr.msrb.gmra.mxu2 %v4938_v14  ;;  %v2310_v14 = vld [vmem:[#allocation11 + $0x9a8] sm:$0xff]  ;;  %v2060_v55 = vld [vmem:[#allocation11 + $0x1d8] sm:$0xff] }
 0x2ba   :  { %2807 = vmatpush.msra.mxu3 %v2329_v56  ;;  %2734 = vmatpush.msra.mxu0 %v2154_v57  ;;  %v3018_v53 = vld [vmem:[#allocation14 + $0x320] sm:$0xff] }
 0x2bb   :  { %2834 = vmatpush.msrb.mxu1 %v2155_v61  ;;  %3268 = vmatpush.msra.mxu2 %v3042_v54  ;;  %v2978_v56 = vld [vmem:[#allocation14 + $0x1e0] sm:$0xff] }
 0x2bc   :  { %2808 = vmatpush.msra.mxu3 %v2324_v62  ;;  %2735 = vmatpush.msra.mxu0 %v2149_v63  ;;  %v3014_v57 = vld [vmem:[#allocation14 + $0x300] sm:$0xff] }
 0x2bd   :  { %2809 = vmatmul.f32.vlgmr.msra.gmra.mxu3 %v4949_v47  ;;  %2835 = vmatpush.msrb.mxu1 %v2150_v0  ;;  %v2974_v61 = vld [vmem:[#allocation14 + $0x1c0] sm:$0xff] }
 0x2be   :  { %2873 = vmatpush.msrb.mxu3 %v2320_v34  ;;  %2736 = vmatpush.msra.mxu0 %v2144_v1  ;;  %v3010_v62 = vld [vmem:[#allocation14 + $0x2e0] sm:$0xff] }
 0x2bf   :  { %2836 = vmatpush.msrb.mxu1 %v2145_v16  ;;  %3269 = vmatpush.msra.mxu2 %v3038_v37  ;;  %v2050_v63 = vld [vmem:[#allocation11 + $0x188] sm:$0xff]  ;;  %v2005_v54 = vld [vmem:[#allocation11 + $0x20] sm:$0xff]  ;;  %v2400_v37 = vld [vmem:[#allocation11 + $0xc78] sm:$0xff] }
 0x2c0   :  { %2874 = vmatpush.msrb.mxu3 %v2315_v32  ;;  %2737 = vmatpush.msra.mxu0 %v2139_v3  ;;  %v2970_v0 = vld [vmem:[#allocation14 + $0x1a0] sm:$0xff] }
 0x2c1   :  { %2837 = vmatpush.msrb.mxu1 %v2140_v4  ;;  %3270 = vmatpush.msra.mxu2 %v3034_v41  ;;  %v3106_v34 = vld [vmem:[#allocation14 + $0x5e0] sm:$0xff]  ;;  %v2040_v4 = vld [vmem:[#allocation11 + $0x138] sm:$0xff]  ;;  %v2395_v41 = vld [vmem:[#allocation11 + $0xc50] sm:$0xff] }
 0x2c2   :  { %2875 = vmatpush.msrb.mxu3 %v2310_v14  ;;  %2738 = vmatpush.msra.mxu0 %v2134_v5  ;;  %v3006_v1 = vld [vmem:[#allocation14 + $0x2c0] sm:$0xff] }
 0x2c3   :  { %2838 = vmatpush.msrb.mxu1 %v2135_v13  ;;  %3271 = vmatpush.msra.mxu2 %v3030_v44  ;;  %v2966_v16 = vld [vmem:[#allocation14 + $0x180] sm:$0xff]  ;;  %v2963_v44 = vld [vmem:[#allocation14 + $0x168] sm:$0xff] }
 0x2c4   :  { %2876 = vmatpush.msrb.mxu3 %v2305_v7  ;;  %2739 = vmatpush.msra.mxu0 %v2129_v8  ;;  %v3102_v32 = vld [vmem:[#allocation14 + $0x5c0] sm:$0xff]  ;;  %v2035_v7 = vld [vmem:[#allocation11 + $0x110] sm:$0xff] }
 0x2c5   :  { %2839 = vmatpush.msrb.mxu1 %v2130_v9  ;;  %3272 = vmatpush.msra.mxu2 %v3026_v48  ;;  %v3002_v3 = vld [vmem:[#allocation14 + $0x2a0] sm:$0xff] }
 0x2c6   :  { %2877 = vmatpush.msrb.mxu3 %v2300_v10  ;;  %2740 = vmatpush.msra.mxu0 %v2124_v11  ;;  %v2962_v14 = vld [vmem:[#allocation14 + $0x160] sm:$0xff] }
 0x2c7   :  { %2840 = vmatpush.msrb.mxu1 %v2125_v12  ;;  %3273 = vmatpush.msra.mxu2 %v3022_v51  ;;  %v3098_v5 = vld [vmem:[#allocation14 + $0x5a0] sm:$0xff] }
 0x2c8   :  { %2878 = vmatpush.msrb.mxu3 %v2295_v59  ;;  %2741 = vmatpush.msra.mxu0 %v2119_v15  ;;  %v2998_v13 = vld [vmem:[#allocation14 + $0x280] sm:$0xff] }
 0x2c9   :  { %2841 = vmatpush.msrb.mxu1 %v2120_v17  ;;  %3274 = vmatpush.msra.mxu2 %v3018_v53  ;;  %v2958_v8 = vld [vmem:[#allocation14 + $0x140] sm:$0xff]  ;;  %v2380_v53 = vld [vmem:[#allocation11 + $0xbd8] sm:$0xff] }
 0x2ca   :  { %2879 = vmatpush.msrb.mxu3 %v2290_v60  ;;  %2742 = vmatpush.msra.mxu0 %v2114_v18  ;;  %v3094_v9 = vld [vmem:[#allocation14 + $0x580] sm:$0xff] }
 0x2cb   :  { %2842 = vmatpush.msrb.mxu1 %v2115_v19  ;;  %3275 = vmatpush.msra.mxu2 %v3014_v57  ;;  %v2994_v10 = vld [vmem:[#allocation14 + $0x260] sm:$0xff]  ;;  %v2375_v57 = vld [vmem:[#allocation11 + $0xbb0] sm:$0xff] }
 0x2cc   :  { %2880 = vmatpush.msrb.mxu3 %v2285_v26  ;;  %2743 = vmatpush.msra.mxu0 %v2109_v20  ;;  %v2030_v11 = vld [vmem:[#allocation11 + $0xe8] sm:$0xff]  ;;  %v2025_v17 = vld [vmem:[#allocation11 + $0xc0] sm:$0xff]  ;;  %v2020_v26 = vld [vmem:[#allocation11 + $0x98] sm:$0xff] }
 0x2cd   :  { %2843 = vmatpush.msrb.mxu1 %v2110_v21  ;;  %3276 = vmatpush.msra.mxu2 %v3010_v62  ;;  %v2954_v12 = vld [vmem:[#allocation14 + $0x120] sm:$0xff]  ;;  %v3043_v62 = vld [vmem:[#allocation14 + $0x3e8] sm:$0xff] }
 0x2ce   :  { %2881 = vmatpush.msrb.mxu3 %v2280_v22  ;;  %2744 = vmatpush.msra.mxu0 %v2104_v23  ;;  %v3090_v59 = vld [vmem:[#allocation14 + $0x560] sm:$0xff]  ;;  %v2015_v22 = vld [vmem:[#allocation11 + $0x70] sm:$0xff] }
 0x2cf   :  { %2844 = vmatpush.msrb.mxu1 %v2105_v24  ;;  %3277 = vmatpush.msra.mxu2 %v3006_v1  ;;  %v2990_v15 = vld [vmem:[#allocation14 + $0x240] sm:$0xff]  ;;  %v4966_v1 = vld [vmem:[#allocation13] sm:$0x1f] }
 0x2d0   :  { %2882 = vmatpush.msrb.mxu3 %v2275_v25  ;;  %2745 = vmatpush.msra.mxu0 %v2099_v28  ;;  %v2950_v60 = vld [vmem:[#allocation14 + $0x100] sm:$0xff]  ;;  %v2979_v28 = vld [vmem:[#allocation14 + $0x1e8] sm:$0xff] }
 0x2d1   :  { %2845 = vmatpush.msrb.mxu1 %v2100_v29  ;;  %3278 = vmatpush.msra.mxu2 %v3002_v3  ;;  %v3086_v18 = vld [vmem:[#allocation14 + $0x540] sm:$0xff]  ;;  %v2360_v3 = vld [vmem:[#allocation11 + $0xb38] sm:$0xff] }
 0x2d2   :  { %2883 = vmatpush.msrb.mxu3 %v2270_v30  ;;  %2746 = vmatpush.msra.mxu0 %v2094_v31  ;;  %v2986_v19 = vld [vmem:[#allocation14 + $0x220] sm:$0xff] }
 0x2d3   :  { %2846 = vmatpush.msrb.mxu1 %v2095_v33  ;;  %3279 = vmatpush.msra.mxu2 %v2998_v13  ;;  %v2946_v20 = vld [vmem:[#allocation14 + $0xe0] sm:$0xff]  ;;  %v2975_v33 = vld [vmem:[#allocation14 + $0x1c8] sm:$0xff]  ;;  %v2430_v13 = vpop.f32.mrf.mxu0 }
 0x2d4   :  { %2884 = vmatpush.msrb.mxu3 %v2265_v35  ;;  %2747 = vmatpush.msra.mxu0 %v2089_v36  ;;  %v3082_v21 = vld [vmem:[#allocation14 + $0x520] sm:$0xff] }
 0x2d5   :  { %2847 = vmatpush.msrb.mxu1 %v2090_v58  ;;  %3280 = vmatpush.msra.mxu2 %v2994_v10  ;;  %v2982_v23 = vld [vmem:[#allocation14 + $0x200] sm:$0xff]  ;;  %v2971_v58 = vld [vmem:[#allocation14 + $0x1a8] sm:$0xff]  ;;  %v2450_v10 = vpop.f32.mrf.mxu1 }
 0x2d6   :  { %2885 = vmatpush.msrb.mxu3 %v2260_v38  ;;  %2748 = vmatpush.msra.mxu0 %v2084_v39  ;;  %v2942_v24 = vld [vmem:[#allocation14 + $0xc0] sm:$0xff] }
 0x2d7   :  { %2848 = vmatpush.msrb.mxu1 %v2085_v40  ;;  %2749 = vmatmul.f32.vlgmr.msra.gmra.mxu0 %v4932_v27  ;;  %v3078_v25 = vld [vmem:[#allocation14 + $0x500] sm:$0xff]  ;;  %v2967_v40 = vld [vmem:[#allocation14 + $0x188] sm:$0xff] }
 0x2d8   :  { %2886 = vmatpush.msrb.mxu3 %v2255_v42  ;;  %2813 = vmatpush.msrb.mxu0 %v2080_v43  ;;  %v2010_v29 = vld [vmem:[#allocation11 + $0x48] sm:$0xff]  ;;  %v2385_v51 = vld [vmem:[#allocation11 + $0xc00] sm:$0xff] }
 0x2d9   :  { %2849 = vmatmul.f32.vlgmr.msrb.gmra.mxu1 %v4932_v27  ;;  %v2055_v27 = vld [vmem:[#allocation11 + $0x1b0] sm:$0xff]  ;;  %3281 = vmatpush.msra.mxu2 %v2990_v15  ;;  %v2938_v30 = vld [vmem:[#allocation14 + $0xa0] sm:$0xff] }
 0x2da   :  { %2887 = vmatpush.msrb.mxu3 %v2250_v45  ;;  %2814 = vmatpush.msrb.mxu0 %v2075_v46  ;;  %v3074_v31 = vld [vmem:[#allocation14 + $0x4e0] sm:$0xff]  ;;  %v3023_v15 = vld [vmem:[#allocation14 + $0x348] sm:$0xff] }
 0x2db   :  { %3248 = vmatpush.msra.mxu1 %v2978_v56  ;;  %3282 = vmatpush.msra.mxu2 %v2986_v19  ;;  %v2934_v35 = vld [vmem:[#allocation14 + $0x80] sm:$0xff]  ;;  %v2951_v56 = vld [vmem:[#allocation14 + $0x108] sm:$0xff] }
 0x2dc   :  { %2888 = vmatpush.msrb.mxu3 %v2245_v49  ;;  %2815 = vmatpush.msrb.mxu0 %v2070_v50  ;;  %v3070_v36 = vld [vmem:[#allocation14 + $0x4c0] sm:$0xff]  ;;  %v2959_v49 = vld [vmem:[#allocation14 + $0x148] sm:$0xff] }
 0x2dd   :  { %2889 = vmatmul.f32.vlgmr.msrb.gmra.mxu3 %v4944_v2  ;;  %3249 = vmatpush.msra.mxu1 %v2974_v61  ;;  %v2045_v2 = vld [vmem:[#allocation11 + $0x160] sm:$0xff]  ;;  %v2390_v46 = vld [vmem:[#allocation11 + $0xc28] sm:$0xff] }
 0x2de   :  { %2816 = vmatpush.msrb.mxu0 %v2065_v52  ;;  %3288 = vmatpush.msra.mxu3 %v3106_v34  ;;  %v2930_v38 = vld [vmem:[#allocation14 + $0x60] sm:$0xff]  ;;  %v2955_v52 = vld [vmem:[#allocation14 + $0x128] sm:$0xff] }
 0x2df   :  { %3250 = vmatpush.msra.mxu1 %v2970_v0  ;;  %3283 = vmatpush.msra.mxu2 %v2982_v23  ;;  %v3066_v39 = vld [vmem:[#allocation14 + $0x4a0] sm:$0xff]  ;;  %v2947_v61 = vld [vmem:[#allocation14 + $0xe8] sm:$0xff] }
 0x2e0   :  { %2817 = vmatpush.msrb.mxu0 %v2060_v55  ;;  %3289 = vmatpush.msra.mxu3 %v3102_v32  ;;  %v2926_v42 = vld [vmem:[#allocation14 + $0x40] sm:$0xff]  ;;  %v2943_v0 = vld [vmem:[#allocation14 + $0xc8] sm:$0xff] }
 0x2e1   :  { %3251 = vmatpush.msra.mxu1 %v2966_v16  ;;  %3348 = vmatpush.msrb.mxu2 %v2979_v28  ;;  %v3062_v43 = vld [vmem:[#allocation14 + $0x480] sm:$0xff]  ;;  %v3039_v34 = vld [vmem:[#allocation14 + $0x3c8] sm:$0xff] }
 0x2e2   :  { %2818 = vmatpush.msrb.mxu0 %v2055_v27  ;;  %3290 = vmatpush.msra.mxu3 %v3098_v5  ;;  %v2922_v45 = vld [vmem:[#allocation14 + $0x20] sm:$0xff]  ;;  %v2939_v16 = vld [vmem:[#allocation14 + $0xa8] sm:$0xff] }
 0x2e3   :  { %3252 = vmatpush.msra.mxu1 %v2962_v14  ;;  %3349 = vmatpush.msrb.mxu2 %v2975_v33  ;;  %v3058_v48 = vld [vmem:[#allocation14 + $0x460] sm:$0xff]  ;;  %v3035_v32 = vld [vmem:[#allocation14 + $0x3a8] sm:$0xff]  ;;  %v2404_v33 = vperm.slane %v4966_v1, 1 }
 0x2e4   :  { %2819 = vmatpush.msrb.mxu0 %v2050_v63  ;;  %3291 = vmatpush.msra.mxu3 %v3094_v9  ;;  %v2918_v50 = vld [vmem:[#allocation14] sm:$0xff]  ;;  %v2935_v14 = vld [vmem:[#allocation14 + $0x88] sm:$0xff] }
 0x2e5   :  { %3253 = vmatpush.msra.mxu1 %v2958_v8  ;;  %3350 = vmatpush.msrb.mxu2 %v2971_v58  ;;  %v3050_v55 = vld [vmem:[#allocation14 + $0x420] sm:$0xff]  ;;  %v3031_v5 = vld [vmem:[#allocation14 + $0x388] sm:$0xff] }
 0x2e6   :  { %2820 = vmatpush.msrb.mxu0 %v2045_v2  ;;  %3292 = vmatpush.msra.mxu3 %v3090_v59  ;;  %v3046_v27 = vld [vmem:[#allocation14 + $0x400] sm:$0xff]  ;;  %v2931_v8 = vld [vmem:[#allocation14 + $0x68] sm:$0xff] }
 0x2e7   :  { %3254 = vmatpush.msra.mxu1 %v2954_v12  ;;  %3351 = vmatpush.msrb.mxu2 %v2967_v40  ;;  %v2370_v63 = vld [vmem:[#allocation11 + $0xb88] sm:$0xff]  ;;  %v2365_v2 = vld [vmem:[#allocation11 + $0xb60] sm:$0xff] }
 0x2e8   :  { %2821 = vmatpush.msrb.mxu0 %v2040_v4  ;;  %3293 = vmatpush.msra.mxu3 %v3086_v18  ;;  %v2403_v4 = vperm.slane %v4966_v1, 0  ;;  %v3027_v9 = vld [vmem:[#allocation14 + $0x368] sm:$0xff]  ;;  %v2325_v58 = vld [vmem:[#allocation11 + $0xa20] sm:$0xff] }
 0x2e9   :  { %3255 = vmatpush.msra.mxu1 %v2950_v60  ;;  %3352 = vmatpush.msrb.mxu2 %v2963_v44  ;;  %v2927_v59 = vld [vmem:[#allocation14 + $0x48] sm:$0xff]  ;;  %v2345_v60 = vld [vmem:[#allocation11 + $0xac0] sm:$0xff] }
 0x2ea   :  { %2822 = vmatpush.msrb.mxu0 %v2035_v7  ;;  %3294 = vmatpush.msra.mxu3 %v3082_v21  ;;  %v2355_v7 = vld [vmem:[#allocation11 + $0xb10] sm:$0xff]  ;;  %v2431_v12 = vadd.f32 %v2430_v13, %v2403_v4  ;;  %v2340_v21 = vld [vmem:[#allocation11 + $0xa98] sm:$0xff]  ;;  %v3170_v40 = vld [vmem:[#allocation14 + $0x7e0] sm:$0xff] }
 0x2eb   :  { %3256 = vmatpush.msra.mxu1 %v2946_v20  ;;  %3353 = vmatpush.msrb.mxu2 %v2959_v49  ;;  %v2923_v19 = vld [vmem:[#allocation14 + $0x28] sm:$0xff]  ;;  %v2490_v20 = vpop.f32.mrf.mxu3  ;;  %v3166_v44 = vld [vmem:[#allocation14 + $0x7c0] sm:$0xff] }
 0x2ec   :  { %2823 = vmatpush.msrb.mxu0 %v2030_v11  ;;  %3295 = vmatpush.msra.mxu3 %v3078_v25  ;;  %v2350_v11 = vld [vmem:[#allocation11 + $0xae8] sm:$0xff]  ;;  %v2451_v18 = vadd.f32 %v2450_v10, %v2431_v12  ;;  %v2335_v25 = vld [vmem:[#allocation11 + $0xa70] sm:$0xff] }
 0x2ed   :  { %3257 = vmatpush.msra.mxu1 %v2942_v24  ;;  %3354 = vmatpush.msrb.mxu2 %v2955_v52  ;;  %v2919_v23 = vld [vmem:[#allocation14 + $0x8] sm:$0xff] }
 0x2ee   :  { %2824 = vmatpush.msrb.mxu0 %v2025_v17  ;;  %3296 = vmatpush.msra.mxu3 %v3074_v31  ;;  %v2470_v17 = vpop.f32.mrf.mxu2  ;;  %v3015_v24 = vld [vmem:[#allocation14 + $0x308] sm:$0xff] }
 0x2ef   :  { %3258 = vmatpush.msra.mxu1 %v2938_v30  ;;  %3355 = vmatpush.msrb.mxu2 %v2951_v56  ;;  %v2330_v30 = vld [vmem:[#allocation11 + $0xa48] sm:$0xff] }
 0x2f0   :  { %2825 = vmatpush.msrb.mxu0 %v2020_v26  ;;  %3297 = vmatpush.msra.mxu3 %v3070_v36  ;;  %v3019_v26 = vld [vmem:[#allocation14 + $0x328] sm:$0xff]  ;;  %v2530_v36 = vpop.f32.mrf.mxu1  ;;  %v3154_v56 = vld [vmem:[#allocation14 + $0x760] sm:$0xff] }
 0x2f1   :  { %3259 = vmatpush.msra.mxu1 %v2934_v35  ;;  %3356 = vmatpush.msrb.mxu2 %v2947_v61  ;;  %v3007_v35 = vld [vmem:[#allocation14 + $0x2c8] sm:$0xff] }
 0x2f2   :  { %2826 = vmatpush.msrb.mxu0 %v2015_v22  ;;  %3298 = vmatpush.msra.mxu3 %v3066_v39  ;;  %v2471_v22 = vadd.f32 %v2470_v17, %v2451_v18  ;;  %v3099_v18 = vld [vmem:[#allocation14 + $0x5a8] sm:$0xff] }
 0x2f3   :  { %3260 = vmatpush.msra.mxu1 %v2930_v38  ;;  %3357 = vmatpush.msrb.mxu2 %v2943_v0  ;;  %v3003_v38 = vld [vmem:[#allocation14 + $0x2a8] sm:$0xff]  ;;  %v3138_v0 = vld [vmem:[#allocation14 + $0x6e0] sm:$0xff] }
 0x2f4   :  { %2827 = vmatpush.msrb.mxu0 %v2010_v29  ;;  %3299 = vmatpush.msra.mxu3 %v3062_v43  ;;  %v2491_v28 = vadd.f32 %v2490_v20, %v2471_v22  ;;  %v3011_v29 = vld [vmem:[#allocation14 + $0x2e8] sm:$0xff]  ;;  %v2570_v43 = vpop.f32.mrf.mxu3  ;;  %v3234_v20 = vld [vmem:[#allocation14 + $0x9e0] sm:$0xff] }
 0x2f5   :  { %3261 = vmatpush.msra.mxu1 %v2926_v42  ;;  %3358 = vmatpush.msrb.mxu2 %v2939_v16  ;;  %v2999_v42 = vld [vmem:[#allocation14 + $0x288] sm:$0xff]  ;;  %v3126_v16 = vld [vmem:[#allocation14 + $0x680] sm:$0xff] }
 0x2f6   :  { %2828 = vmatpush.msrb.mxu0 %v2005_v54  ;;  %3300 = vmatpush.msra.mxu3 %v3058_v48  ;;  %v2550_v39 = vpop.f32.mrf.mxu2  ;;  %v3162_v48 = vld [vmem:[#allocation14 + $0x7a0] sm:$0xff] }
 0x2f7   :  { %2829 = vmatmul.f32.vlgmr.msrb.gmra.mxu0 %v4927_v6  ;;  %3262 = vmatpush.msra.mxu1 %v2922_v45  ;;  %v3054_v6 = vld [vmem:[#allocation14 + $0x440] sm:$0xff] }
 0x2f8   :  { %2893 = vmatpush.msra.mxu0 %v2400_v37  ;;  %3301 = vmatpush.msra.mxu3 %v3054_v6  ;;  %v3158_v6 = vld [vmem:[#allocation14 + $0x780] sm:$0xff] }
 0x2f9   :  { %3263 = vmatpush.msra.mxu1 %v2918_v50  ;;  %3359 = vmatpush.msrb.mxu2 %v2935_v14  ;;  %v2991_v50 = vld [vmem:[#allocation14 + $0x248] sm:$0xff]  ;;  %v3118_v14 = vld [vmem:[#allocation14 + $0x640] sm:$0xff] }
 0x2fa   :  { %2894 = vmatpush.msra.mxu0 %v2395_v41  ;;  %3302 = vmatpush.msra.mxu3 %v3050_v55  ;;  %v2531_v41 = vadd.f32 %v2530_v36, %v2404_v33  ;;  %v3227_v33 = vld [vmem:[#allocation14 + $0x9a8] sm:$0xff]  ;;  %v3222_v36 = vld [vmem:[#allocation14 + $0x980] sm:$0xff] }
 0x2fb   :  { %3360 = vmatpush.msrb.mxu2 %v2931_v8  ;;  %3328 = vmatpush.msrb.mxu1 %v3234_v20  ;;  %v3178_v20 = vld [vmem:[#allocation14 + $0x820] sm:$0xff] }
 0x2fc   :  { %2895 = vmatpush.msra.mxu0 %v2390_v46  ;;  %3303 = vmatpush.msra.mxu3 %v3046_v27  ;;  %v2551_v45 = vadd.f32 %v2550_v39, %v2531_v41  ;;  %v2995_v46 = vld [vmem:[#allocation14 + $0x268] sm:$0xff]  ;;  %v3150_v27 = vld [vmem:[#allocation14 + $0x740] sm:$0xff]  ;;  %v2964_v41 = vld [vmem:[#allocation14 + $0x170] sm:$0xff] }
 0x2fd   :  { %3361 = vmatpush.msrb.mxu2 %v2927_v59  ;;  %v3218_v39 = vld [vmem:[#allocation14 + $0x960] sm:$0xff] }
 0x2fe   :  { %2896 = vmatpush.msra.mxu0 %v2385_v51  ;;  %3368 = vmatpush.msrb.mxu3 %v3043_v62  ;;  %v2571_v49 = vadd.f32 %v2570_v43, %v2551_v45  ;;  %v3146_v62 = vld [vmem:[#allocation14 + $0x720] sm:$0xff]  ;;  %v2630_v4 = vpop.f32.mrf.mxu2  ;;  %v3075_v43 = vld [vmem:[#allocation14 + $0x4e8] sm:$0xff]  ;;  %v2960_v45 = vld [vmem:[#allocation14 + $0x150] sm:$0xff] }
 0x2ff   :  { %3362 = vmatpush.msrb.mxu2 %v2923_v19 }
 0x300   :  { %2897 = vmatpush.msra.mxu0 %v2380_v53  ;;  %3369 = vmatpush.msrb.mxu3 %v3039_v34  ;;  %v2987_v53 = vld [vmem:[#allocation14 + $0x228] sm:$0xff]  ;;  %v3134_v34 = vld [vmem:[#allocation14 + $0x6c0] sm:$0xff] }
 0x301   :  { %3363 = vmatpush.msrb.mxu2 %v2919_v23  ;;  %v2980_v23 = vld [vmem:[#allocation14 + $0x1f0] sm:$0xff] }
 0x302   :  { %2898 = vmatpush.msra.mxu0 %v2375_v57  ;;  %3370 = vmatpush.msrb.mxu3 %v3035_v32  ;;  %v2983_v57 = vld [vmem:[#allocation14 + $0x208] sm:$0xff]  ;;  %v2405_v32 = vperm.slane %v4966_v1, 2 }
 0x304   :  { %2899 = vmatpush.msra.mxu0 %v2370_v63  ;;  %3371 = vmatpush.msrb.mxu3 %v3031_v5  ;;  %v3142_v63 = vld [vmem:[#allocation14 + $0x700] sm:$0xff]  ;;  %v2650_v5 = vpop.f32.mrf.mxu3  ;;  %v2631_v13 = vadd.f32 %v2630_v4, %v2405_v32  ;;  %v2406_v32 = vperm.slane %v4966_v1, 3  ;;  %v3195_v4 = vld [vmem:[#allocation14 + $0x8a8] sm:$0xff] }
 0x306   :  { %2900 = vmatpush.msra.mxu0 %v2365_v2  ;;  %3372 = vmatpush.msrb.mxu3 %v3027_v9  ;;  %v3130_v2 = vld [vmem:[#allocation14 + $0x6a0] sm:$0xff]  ;;  %v2651_v8 = vadd.f32 %v2650_v5, %v2631_v13  ;;  %v3051_v5 = vld [vmem:[#allocation14 + $0x428] sm:$0xff] }
 0x307   :  { %v3110_v9 = vld [vmem:[#allocation14 + $0x600] sm:$0xff] }
 0x308   :  { %2901 = vmatpush.msra.mxu0 %v2360_v3  ;;  %3373 = vmatpush.msrb.mxu3 %v3023_v15  ;;  %v3122_v3 = vld [vmem:[#allocation14 + $0x660] sm:$0xff]  ;;  %v3103_v15 = vld [vmem:[#allocation14 + $0x5c8] sm:$0xff] }
 0x309   :  { %v3190_v13 = vld [vmem:[#allocation14 + $0x880] sm:$0xff] }
 0x30a   :  { %2902 = vmatpush.msra.mxu0 %v2355_v7  ;;  %3374 = vmatpush.msrb.mxu3 %v3019_v26  ;;  %v3114_v7 = vld [vmem:[#allocation14 + $0x620] sm:$0xff]  ;;  %v3095_v26 = vld [vmem:[#allocation14 + $0x588] sm:$0xff] }
 0x30c   :  { %2903 = vmatpush.msra.mxu0 %v2350_v11  ;;  %3375 = vmatpush.msrb.mxu3 %v3015_v24  ;;  %v3107_v11 = vld [vmem:[#allocation14 + $0x5e8] sm:$0xff] }
 0x30d   :  { %v3091_v24 = vld [vmem:[#allocation14 + $0x568] sm:$0xff] }
 0x30e   :  { %2904 = vmatpush.msra.mxu0 %v2345_v60  ;;  %3376 = vmatpush.msrb.mxu3 %v3011_v29  ;;  %v2976_v29 = vld [vmem:[#allocation14 + $0x1d0] sm:$0xff] }
 0x310   :  { %2905 = vmatpush.msra.mxu0 %v2340_v21  ;;  %3377 = vmatpush.msrb.mxu3 %v3007_v35  ;;  %v3235_v21 = vld [vmem:[#allocation14 + $0x9e8] sm:$0xff] }
 0x311   :  { %v2510_v31 = vpop.f32.mrf.mxu0  ;;  %v2610_v55 = vpop.f32.mrf.mxu1  ;;  %v3083_v35 = vld [vmem:[#allocation14 + $0x528] sm:$0xff] }
 0x312   :  { %2906 = vmatpush.msra.mxu0 %v2335_v25  ;;  %v2511_v54 = vadd.f32 %v2510_v31, %v2491_v28  ;;  %3378 = vmatpush.msrb.mxu3 %v3003_v38  ;;  %v3230_v25 = vld [vmem:[#allocation14 + $0x9c0] sm:$0xff]  ;;  %v3231_v28 = vld [vmem:[#allocation14 + $0x9c8] sm:$0xff]  ;;  %v2968_v38 = vld [vmem:[#allocation14 + $0x190] sm:$0xff] }
 0x313   :  { %v3087_v31 = vld [vmem:[#allocation14 + $0x548] sm:$0xff]  ;;  %3329 = vmatpush.msrb.mxu1 %v3230_v25 }
 0x314   :  { %2907 = vmatpush.msra.mxu0 %v2330_v30  ;;  %v4970_v37 = vmax.f32 %v2511_v54, 0.0  ;;  %3379 = vmatpush.msrb.mxu3 %v2999_v42  ;;  %v3226_v30 = vld [vmem:[#allocation14 + $0x9a0] sm:$0xff]  ;;  %v2972_v54 = vld [vmem:[#allocation14 + $0x1b0] sm:$0xff]  ;;  %v3219_v42 = vld [vmem:[#allocation14 + $0x968] sm:$0xff] }
 0x315   :  { %3330 = vmatpush.msrb.mxu1 %v3226_v30  ;;  %v2920_v30 = vld [vmem:[#allocation14 + $0x10] sm:$0xff] }
 0x316   :  { %2908 = vmatpush.msra.mxu0 %v2325_v58  ;;  %3264 = vmatmul.f32.vlgmr.msra.gmra.mxu1 %v4970_v37  ;;  %v3223_v58 = vld [vmem:[#allocation14 + $0x988] sm:$0xff] }
 0x317   :  { %2909 = vmatmul.f32.vlgmr.msra.gmra.mxu0 %v4949_v47  ;;  %3380 = vmatpush.msrb.mxu3 %v2995_v46  ;;  %v3215_v46 = vld [vmem:[#allocation14 + $0x948] sm:$0xff] }
 0x318   :  { %3308 = vmatpush.msrb.mxu0 %v3170_v40  ;;  %v2710_v60 = vpop.f32.mrf.mxu2  ;;  %v3079_v40 = vld [vmem:[#allocation14 + $0x508] sm:$0xff]  ;;  %3331 = vmatpush.msrb.mxu1 %v3222_v36  ;;  %v3236_v36 = vld [vmem:[#allocation14 + $0x9f0] sm:$0xff] }
 0x319   :  { %3381 = vmatpush.msrb.mxu3 %v2991_v50  ;;  %v2956_v50 = vld [vmem:[#allocation14 + $0x130] sm:$0xff] }
 0x31a   :  { %3309 = vmatpush.msrb.mxu0 %v3166_v44  ;;  %3332 = vmatpush.msrb.mxu1 %v3218_v39  ;;  %v3214_v44 = vld [vmem:[#allocation14 + $0x940] sm:$0xff] }
 0x31b   :  { %v2590_v51 = vpop.f32.mrf.mxu0  ;;  %3382 = vmatpush.msrb.mxu3 %v2987_v53  ;;  %v2690_v59 = vpop.f32.mrf.mxu1  ;;  %v2952_v53 = vld [vmem:[#allocation14 + $0x110] sm:$0xff] }
 0x31c   :  { %v2591_v52 = vadd.f32 %v2590_v51, %v2571_v49  ;;  %3310 = vmatpush.msrb.mxu0 %v3162_v48  ;;  %v3071_v48 = vld [vmem:[#allocation14 + $0x4c8] sm:$0xff]  ;;  %v3210_v49 = vld [vmem:[#allocation14 + $0x920] sm:$0xff]  ;;  %3333 = vmatpush.msrb.mxu1 %v3214_v44  ;;  %v3040_v44 = vld [vmem:[#allocation14 + $0x3d0] sm:$0xff] }
 0x31d   :  { %3383 = vmatpush.msrb.mxu3 %v2983_v57  ;;  %v3211_v51 = vld [vmem:[#allocation14 + $0x928] sm:$0xff]  ;;  %v2948_v57 = vld [vmem:[#allocation14 + $0xf0] sm:$0xff] }
 0x31e   :  { %v2611_v47 = vadd.f32 %v2610_v55, %v2591_v52  ;;  %3311 = vmatpush.msrb.mxu0 %v3158_v6  ;;  %v3067_v6 = vld [vmem:[#allocation14 + $0x4a8] sm:$0xff]  ;;  %v3206_v52 = vld [vmem:[#allocation14 + $0x900] sm:$0xff]  ;;  %3334 = vmatpush.msrb.mxu1 %v3210_v49  ;;  %v3036_v49 = vld [vmem:[#allocation14 + $0x3b0] sm:$0xff] }
 0x31f   :  { %v3207_v55 = vld [vmem:[#allocation14 + $0x908] sm:$0xff] }
 0x320   :  { %v4974_v61 = vmax.f32 %v2611_v47, 0.0  ;;  %3312 = vmatpush.msrb.mxu0 %v3154_v56  ;;  %v3063_v56 = vld [vmem:[#allocation14 + $0x488] sm:$0xff]  ;;  %v3202_v47 = vld [vmem:[#allocation14 + $0x8e0] sm:$0xff]  ;;  %3335 = vmatpush.msrb.mxu1 %v3206_v52  ;;  %v3032_v52 = vld [vmem:[#allocation14 + $0x390] sm:$0xff] }
 0x322   :  { %3284 = vmatmul.f32.vlgmr.msra.gmra.mxu2 %v4974_v61  ;;  %3313 = vmatpush.msrb.mxu0 %v3150_v27  ;;  %v3203_v27 = vld [vmem:[#allocation14 + $0x8e8] sm:$0xff] }
 0x323   :  { %3428 = vmatpush.msra.mxu2 %v3235_v21  ;;  %3336 = vmatpush.msrb.mxu1 %v3202_v47  ;;  %v2790_v25 = vpop.f32.mrf.mxu2  ;;  %v3216_v47 = vld [vmem:[#allocation14 + $0x950] sm:$0xff] }
 0x324   :  { %3314 = vmatpush.msrb.mxu0 %v3146_v62  ;;  %v3059_v62 = vld [vmem:[#allocation14 + $0x468] sm:$0xff] }
 0x325   :  { %3429 = vmatpush.msra.mxu2 %v3231_v28  ;;  %v3174_v28 = vld [vmem:[#allocation14 + $0x800] sm:$0xff] }
 0x326   :  { %3315 = vmatpush.msrb.mxu0 %v3142_v63  ;;  %v3198_v63 = vld [vmem:[#allocation14 + $0x8c0] sm:$0xff] }
 0x327   :  { %3430 = vmatpush.msra.mxu2 %v3227_v33  ;;  %3337 = vmatpush.msrb.mxu1 %v3198_v63  ;;  %v3212_v63 = vld [vmem:[#allocation14 + $0x930] sm:$0xff] }
 0x328   :  { %3316 = vmatpush.msrb.mxu0 %v3138_v0  ;;  %v2944_v0 = vld [vmem:[#allocation14 + $0xd0] sm:$0xff] }
 0x329   :  { %3431 = vmatpush.msra.mxu2 %v3223_v58  ;;  %v3172_v58 = vld [vmem:[#allocation14 + $0x7f0] sm:$0xff] }
 0x32a   :  { %3364 = vmatmul.f32.vlgmr.msrb.gmra.mxu2 %v4970_v37  ;;  %3317 = vmatpush.msrb.mxu0 %v3134_v34  ;;  %v3199_v34 = vld [vmem:[#allocation14 + $0x8c8] sm:$0xff] }
 0x32b   :  { %3432 = vmatpush.msra.mxu2 %v3219_v42  ;;  %v3168_v42 = vld [vmem:[#allocation14 + $0x7d0] sm:$0xff] }
 0x32c   :  { %3318 = vmatpush.msrb.mxu0 %v3130_v2  ;;  %v3055_v2 = vld [vmem:[#allocation14 + $0x448] sm:$0xff] }
 0x32d   :  { %3433 = vmatpush.msra.mxu2 %v3215_v46  ;;  %v3164_v46 = vld [vmem:[#allocation14 + $0x7b0] sm:$0xff] }
 0x32e   :  { %3319 = vmatpush.msrb.mxu0 %v3126_v16  ;;  %v3194_v16 = vld [vmem:[#allocation14 + $0x8a0] sm:$0xff] }
 0x32f   :  { %3434 = vmatpush.msra.mxu2 %v3211_v51  ;;  %3338 = vmatpush.msrb.mxu1 %v3194_v16  ;;  %v3160_v51 = vld [vmem:[#allocation14 + $0x790] sm:$0xff] }
 0x330   :  { %3320 = vmatpush.msrb.mxu0 %v3122_v3  ;;  %v2940_v3 = vld [vmem:[#allocation14 + $0xb0] sm:$0xff] }
 0x331   :  { %3435 = vmatpush.msra.mxu2 %v3207_v55  ;;  %3339 = vmatpush.msrb.mxu1 %v3190_v13  ;;  %v3156_v55 = vld [vmem:[#allocation14 + $0x770] sm:$0xff] }
 0x332   :  { %3321 = vmatpush.msrb.mxu0 %v3118_v14  ;;  %v2730_v14 = vpop.f32.mrf.mxu3  ;;  %v3208_v16 = vld [vmem:[#allocation14 + $0x910] sm:$0xff] }
 0x333   :  { %3436 = vmatpush.msra.mxu2 %v3203_v27  ;;  %v3152_v27 = vld [vmem:[#allocation14 + $0x750] sm:$0xff] }
 0x334   :  { %v2670_v10 = vpop.f32.mrf.mxu0  ;;  %3322 = vmatpush.msrb.mxu0 %v3114_v7  ;;  %v2936_v7 = vld [vmem:[#allocation14 + $0x90] sm:$0xff] }
 0x335   :  { %v2671_v12 = vadd.f32 %v2670_v10, %v2651_v8  ;;  %3437 = vmatpush.msra.mxu2 %v3199_v34  ;;  %v3191_v8 = vld [vmem:[#allocation14 + $0x888] sm:$0xff]  ;;  %v3186_v10 = vld [vmem:[#allocation14 + $0x860] sm:$0xff]  ;;  %v3148_v34 = vld [vmem:[#allocation14 + $0x730] sm:$0xff] }
 0x336   :  { %3323 = vmatpush.msrb.mxu0 %v3110_v9  ;;  %v3047_v9 = vld [vmem:[#allocation14 + $0x408] sm:$0xff]  ;;  %3340 = vmatpush.msrb.mxu1 %v3186_v10  ;;  %v3140_v13 = vld [vmem:[#allocation14 + $0x6f0] sm:$0xff] }
 0x337   :  { %v2691_v17 = vadd.f32 %v2690_v59, %v2671_v12  ;;  %3438 = vmatpush.msra.mxu2 %v3195_v4  ;;  %v2932_v12 = vld [vmem:[#allocation14 + $0x70] sm:$0xff]  ;;  %v3187_v59 = vld [vmem:[#allocation14 + $0x868] sm:$0xff] }
 0x338   :  { %3388 = vmatpush.msra.mxu0 %v3107_v11  ;;  %v2731_v11 = vadd.f32 %v2730_v14, %v2406_v32  ;;  %v3143_v32 = vld [vmem:[#allocation14 + $0x708] sm:$0xff]  ;;  %v3016_v4 = vld [vmem:[#allocation14 + $0x310] sm:$0xff] }
 0x339   :  { %v2711_v19 = vadd.f32 %v2710_v60, %v2691_v17  ;;  %3439 = vmatpush.msra.mxu2 %v3191_v8  ;;  %v3182_v17 = vld [vmem:[#allocation14 + $0x840] sm:$0xff]  ;;  %v3204_v14 = vld [vmem:[#allocation14 + $0x8f0] sm:$0xff] }
 0x33a   :  { %3389 = vmatpush.msra.mxu0 %v3103_v15  ;;  %3341 = vmatpush.msrb.mxu1 %v3182_v17  ;;  %v3200_v8 = vld [vmem:[#allocation14 + $0x8d0] sm:$0xff] }
 0x33b   :  { %v4979_v22 = vmax.f32 %v2711_v19, 0.0  ;;  %v3183_v19 = vld [vmem:[#allocation14 + $0x848] sm:$0xff]  ;;  %3440 = vmatpush.msra.mxu2 %v3187_v59  ;;  %v3136_v10 = vld [vmem:[#allocation14 + $0x6d0] sm:$0xff] }
 0x33c   :  { %3390 = vmatpush.msra.mxu0 %v3099_v18  ;;  %v2928_v18 = vld [vmem:[#allocation14 + $0x50] sm:$0xff]  ;;  %3342 = vmatpush.msrb.mxu1 %v3178_v20  ;;  %v3131_v59 = vld [vmem:[#allocation14 + $0x6a8] sm:$0xff] }
 0x33d   :  { %3304 = vmatmul.f32.vlgmr.msra.gmra.mxu3 %v4979_v22  ;;  %3441 = vmatpush.msra.mxu2 %v3183_v19  ;;  %v3004_v17 = vld [vmem:[#allocation14 + $0x2b0] sm:$0xff] }
 0x33e   :  { %3391 = vmatpush.msra.mxu0 %v3095_v26  ;;  %3448 = vmatpush.msra.mxu3 %v2980_v23  ;;  %v2770_v26 = vpop.f32.mrf.mxu1  ;;  %v2924_v23 = vld [vmem:[#allocation14 + $0x30] sm:$0xff] }
 0x33f   :  { %3343 = vmatpush.msrb.mxu1 %v3174_v28  ;;  %v3128_v19 = vld [vmem:[#allocation14 + $0x690] sm:$0xff]  ;;  %v3119_v28 = vld [vmem:[#allocation14 + $0x648] sm:$0xff] }
 0x340   :  { %3392 = vmatpush.msra.mxu0 %v3091_v24  ;;  %3449 = vmatpush.msra.mxu3 %v2976_v29  ;;  %v3179_v24 = vld [vmem:[#allocation14 + $0x828] sm:$0xff]  ;;  %v2810_v33 = vpop.f32.mrf.mxu3  ;;  %v3188_v20 = vld [vmem:[#allocation14 + $0x870] sm:$0xff] }
 0x341   :  { %3442 = vmatpush.msra.mxu2 %v3179_v24  ;;  %v2996_v24 = vld [vmem:[#allocation14 + $0x270] sm:$0xff] }
 0x342   :  { %3393 = vmatpush.msra.mxu0 %v3087_v31  ;;  %3450 = vmatpush.msra.mxu3 %v2972_v54  ;;  %v3175_v31 = vld [vmem:[#allocation14 + $0x808] sm:$0xff] }
 0x343   :  { %v3171_v54 = vld [vmem:[#allocation14 + $0x7e8] sm:$0xff]  ;;  %3443 = vmatpush.msra.mxu2 %v3175_v31  ;;  %v3180_v31 = vld [vmem:[#allocation14 + $0x830] sm:$0xff] }
 0x344   :  { %3394 = vmatpush.msra.mxu0 %v3083_v35  ;;  %3451 = vmatpush.msra.mxu3 %v2968_v38  ;;  %v3167_v38 = vld [vmem:[#allocation14 + $0x7c8] sm:$0xff] }
 0x345   :  { %3384 = vmatmul.f32.vlgmr.msrb.gmra.mxu3 %v4974_v61  ;;  %3408 = vmatpush.msra.mxu1 %v3171_v54  ;;  %v3116_v54 = vld [vmem:[#allocation14 + $0x630] sm:$0xff] }
 0x346   :  { %3395 = vmatpush.msra.mxu0 %v3079_v40  ;;  %3452 = vmatpush.msra.mxu3 %v2964_v41  ;;  %v3044_v40 = vld [vmem:[#allocation14 + $0x3f0] sm:$0xff] }
 0x347   :  { %v3232_v41 = vld [vmem:[#allocation14 + $0x9d0] sm:$0xff]  ;;  %3508 = vmatpush.msrb.mxu2 %v3172_v58  ;;  %3409 = vmatpush.msra.mxu1 %v3167_v38  ;;  %v3173_v58 = vld [vmem:[#allocation14 + $0x7f8] sm:$0xff]  ;;  %v3111_v38 = vld [vmem:[#allocation14 + $0x608] sm:$0xff] }
 0x348   :  { %3396 = vmatpush.msra.mxu0 %v3075_v43  ;;  %3453 = vmatpush.msra.mxu3 %v2960_v45  ;;  %v3163_v43 = vld [vmem:[#allocation14 + $0x7a8] sm:$0xff]  ;;  %v3228_v45 = vld [vmem:[#allocation14 + $0x9b0] sm:$0xff] }
 0x349   :  { %3509 = vmatpush.msrb.mxu2 %v3168_v42  ;;  %3410 = vmatpush.msra.mxu1 %v3163_v43  ;;  %v3169_v42 = vld [vmem:[#allocation14 + $0x7d8] sm:$0xff] }
 0x34a   :  { %3397 = vmatpush.msra.mxu0 %v3071_v48  ;;  %3454 = vmatpush.msra.mxu3 %v2956_v50  ;;  %v3159_v48 = vld [vmem:[#allocation14 + $0x788] sm:$0xff]  ;;  %v3224_v50 = vld [vmem:[#allocation14 + $0x990] sm:$0xff]  ;;  %v2981_v43 = vld [vmem:[#allocation14 + $0x1f8] sm:$0xff] }
 0x34b   :  { %3510 = vmatpush.msrb.mxu2 %v3164_v46  ;;  %3411 = vmatpush.msra.mxu1 %v3159_v48  ;;  %v3161_v46 = vld [vmem:[#allocation14 + $0x798] sm:$0xff] }
 0x34c   :  { %3398 = vmatpush.msra.mxu0 %v3067_v6  ;;  %3455 = vmatpush.msra.mxu3 %v2952_v53  ;;  %v3155_v6 = vld [vmem:[#allocation14 + $0x768] sm:$0xff]  ;;  %v3220_v53 = vld [vmem:[#allocation14 + $0x970] sm:$0xff]  ;;  %v2973_v48 = vld [vmem:[#allocation14 + $0x1b8] sm:$0xff] }
 0x34d   :  { %3511 = vmatpush.msrb.mxu2 %v3160_v51  ;;  %3412 = vmatpush.msra.mxu1 %v3155_v6  ;;  %v2969_v51 = vld [vmem:[#allocation14 + $0x198] sm:$0xff] }
 0x34e   :  { %3399 = vmatpush.msra.mxu0 %v3063_v56  ;;  %3456 = vmatpush.msra.mxu3 %v2948_v57  ;;  %v3028_v56 = vld [vmem:[#allocation14 + $0x370] sm:$0xff]  ;;  %v3151_v57 = vld [vmem:[#allocation14 + $0x748] sm:$0xff] }
 0x34f   :  { %3512 = vmatpush.msrb.mxu2 %v3156_v55  ;;  %3413 = vmatpush.msra.mxu1 %v3151_v57  ;;  %v3149_v55 = vld [vmem:[#allocation14 + $0x738] sm:$0xff] }
 0x350   :  { %3400 = vmatpush.msra.mxu0 %v3059_v62  ;;  %3457 = vmatpush.msra.mxu3 %v2944_v0  ;;  %v3024_v62 = vld [vmem:[#allocation14 + $0x350] sm:$0xff]  ;;  %v3147_v0 = vld [vmem:[#allocation14 + $0x728] sm:$0xff]  ;;  %v3145_v57 = vld [vmem:[#allocation14 + $0x718] sm:$0xff] }
 0x351   :  { %3513 = vmatpush.msrb.mxu2 %v3152_v27  ;;  %3414 = vmatpush.msra.mxu1 %v3147_v0  ;;  %v2957_v27 = vld [vmem:[#allocation14 + $0x138] sm:$0xff] }
 0x352   :  { %3401 = vmatpush.msra.mxu0 %v3055_v2  ;;  %3458 = vmatpush.msra.mxu3 %v2940_v3  ;;  %v3020_v2 = vld [vmem:[#allocation14 + $0x330] sm:$0xff]  ;;  %v2953_v0 = vld [vmem:[#allocation14 + $0x118] sm:$0xff] }
 0x353   :  { %v3144_v3 = vld [vmem:[#allocation14 + $0x710] sm:$0xff]  ;;  %3514 = vmatpush.msrb.mxu2 %v3148_v34  ;;  %3415 = vmatpush.msra.mxu1 %v3143_v32  ;;  %v3137_v34 = vld [vmem:[#allocation14 + $0x6d8] sm:$0xff] }
 0x354   :  { %3402 = vmatpush.msra.mxu0 %v3051_v5  ;;  %v2750_v15 = vpop.f32.mrf.mxu0  ;;  %3459 = vmatpush.msra.mxu3 %v2936_v7  ;;  %v3139_v5 = vld [vmem:[#allocation14 + $0x6e8] sm:$0xff]  ;;  %v3012_v7 = vld [vmem:[#allocation14 + $0x2f0] sm:$0xff]  ;;  %v3133_v32 = vld [vmem:[#allocation14 + $0x6b8] sm:$0xff] }
 0x355   :  { %v2751_v60 = vadd.f32 %v2750_v15, %v2731_v11  ;;  %3515 = vmatpush.msrb.mxu2 %v3144_v3  ;;  %v3008_v11 = vld [vmem:[#allocation14 + $0x2d0] sm:$0xff]  ;;  %3416 = vmatpush.msra.mxu1 %v3139_v5  ;;  %v2945_v3 = vld [vmem:[#allocation14 + $0xd8] sm:$0xff] }
 0x356   :  { %3403 = vmatpush.msra.mxu0 %v3047_v9  ;;  %3460 = vmatpush.msra.mxu3 %v2932_v12  ;;  %v3135_v9 = vld [vmem:[#allocation14 + $0x6c8] sm:$0xff]  ;;  %v3196_v12 = vld [vmem:[#allocation14 + $0x8b0] sm:$0xff]  ;;  %v2941_v5 = vld [vmem:[#allocation14 + $0xb8] sm:$0xff] }
 0x357   :  { %v2771_v21 = vadd.f32 %v2770_v26, %v2751_v60  ;;  %3516 = vmatpush.msrb.mxu2 %v3140_v13  ;;  %v3132_v15 = vld [vmem:[#allocation14 + $0x6b0] sm:$0xff]  ;;  %3417 = vmatpush.msra.mxu1 %v3135_v9  ;;  %v2937_v9 = vld [vmem:[#allocation14 + $0x98] sm:$0xff] }
 0x358   :  { %3461 = vmatpush.msra.mxu3 %v2928_v18  ;;  %v3192_v60 = vld [vmem:[#allocation14 + $0x890] sm:$0xff]  ;;  %v3127_v18 = vld [vmem:[#allocation14 + $0x688] sm:$0xff] }
 0x359   :  { %v2791_v29 = vadd.f32 %v2790_v25, %v2771_v21  ;;  %3517 = vmatpush.msrb.mxu2 %v3136_v10  ;;  %v3000_v26 = vld [vmem:[#allocation14 + $0x290] sm:$0xff]  ;;  %3418 = vmatpush.msra.mxu1 %v3131_v59  ;;  %v3123_v21 = vld [vmem:[#allocation14 + $0x668] sm:$0xff]  ;;  %v2933_v59 = vld [vmem:[#allocation14 + $0x78] sm:$0xff] }
 0x35a   :  { %3462 = vmatpush.msra.mxu3 %v2924_v23  ;;  %v3124_v23 = vld [vmem:[#allocation14 + $0x670] sm:$0xff] }
 0x35b   :  { %v2811_v35 = vadd.f32 %v2810_v33, %v2791_v29  ;;  %3518 = vmatpush.msrb.mxu2 %v3132_v15  ;;  %v3184_v25 = vld [vmem:[#allocation14 + $0x850] sm:$0xff]  ;;  %3419 = vmatpush.msra.mxu1 %v3127_v18  ;;  %v3115_v33 = vld [vmem:[#allocation14 + $0x628] sm:$0xff]  ;;  %v2929_v18 = vld [vmem:[#allocation14 + $0x58] sm:$0xff] }
 0x35c   :  { %3463 = vmatpush.msra.mxu3 %v2920_v30  ;;  %v3120_v29 = vld [vmem:[#allocation14 + $0x650] sm:$0xff] }
 0x35d   :  { %v4984_v39 = vmax.f32 %v2811_v35, 0.0  ;;  %3464 = vmatmul.f32.vlgmr.msra.gmra.mxu3 %v4970_v37  ;;  %3519 = vmatpush.msrb.mxu2 %v3128_v19  ;;  %v2992_v30 = vld [vmem:[#allocation14 + $0x250] sm:$0xff] }
 0x35e   :  { %3528 = vmatpush.msrb.mxu3 %v3236_v36  ;;  %3420 = vmatpush.msra.mxu1 %v3123_v21  ;;  %v2988_v35 = vld [vmem:[#allocation14 + $0x230] sm:$0xff]  ;;  %v2925_v21 = vld [vmem:[#allocation14 + $0x38] sm:$0xff] }
 0x35f   :  { %3324 = vmatmul.f32.vlgmr.msrb.gmra.mxu0 %v4984_v39  ;;  %3520 = vmatpush.msrb.mxu2 %v3124_v23  ;;  %v3176_v36 = vld [vmem:[#allocation14 + $0x810] sm:$0xff] }
 0x360   :  { %3468 = vmatpush.msrb.mxu0 %v3044_v40  ;;  %3529 = vmatpush.msrb.mxu3 %v3232_v41  ;;  %v2984_v40 = vld [vmem:[#allocation14 + $0x210] sm:$0xff]  ;;  %v2890_v13 = vpop.f32.mrf.mxu3 }
 0x361   :  { %3421 = vmatpush.msra.mxu1 %v3119_v28  ;;  %3521 = vmatpush.msrb.mxu2 %v3120_v29  ;;  %v3112_v41 = vld [vmem:[#allocation14 + $0x610] sm:$0xff]  ;;  %v2921_v28 = vld [vmem:[#allocation14 + $0x18] sm:$0xff] }
 0x362   :  { %3469 = vmatpush.msrb.mxu0 %v3040_v44  ;;  %3530 = vmatpush.msrb.mxu3 %v3228_v45  ;;  %v3165_v44 = vld [vmem:[#allocation14 + $0x7b8] sm:$0xff]  ;;  %v3104_v19 = vld [vmem:[#allocation14 + $0x5d0] sm:$0xff] }
 0x363   :  { %3422 = vmatpush.msra.mxu1 %v3115_v33  ;;  %3522 = vmatpush.msrb.mxu2 %v3116_v54  ;;  %v2977_v45 = vld [vmem:[#allocation14 + $0x1d8] sm:$0xff]  ;;  %v3100_v23 = vld [vmem:[#allocation14 + $0x5b0] sm:$0xff] }
 0x364   :  { %3470 = vmatpush.msrb.mxu0 %v3036_v49  ;;  %3531 = vmatpush.msrb.mxu3 %v3224_v50  ;;  %v3157_v49 = vld [vmem:[#allocation14 + $0x778] sm:$0xff]  ;;  %v2407_v50 = vperm.slane %v4966_v1, 4  ;;  %v3096_v29 = vld [vmem:[#allocation14 + $0x590] sm:$0xff] }
 0x365   :  { %3423 = vmatpush.msra.mxu1 %v3111_v38  ;;  %3523 = vmatpush.msrb.mxu2 %v3112_v41  ;;  %v3092_v33 = vld [vmem:[#allocation14 + $0x570] sm:$0xff]  ;;  %v3093_v54 = vld [vmem:[#allocation14 + $0x578] sm:$0xff] }
 0x366   :  { %3471 = vmatpush.msrb.mxu0 %v3032_v52  ;;  %3532 = vmatpush.msrb.mxu3 %v3220_v53  ;;  %v3153_v52 = vld [vmem:[#allocation14 + $0x758] sm:$0xff] }
 0x367   :  { %3404 = vmatmul.f32.vlgmr.msra.gmra.mxu0 %v4979_v22  ;;  %v2965_v53 = vld [vmem:[#allocation14 + $0x178] sm:$0xff] }
 0x368   :  { %3472 = vmatpush.msrb.mxu0 %v3028_v56  ;;  %3533 = vmatpush.msrb.mxu3 %v3216_v47  ;;  %v2961_v47 = vld [vmem:[#allocation14 + $0x158] sm:$0xff] }
 0x369   :  { %v3229_v38 = vld [vmem:[#allocation14 + $0x9b8] sm:$0xff] }
 0x36a   :  { %3473 = vmatpush.msrb.mxu0 %v3024_v62  ;;  %3534 = vmatpush.msrb.mxu3 %v3212_v63  ;;  %v2850_v62 = vpop.f32.mrf.mxu1  ;;  %v3141_v63 = vld [vmem:[#allocation14 + $0x6f8] sm:$0xff] }
 0x36b   :  { %v3085_v41 = vld [vmem:[#allocation14 + $0x538] sm:$0xff] }
 0x36c   :  { %3474 = vmatpush.msrb.mxu0 %v3020_v2  ;;  %3535 = vmatpush.msrb.mxu3 %v3208_v16  ;;  %v2949_v2 = vld [vmem:[#allocation14 + $0xf8] sm:$0xff]  ;;  %v2870_v16 = vpop.f32.mrf.mxu2 }
 0x36e   :  { %3475 = vmatpush.msrb.mxu0 %v3016_v4  ;;  %3536 = vmatpush.msrb.mxu3 %v3204_v14  ;;  %v3129_v14 = vld [vmem:[#allocation14 + $0x698] sm:$0xff] }
 0x370   :  { %3476 = vmatpush.msrb.mxu0 %v3012_v7  ;;  %3537 = vmatpush.msrb.mxu3 %v3200_v8  ;;  %v3125_v7 = vld [vmem:[#allocation14 + $0x678] sm:$0xff] }
 0x372   :  { %3477 = vmatpush.msrb.mxu0 %v3008_v11  ;;  %3538 = vmatpush.msrb.mxu3 %v3196_v12  ;;  %v3121_v11 = vld [vmem:[#allocation14 + $0x658] sm:$0xff] }
 0x374   :  { %3478 = vmatpush.msrb.mxu0 %v3004_v17  ;;  %3539 = vmatpush.msrb.mxu3 %v3192_v60  ;;  %v2830_v6 = vpop.f32.mrf.mxu0  ;;  %v3108_v17 = vld [vmem:[#allocation14 + $0x5f0] sm:$0xff]  ;;  %v3109_v60 = vld [vmem:[#allocation14 + $0x5f8] sm:$0xff] }
 0x375   :  { %v2831_v56 = vadd.f32 %v2830_v6, %v2407_v50  ;;  %v3213_v50 = vld [vmem:[#allocation14 + $0x938] sm:$0xff] }
 0x376   :  { %3479 = vmatpush.msrb.mxu0 %v3000_v26  ;;  %3540 = vmatpush.msrb.mxu3 %v3188_v20  ;;  %v3117_v26 = vld [vmem:[#allocation14 + $0x638] sm:$0xff] }
 0x377   :  { %v2851_v1 = vadd.f32 %v2850_v62, %v2831_v56  ;;  %v3105_v20 = vld [vmem:[#allocation14 + $0x5d8] sm:$0xff]  ;;  %v3056_v62 = vld [vmem:[#allocation14 + $0x450] sm:$0xff] }
 0x378   :  { %3480 = vmatpush.msrb.mxu0 %v2996_v24  ;;  %3541 = vmatpush.msrb.mxu3 %v3184_v25  ;;  %v3113_v24 = vld [vmem:[#allocation14 + $0x618] sm:$0xff] }
 0x379   :  { %v2871_v4 = vadd.f32 %v2870_v16, %v2851_v1  ;;  %v3101_v25 = vld [vmem:[#allocation14 + $0x5b8] sm:$0xff]  ;;  %v3048_v16 = vld [vmem:[#allocation14 + $0x410] sm:$0xff] }
 0x37a   :  { %3481 = vmatpush.msrb.mxu0 %v2992_v30  ;;  %3542 = vmatpush.msrb.mxu3 %v3180_v31  ;;  %v3097_v30 = vld [vmem:[#allocation14 + $0x598] sm:$0xff] }
 0x37b   :  { %v2891_v8 = vadd.f32 %v2890_v13, %v2871_v4  ;;  %v3237_v31 = vld [vmem:[#allocation14 + $0x9f8] sm:$0xff] }
 0x37c   :  { %3482 = vmatpush.msrb.mxu0 %v2988_v35  ;;  %3543 = vmatpush.msrb.mxu3 %v3176_v36  ;;  %v3233_v35 = vld [vmem:[#allocation14 + $0x9d8] sm:$0xff]  ;;  %v3088_v36 = vld [vmem:[#allocation14 + $0x550] sm:$0xff] }
 0x37d   :  { %v3069_v6 = vld [vmem:[#allocation14 + $0x4b8] sm:$0xff] }
 0x37e   :  { %3608 = vmatpush.msra.mxu3 %v3173_v58  ;;  %3483 = vmatpush.msrb.mxu0 %v2984_v40  ;;  %v3089_v58 = vld [vmem:[#allocation14 + $0x558] sm:$0xff]  ;;  %v3084_v40 = vld [vmem:[#allocation14 + $0x530] sm:$0xff] }
 0x37f   :  { %3484 = vmatmul.f32.vlgmr.msrb.gmra.mxu0 %v4974_v61  ;;  %v3205_v56 = vld [vmem:[#allocation14 + $0x8f8] sm:$0xff] }
 0x380   :  { %3609 = vmatpush.msra.mxu3 %v3169_v42  ;;  %3548 = vmatpush.msra.mxu0 %v2981_v43  ;;  %v3080_v42 = vld [vmem:[#allocation14 + $0x510] sm:$0xff]  ;;  %v3081_v43 = vld [vmem:[#allocation14 + $0x518] sm:$0xff] }
 0x381   :  { %v3197_v1 = vld [vmem:[#allocation14 + $0x8b8] sm:$0xff] }
 0x382   :  { %3610 = vmatpush.msra.mxu3 %v3165_v44  ;;  %3549 = vmatpush.msra.mxu0 %v2977_v45  ;;  %v3221_v44 = vld [vmem:[#allocation14 + $0x978] sm:$0xff]  ;;  %v3076_v45 = vld [vmem:[#allocation14 + $0x4f0] sm:$0xff] }
 0x383   :  { %v3045_v4 = vld [vmem:[#allocation14 + $0x3f8] sm:$0xff] }
 0x384   :  { %3611 = vmatpush.msra.mxu3 %v3161_v46  ;;  %3550 = vmatpush.msra.mxu0 %v2973_v48  ;;  %v3077_v46 = vld [vmem:[#allocation14 + $0x4f8] sm:$0xff] }
 0x385   :  { %v3217_v48 = vld [vmem:[#allocation14 + $0x958] sm:$0xff] }
 0x386   :  { %3612 = vmatpush.msra.mxu3 %v3157_v49  ;;  %3551 = vmatpush.msra.mxu0 %v2969_v51  ;;  %v3073_v49 = vld [vmem:[#allocation14 + $0x4d8] sm:$0xff]  ;;  %v3068_v51 = vld [vmem:[#allocation14 + $0x4b0] sm:$0xff] }
 0x387   :  { %v3181_v13 = vld [vmem:[#allocation14 + $0x838] sm:$0xff] }
 0x388   :  { %3613 = vmatpush.msra.mxu3 %v3153_v52  ;;  %3552 = vmatpush.msra.mxu0 %v2965_v53  ;;  %v3209_v52 = vld [vmem:[#allocation14 + $0x918] sm:$0xff]  ;;  %v3064_v53 = vld [vmem:[#allocation14 + $0x490] sm:$0xff] }
 0x38a   :  { %3614 = vmatpush.msra.mxu3 %v3149_v55  ;;  %3553 = vmatpush.msra.mxu0 %v2961_v47  ;;  %v3065_v55 = vld [vmem:[#allocation14 + $0x498] sm:$0xff]  ;;  %v3060_v47 = vld [vmem:[#allocation14 + $0x470] sm:$0xff] }
 0x38c   :  { %3615 = vmatpush.msra.mxu3 %v3145_v57  ;;  %3554 = vmatpush.msra.mxu0 %v2957_v27  ;;  %v3061_v57 = vld [vmem:[#allocation14 + $0x478] sm:$0xff] }
 0x38d   :  { %v3201_v27 = vld [vmem:[#allocation14 + $0x8d8] sm:$0xff] }
 0x38e   :  { %3616 = vmatpush.msra.mxu3 %v3141_v63  ;;  %3555 = vmatpush.msra.mxu0 %v2953_v0  ;;  %v3057_v63 = vld [vmem:[#allocation14 + $0x458] sm:$0xff]  ;;  %v3052_v0 = vld [vmem:[#allocation14 + $0x430] sm:$0xff] }
 0x390   :  { %3617 = vmatpush.msra.mxu3 %v3137_v34  ;;  %3556 = vmatpush.msra.mxu0 %v2949_v2  ;;  %v3053_v34 = vld [vmem:[#allocation14 + $0x438] sm:$0xff] }
 0x391   :  { %v3193_v2 = vld [vmem:[#allocation14 + $0x898] sm:$0xff] }
 0x392   :  { %3618 = vmatpush.msra.mxu3 %v3133_v32  ;;  %3557 = vmatpush.msra.mxu0 %v2945_v3  ;;  %v3049_v32 = vld [vmem:[#allocation14 + $0x418] sm:$0xff] }
 0x393   :  { %v3189_v3 = vld [vmem:[#allocation14 + $0x878] sm:$0xff] }
 0x394   :  { %3619 = vmatpush.msra.mxu3 %v3129_v14  ;;  %v2910_v10 = vpop.f32.mrf.mxu0  ;;  %3558 = vmatpush.msra.mxu0 %v2941_v5  ;;  %v3185_v14 = vld [vmem:[#allocation14 + $0x858] sm:$0xff] }
 0x395   :  { %v2911_v12 = vadd.f32 %v2910_v10, %v2891_v8  ;;  %v3041_v5 = vld [vmem:[#allocation14 + $0x3d8] sm:$0xff] }
 0x396   :  { %3620 = vmatpush.msra.mxu3 %v3125_v7  ;;  %3559 = vmatpush.msra.mxu0 %v2937_v9  ;;  %v3037_v7 = vld [vmem:[#allocation14 + $0x3b8] sm:$0xff] }
 0x397   :  { %v4991_v15 = vmax.f32 %v2911_v12, 0.0  ;;  %v3177_v8 = vld [vmem:[#allocation14 + $0x818] sm:$0xff] }
 0x398   :  { %3621 = vmatpush.msra.mxu3 %v3121_v11  ;;  %3560 = vmatpush.msra.mxu0 %v2933_v59  ;;  %v3033_v9 = vld [vmem:[#allocation14 + $0x398] sm:$0xff]  ;;  %v3745_v59 = vld [vmem:[#allocation17 + $0x2e8] sm:$0xff] }
 0x399   :  { %3344 = vmatmul.f32.vlgmr.msrb.gmra.mxu1 %v4991_v15  ;;  %3444 = vmatmul.f32.vlgmr.msra.gmra.mxu2 %v4991_v15  ;;  %v3029_v10 = vld [vmem:[#allocation14 + $0x378] sm:$0xff] }
 0x39a   :  { %3488 = vmatpush.msrb.mxu1 %v3108_v17  ;;  %3544 = vmatmul.f32.vlgmr.msrb.gmra.mxu3 %v4991_v15  ;;  %v3025_v11 = vld [vmem:[#allocation14 + $0x358] sm:$0xff] }
 0x39b   :  { %3588 = vmatpush.msra.mxu2 %v3109_v60  ;;  %3561 = vmatpush.msra.mxu0 %v2929_v18  ;;  %v3021_v12 = vld [vmem:[#allocation14 + $0x338] sm:$0xff] }
 0x39c   :  { %3489 = vmatpush.msrb.mxu1 %v3104_v19  ;;  %3622 = vmatpush.msra.mxu3 %v3117_v26  ;;  %v3017_v17 = vld [vmem:[#allocation14 + $0x318] sm:$0xff]  ;;  %v3736_v26 = vld [vmem:[#allocation17 + $0x2a0] sm:$0xff] }
 0x39d   :  { %3589 = vmatpush.msra.mxu2 %v3105_v20  ;;  %3562 = vmatpush.msra.mxu0 %v2925_v21  ;;  %v3013_v60 = vld [vmem:[#allocation14 + $0x2f8] sm:$0xff] }
 0x39e   :  { %3490 = vmatpush.msrb.mxu1 %v3100_v23  ;;  %3623 = vmatpush.msra.mxu3 %v3113_v24  ;;  %v3739_v18 = vld [vmem:[#allocation17 + $0x2b8] sm:$0xff]  ;;  %v3730_v23 = vld [vmem:[#allocation17 + $0x270] sm:$0xff] }
 0x39f   :  { %3590 = vmatpush.msra.mxu2 %v3101_v25  ;;  %3563 = vmatpush.msra.mxu0 %v2921_v28  ;;  %v3009_v19 = vld [vmem:[#allocation14 + $0x2d8] sm:$0xff] }
 0x3a0   :  { %3491 = vmatpush.msrb.mxu1 %v3096_v29  ;;  %3564 = vmatmul.f32.vlgmr.msra.gmra.mxu0 %v4970_v37  ;;  %v3225_v37 = vld [vmem:[#allocation14 + $0x998] sm:$0xff]  ;;  %v3724_v29 = vld [vmem:[#allocation17 + $0x240] sm:$0xff] }
 0x3a1   :  { %3591 = vmatpush.msra.mxu2 %v3097_v30  ;;  %3628 = vmatpush.msrb.mxu0 %v3237_v31  ;;  %v3005_v20 = vld [vmem:[#allocation14 + $0x2b8] sm:$0xff]  ;;  %v3721_v31 = vld [vmem:[#allocation17 + $0x228] sm:$0xff] }
 0x3a2   :  { %3424 = vmatmul.f32.vlgmr.msra.gmra.mxu1 %v4984_v39  ;;  %3524 = vmatmul.f32.vlgmr.msrb.gmra.mxu2 %v4984_v39  ;;  %v3001_v21 = vld [vmem:[#allocation14 + $0x298] sm:$0xff] }
 0x3a3   :  { %3492 = vmatpush.msrb.mxu1 %v3092_v33  ;;  %3592 = vmatpush.msra.mxu2 %v3093_v54  ;;  %v2997_v24 = vld [vmem:[#allocation14 + $0x278] sm:$0xff] }
 0x3a4   :  { %3624 = vmatmul.f32.vlgmr.msra.gmra.mxu3 %v4984_v39  ;;  %3629 = vmatpush.msrb.mxu0 %v3233_v35  ;;  %v3072_v39 = vld [vmem:[#allocation14 + $0x4d0] sm:$0xff]  ;;  %v3727_v25 = vld [vmem:[#allocation17 + $0x258] sm:$0xff] }
 0x3a5   :  { %3493 = vmatpush.msrb.mxu1 %v3088_v36  ;;  %3593 = vmatpush.msra.mxu2 %v3089_v58  ;;  %v2993_v28 = vld [vmem:[#allocation14 + $0x258] sm:$0xff]  ;;  %v3697_v35 = vld [vmem:[#allocation17 + $0x168] sm:$0xff] }
 0x3a6   :  { %3630 = vmatpush.msrb.mxu0 %v3229_v38  ;;  %v2989_v30 = vld [vmem:[#allocation14 + $0x238] sm:$0xff] }
 0x3a7   :  { %3494 = vmatpush.msrb.mxu1 %v3084_v40  ;;  %3594 = vmatpush.msra.mxu2 %v3085_v41  ;;  %v2985_v33 = vld [vmem:[#allocation14 + $0x218] sm:$0xff]  ;;  %v3712_v40 = vld [vmem:[#allocation17 + $0x1e0] sm:$0xff]  ;;  %v3709_v41 = vld [vmem:[#allocation17 + $0x1c8] sm:$0xff] }
 0x3a8   :  { %3631 = vmatpush.msrb.mxu0 %v3225_v37  ;;  %v3718_v54 = vld [vmem:[#allocation17 + $0x210] sm:$0xff]  ;;  %v3715_v36 = vld [vmem:[#allocation17 + $0x1f8] sm:$0xff]  ;;  %v3688_v37 = vld [vmem:[#allocation17 + $0x120] sm:$0xff] }
 0x3a9   :  { %3495 = vmatpush.msrb.mxu1 %v3080_v42  ;;  %3595 = vmatpush.msra.mxu2 %v3081_v43  ;;  %v3694_v58 = vld [vmem:[#allocation17 + $0x150] sm:$0xff]  ;;  %v3691_v38 = vld [vmem:[#allocation17 + $0x138] sm:$0xff]  ;;  %v3793_v42 = vld [vmem:[#allocation17 + $0x468] sm:$0xff] }
 0x3aa   :  { %3632 = vmatpush.msrb.mxu0 %v3221_v44  ;;  %3892 = vmatpush.msrb.mxu3 %v3793_v42  ;;  %v3706_v43 = vld [vmem:[#allocation17 + $0x1b0] sm:$0xff]  ;;  %v3832_v42 = vld [vmem:[#allocation17 + $0x5a0] sm:$0xff] }
 0x3ab   :  { %3496 = vmatpush.msrb.mxu1 %v3076_v45  ;;  %3596 = vmatpush.msra.mxu2 %v3077_v46  ;;  %v3790_v44 = vld [vmem:[#allocation17 + $0x450] sm:$0xff]  ;;  %v3685_v45 = vld [vmem:[#allocation17 + $0x108] sm:$0xff]  ;;  %v3787_v46 = vld [vmem:[#allocation17 + $0x438] sm:$0xff] }
 0x3ac   :  { %3633 = vmatpush.msrb.mxu0 %v3217_v48  ;;  %3893 = vmatpush.msrb.mxu3 %v3790_v44  ;;  %v3682_v48 = vld [vmem:[#allocation17 + $0xf0] sm:$0xff]  ;;  %v3671_v44 = vld [vmem:[#allocation17 + $0x98] sm:$0xff] }
 0x3ad   :  { %3497 = vmatpush.msrb.mxu1 %v3072_v39  ;;  %3597 = vmatpush.msra.mxu2 %v3073_v49  ;;  %v3784_v39 = vld [vmem:[#allocation17 + $0x420] sm:$0xff] }
 0x3ae   :  { %3634 = vmatpush.msrb.mxu0 %v3213_v50  ;;  %3894 = vmatpush.msrb.mxu3 %v3787_v46  ;;  %v3700_v49 = vld [vmem:[#allocation17 + $0x180] sm:$0xff]  ;;  %v3679_v50 = vld [vmem:[#allocation17 + $0xd8] sm:$0xff] }
 0x3af   :  { %3498 = vmatpush.msrb.mxu1 %v3068_v51  ;;  %3598 = vmatpush.msra.mxu2 %v3069_v6  ;;  %v3746_v51 = vld [vmem:[#allocation17 + $0x2f0] sm:$0xff]  ;;  %v3781_v6 = vld [vmem:[#allocation17 + $0x408] sm:$0xff]  ;;  %v3779_v46 = vld [vmem:[#allocation17 + $0x3f8] sm:$0xff] }
 0x3b0   :  { %3635 = vmatpush.msrb.mxu0 %v3209_v52  ;;  %3895 = vmatpush.msrb.mxu3 %v3784_v39  ;;  %v3676_v52 = vld [vmem:[#allocation17 + $0xc0] sm:$0xff]  ;;  %v3265_v39 = vpop.f32.mrf.mxu1 }
 0x3b1   :  { %3499 = vmatpush.msrb.mxu1 %v3064_v53  ;;  %3599 = vmatpush.msra.mxu2 %v3065_v55  ;;  %v3743_v53 = vld [vmem:[#allocation17 + $0x2d8] sm:$0xff]  ;;  %v3778_v55 = vld [vmem:[#allocation17 + $0x3f0] sm:$0xff] }
 0x3b2   :  { %3636 = vmatpush.msrb.mxu0 %v3205_v56  ;;  %v3673_v56 = vld [vmem:[#allocation17 + $0xa8] sm:$0xff]  ;;  %3896 = vmatpush.msrb.mxu3 %v3781_v6 }
 0x3b3   :  { %3500 = vmatpush.msrb.mxu1 %v3060_v47  ;;  %3600 = vmatpush.msra.mxu2 %v3061_v57  ;;  %v3740_v47 = vld [vmem:[#allocation17 + $0x2c0] sm:$0xff]  ;;  %v3775_v57 = vld [vmem:[#allocation17 + $0x3d8] sm:$0xff]  ;;  %v3665_v6 = vld [vmem:[#allocation17 + $0x68] sm:$0xff] }
 0x3b4   :  { %3637 = vmatpush.msrb.mxu0 %v3201_v27  ;;  %v3670_v27 = vld [vmem:[#allocation17 + $0x90] sm:$0xff]  ;;  %3897 = vmatpush.msrb.mxu3 %v3778_v55 }
 0x3b5   :  { %3501 = vmatpush.msrb.mxu1 %v3056_v62  ;;  %3601 = vmatpush.msra.mxu2 %v3057_v63  ;;  %v3737_v62 = vld [vmem:[#allocation17 + $0x2a8] sm:$0xff]  ;;  %v3772_v63 = vld [vmem:[#allocation17 + $0x3c0] sm:$0xff] }
 0x3b6   :  { %3638 = vmatpush.msrb.mxu0 %v3197_v1  ;;  %v3667_v1 = vld [vmem:[#allocation17 + $0x78] sm:$0xff]  ;;  %3898 = vmatpush.msrb.mxu3 %v3775_v57  ;;  %v3820_v57 = vld [vmem:[#allocation17 + $0x540] sm:$0xff] }
 0x3b7   :  { %3502 = vmatpush.msrb.mxu1 %v3052_v0  ;;  %3602 = vmatpush.msra.mxu2 %v3053_v34  ;;  %v3734_v0 = vld [vmem:[#allocation17 + $0x290] sm:$0xff]  ;;  %v3769_v34 = vld [vmem:[#allocation17 + $0x3a8] sm:$0xff] }
 0x3b8   :  { %3639 = vmatpush.msrb.mxu0 %v3193_v2  ;;  %v3664_v2 = vld [vmem:[#allocation17 + $0x60] sm:$0xff]  ;;  %3899 = vmatpush.msrb.mxu3 %v3772_v63 }
 0x3b9   :  { %3503 = vmatpush.msrb.mxu1 %v3048_v16  ;;  %3603 = vmatpush.msra.mxu2 %v3049_v32  ;;  %v3731_v16 = vld [vmem:[#allocation17 + $0x278] sm:$0xff]  ;;  %v3766_v32 = vld [vmem:[#allocation17 + $0x390] sm:$0xff] }
 0x3ba   :  { %3640 = vmatpush.msrb.mxu0 %v3189_v3  ;;  %3504 = vmatmul.f32.vlgmr.msrb.gmra.mxu1 %v4979_v22  ;;  %v3661_v3 = vld [vmem:[#allocation17 + $0x48] sm:$0xff] }
 0x3bb   :  { %3568 = vmatpush.msra.mxu1 %v3045_v4  ;;  %3604 = vmatmul.f32.vlgmr.msra.gmra.mxu2 %v4979_v22  ;;  %v3742_v22 = vld [vmem:[#allocation17 + $0x2d0] sm:$0xff]  ;;  %v3728_v4 = vld [vmem:[#allocation17 + $0x260] sm:$0xff] }
 0x3bc   :  { %3641 = vmatpush.msrb.mxu0 %v3185_v14  ;;  %3872 = vmatpush.msrb.mxu2 %v3745_v59  ;;  %v3763_v14 = vld [vmem:[#allocation17 + $0x378] sm:$0xff]  ;;  %v3757_v59 = vld [vmem:[#allocation17 + $0x348] sm:$0xff] }
 0x3bd   :  { %3569 = vmatpush.msra.mxu1 %v3041_v5  ;;  %3900 = vmatpush.msrb.mxu3 %v3769_v34  ;;  %v3658_v5 = vld [vmem:[#allocation17 + $0x30] sm:$0xff]  ;;  %v3767_v34 = vld [vmem:[#allocation17 + $0x398] sm:$0xff] }
 0x3be   :  { %3642 = vmatpush.msrb.mxu0 %v3181_v13  ;;  %3873 = vmatpush.msrb.mxu2 %v3742_v22  ;;  %v3725_v13 = vld [vmem:[#allocation17 + $0x248] sm:$0xff]  ;;  %v3754_v22 = vld [vmem:[#allocation17 + $0x330] sm:$0xff] }
 0x3bf   :  { %3570 = vmatpush.msra.mxu1 %v3037_v7  ;;  %3901 = vmatpush.msrb.mxu3 %v3766_v32  ;;  %v3655_v7 = vld [vmem:[#allocation17 + $0x18] sm:$0xff]  ;;  %v3814_v32 = vld [vmem:[#allocation17 + $0x510] sm:$0xff] }
 0x3c0   :  { %3643 = vmatpush.msrb.mxu0 %v3177_v8  ;;  %3874 = vmatpush.msrb.mxu2 %v3739_v18  ;;  %v3652_v8 = vld [vmem:[#allocation17] sm:$0xff] }
 0x3c1   :  { %3571 = vmatpush.msra.mxu1 %v3033_v9  ;;  %3644 = vmatmul.f32.vlgmr.msrb.gmra.mxu0 %v4991_v15  ;;  %v3733_v15 = vld [vmem:[#allocation17 + $0x288] sm:$0xff]  ;;  %v3698_v9 = vld [vmem:[#allocation17 + $0x170] sm:$0xff]  ;;  %v3716_v18 = vld [vmem:[#allocation17 + $0x200] sm:$0xff] }
 0x3c2   :  { %3875 = vmatpush.msrb.mxu2 %v3736_v26  ;;  %3902 = vmatpush.msrb.mxu3 %v3763_v14  ;;  %v3751_v26 = vld [vmem:[#allocation17 + $0x318] sm:$0xff]  ;;  %v3653_v14 = vld [vmem:[#allocation17 + $0x8] sm:$0xff] }
 0x3c3   :  { %3572 = vmatpush.msra.mxu1 %v3029_v10  ;;  %v3760_v10 = vld [vmem:[#allocation17 + $0x360] sm:$0xff] }
 0x3c4   :  { %3876 = vmatpush.msrb.mxu2 %v3733_v15  ;;  %3903 = vmatpush.msrb.mxu3 %v3760_v10  ;;  %v3686_v15 = vld [vmem:[#allocation17 + $0x110] sm:$0xff]  ;;  %v3761_v10 = vld [vmem:[#allocation17 + $0x368] sm:$0xff] }
 0x3c5   :  { %3573 = vmatpush.msra.mxu1 %v3025_v11  ;;  %v3722_v11 = vld [vmem:[#allocation17 + $0x230] sm:$0xff] }
 0x3c6   :  { %3877 = vmatpush.msrb.mxu2 %v3730_v23  ;;  %3904 = vmatpush.msrb.mxu3 %v3757_v59  ;;  %v3710_v23 = vld [vmem:[#allocation17 + $0x1d0] sm:$0xff]  ;;  %v3699_v59 = vld [vmem:[#allocation17 + $0x178] sm:$0xff] }
 0x3c7   :  { %3574 = vmatpush.msra.mxu1 %v3021_v12  ;;  %v3695_v12 = vld [vmem:[#allocation17 + $0x158] sm:$0xff] }
 0x3c8   :  { %3878 = vmatpush.msrb.mxu2 %v3727_v25  ;;  %3905 = vmatpush.msrb.mxu3 %v3754_v22  ;;  %v3794_v25 = vld [vmem:[#allocation17 + $0x470] sm:$0xff] }
 0x3c9   :  { %3575 = vmatpush.msra.mxu1 %v3017_v17  ;;  %v3719_v17 = vld [vmem:[#allocation17 + $0x218] sm:$0xff]  ;;  %v3758_v22 = vld [vmem:[#allocation17 + $0x350] sm:$0xff] }
 0x3ca   :  { %3879 = vmatpush.msrb.mxu2 %v3724_v29  ;;  %3906 = vmatpush.msrb.mxu3 %v3751_v26  ;;  %v3680_v29 = vld [vmem:[#allocation17 + $0xe0] sm:$0xff]  ;;  %v3805_v26 = vld [vmem:[#allocation17 + $0x4c8] sm:$0xff] }
 0x3cb   :  { %3576 = vmatpush.msra.mxu1 %v3013_v60  ;;  %v3692_v60 = vld [vmem:[#allocation17 + $0x140] sm:$0xff] }
 0x3cc   :  { %3880 = vmatpush.msrb.mxu2 %v3721_v31  ;;  %v3791_v31 = vld [vmem:[#allocation17 + $0x458] sm:$0xff] }
 0x3cd   :  { %3577 = vmatpush.msra.mxu1 %v3009_v19  ;;  %v3689_v19 = vld [vmem:[#allocation17 + $0x128] sm:$0xff] }
 0x3ce   :  { %3881 = vmatpush.msrb.mxu2 %v3718_v54  ;;  %v3838_v54 = vld [vmem:[#allocation17 + $0x5d0] sm:$0xff] }
 0x3cf   :  { %3578 = vmatpush.msra.mxu1 %v3005_v20  ;;  %v3713_v20 = vld [vmem:[#allocation17 + $0x1e8] sm:$0xff] }
 0x3d0   :  { %3882 = vmatpush.msrb.mxu2 %v3715_v36  ;;  %v3677_v36 = vld [vmem:[#allocation17 + $0xc8] sm:$0xff] }
 0x3d1   :  { %3579 = vmatpush.msra.mxu1 %v3001_v21  ;;  %v3748_v21 = vld [vmem:[#allocation17 + $0x300] sm:$0xff] }
 0x3d2   :  { %3883 = vmatpush.msrb.mxu2 %v3712_v40  ;;  %3907 = vmatpush.msrb.mxu3 %v3748_v21  ;;  %v3835_v40 = vld [vmem:[#allocation17 + $0x5b8] sm:$0xff]  ;;  %v3693_v21 = vld [vmem:[#allocation17 + $0x148] sm:$0xff] }
 0x3d3   :  { %3580 = vmatpush.msra.mxu1 %v2997_v24  ;;  %v3683_v24 = vld [vmem:[#allocation17 + $0xf8] sm:$0xff] }
 0x3d4   :  { %3884 = vmatpush.msrb.mxu2 %v3709_v41  ;;  %3972 = vmatpush.msra.mxu3 %v3794_v25  ;;  %v3785_v41 = vld [vmem:[#allocation17 + $0x428] sm:$0xff] }
 0x3d5   :  { %3581 = vmatpush.msra.mxu1 %v2993_v28  ;;  %v3707_v28 = vld [vmem:[#allocation17 + $0x1b8] sm:$0xff] }
 0x3d6   :  { %3885 = vmatpush.msrb.mxu2 %v3706_v43  ;;  %3973 = vmatpush.msra.mxu3 %v3791_v31  ;;  %v3782_v43 = vld [vmem:[#allocation17 + $0x410] sm:$0xff]  ;;  %v3749_v31 = vld [vmem:[#allocation17 + $0x308] sm:$0xff] }
 0x3d7   :  { %3582 = vmatpush.msra.mxu1 %v2989_v30  ;;  %v3841_v30 = vld [vmem:[#allocation17 + $0x5e8] sm:$0xff] }
 0x3d8   :  { %3912 = vmatpush.msra.mxu0 %v3841_v30  ;;  %v3690_v30 = vld [vmem:[#allocation17 + $0x130] sm:$0xff] }
 0x3d9   :  { %3583 = vmatpush.msra.mxu1 %v2985_v33  ;;  %v3704_v33 = vld [vmem:[#allocation17 + $0x1a0] sm:$0xff] }
 0x3da   :  { %3584 = vmatmul.f32.vlgmr.msra.gmra.mxu1 %v4974_v61  ;;  %v3703_v61 = vld [vmem:[#allocation17 + $0x198] sm:$0xff]  ;;  %3913 = vmatpush.msra.mxu0 %v3838_v54 }
 0x3db   :  { %3852 = vmatpush.msrb.mxu1 %v3697_v35  ;;  %3886 = vmatpush.msrb.mxu2 %v3703_v61  ;;  %v3788_v35 = vld [vmem:[#allocation17 + $0x440] sm:$0xff] }
 0x3dc   :  { %3974 = vmatpush.msra.mxu3 %v3788_v35  ;;  %3914 = vmatpush.msra.mxu0 %v3835_v40  ;;  %v3325_v63 = vpop.f32.mrf.mxu0  ;;  %v3687_v35 = vld [vmem:[#allocation17 + $0x118] sm:$0xff]  ;;  %v3684_v40 = vld [vmem:[#allocation17 + $0x100] sm:$0xff] }
 0x3dd   :  { %3853 = vmatpush.msrb.mxu1 %v3694_v58  ;;  %3887 = vmatpush.msrb.mxu2 %v3700_v49  ;;  %v3701_v58 = vld [vmem:[#allocation17 + $0x188] sm:$0xff]  ;;  %v3826_v49 = vld [vmem:[#allocation17 + $0x570] sm:$0xff] }
 0x3de   :  { %3975 = vmatpush.msra.mxu3 %v3785_v41  ;;  %3915 = vmatpush.msra.mxu0 %v3832_v42  ;;  %v3747_v42 = vld [vmem:[#allocation17 + $0x2f8] sm:$0xff] }
 0x3df   :  { %3854 = vmatpush.msrb.mxu1 %v3691_v38  ;;  %3952 = vmatpush.msra.mxu2 %v3746_v51  ;;  %v3674_v38 = vld [vmem:[#allocation17 + $0xb0] sm:$0xff]  ;;  %v3285_v51 = vpop.f32.mrf.mxu2 }
 0x3e0   :  { %3976 = vmatpush.msra.mxu3 %v3782_v43  ;;  %v3839_v43 = vld [vmem:[#allocation17 + $0x5d8] sm:$0xff] }
 0x3e1   :  { %3855 = vmatpush.msrb.mxu1 %v3688_v37  ;;  %3953 = vmatpush.msra.mxu2 %v3743_v53  ;;  %v5004_v37 = vld [vmem:[#allocation16] sm:$0xf]  ;;  %v3773_v53 = vld [vmem:[#allocation17 + $0x3c8] sm:$0xff] }
 0x3e2   :  { %v3240_v61 = vperm.slane %v5004_v37, 0  ;;  %3977 = vmatpush.msra.mxu3 %v3779_v46  ;;  %v3836_v46 = vld [vmem:[#allocation17 + $0x5c0] sm:$0xff] }
 0x3e3   :  { %3856 = vmatpush.msrb.mxu1 %v3685_v45  ;;  %3954 = vmatpush.msra.mxu2 %v3740_v47  ;;  %v3829_v45 = vld [vmem:[#allocation17 + $0x588] sm:$0xff]  ;;  %v3662_v47 = vld [vmem:[#allocation17 + $0x50] sm:$0xff] }
 0x3e4   :  { %3916 = vmatpush.msra.mxu0 %v3829_v45  ;;  %v3266_v55 = vadd.f32 %v3265_v39, %v3240_v61  ;;  %v3744_v45 = vld [vmem:[#allocation17 + $0x2e0] sm:$0xff]  ;;  %v3678_v61 = vld [vmem:[#allocation17 + $0xd0] sm:$0xff]  ;;  %v3833_v39 = vld [vmem:[#allocation17 + $0x5a8] sm:$0xff] }
 0x3e5   :  { %3857 = vmatpush.msrb.mxu1 %v3682_v48  ;;  %3955 = vmatpush.msra.mxu2 %v3737_v62  ;;  %v3668_v48 = vld [vmem:[#allocation17 + $0x80] sm:$0xff] }
 0x3e6   :  { %3917 = vmatpush.msra.mxu0 %v3826_v49  ;;  %v3286_v62 = vadd.f32 %v3285_v51, %v3266_v55  ;;  %v3675_v49 = vld [vmem:[#allocation17 + $0xb8] sm:$0xff]  ;;  %v3830_v51 = vld [vmem:[#allocation17 + $0x590] sm:$0xff]  ;;  %v3669_v55 = vld [vmem:[#allocation17 + $0x88] sm:$0xff] }
 0x3e7   :  { %3858 = vmatpush.msrb.mxu1 %v3679_v50  ;;  %3956 = vmatpush.msra.mxu2 %v3734_v0  ;;  %v3776_v50 = vld [vmem:[#allocation17 + $0x3e0] sm:$0xff]  ;;  %v3817_v0 = vld [vmem:[#allocation17 + $0x528] sm:$0xff] }
 0x3e8   :  { %3978 = vmatpush.msra.mxu3 %v3776_v50  ;;  %v3738_v50 = vld [vmem:[#allocation17 + $0x2b0] sm:$0xff] }
 0x3e9   :  { %3859 = vmatpush.msrb.mxu1 %v3676_v52  ;;  %3957 = vmatpush.msra.mxu2 %v3731_v16  ;;  %v3823_v52 = vld [vmem:[#allocation17 + $0x558] sm:$0xff]  ;;  %v3656_v16 = vld [vmem:[#allocation17 + $0x20] sm:$0xff] }
 0x3ea   :  { %3918 = vmatpush.msra.mxu0 %v3823_v52  ;;  %3979 = vmatpush.msra.mxu3 %v3773_v53  ;;  %v3735_v52 = vld [vmem:[#allocation17 + $0x298] sm:$0xff] }
 0x3eb   :  { %3860 = vmatpush.msrb.mxu1 %v3673_v56  ;;  %3958 = vmatpush.msra.mxu2 %v3728_v4  ;;  %v3305_v56 = vpop.f32.mrf.mxu3  ;;  %v3827_v53 = vld [vmem:[#allocation17 + $0x578] sm:$0xff] }
 0x3ec   :  { %3919 = vmatpush.msra.mxu0 %v3820_v57  ;;  %v3666_v57 = vld [vmem:[#allocation17 + $0x70] sm:$0xff] }
 0x3ed   :  { %3861 = vmatpush.msrb.mxu1 %v3670_v27  ;;  %3959 = vmatpush.msra.mxu2 %v3725_v13  ;;  %v3770_v27 = vld [vmem:[#allocation17 + $0x3b0] sm:$0xff] }
 0x3ee   :  { %3980 = vmatpush.msra.mxu3 %v3770_v27  ;;  %3920 = vmatpush.msra.mxu0 %v3817_v0  ;;  %v3242_v27 = vperm.slane %v5004_v37, 2  ;;  %v3663_v0 = vld [vmem:[#allocation17 + $0x58] sm:$0xff] }
 0x3ef   :  { %3862 = vmatpush.msrb.mxu1 %v3667_v1  ;;  %3960 = vmatpush.msra.mxu2 %v3722_v11  ;;  %v3659_v1 = vld [vmem:[#allocation17 + $0x38] sm:$0xff] }
 0x3f0   :  { %3981 = vmatpush.msra.mxu3 %v3767_v34  ;;  %3921 = vmatpush.msra.mxu0 %v3814_v32  ;;  %v3726_v34 = vld [vmem:[#allocation17 + $0x250] sm:$0xff]  ;;  %v3660_v32 = vld [vmem:[#allocation17 + $0x40] sm:$0xff] }
 0x3f1   :  { %3863 = vmatpush.msrb.mxu1 %v3664_v2  ;;  %3961 = vmatpush.msra.mxu2 %v3719_v17  ;;  %v3306_v2 = vadd.f32 %v3305_v56, %v3286_v62  ;;  %v3808_v17 = vld [vmem:[#allocation17 + $0x4e0] sm:$0xff]  ;;  %v3729_v62 = vld [vmem:[#allocation17 + $0x268] sm:$0xff] }
 0x3f2   :  { %v3732_v56 = vld [vmem:[#allocation17 + $0x280] sm:$0xff] }
 0x3f3   :  { %3864 = vmatpush.msrb.mxu1 %v3661_v3  ;;  %3962 = vmatpush.msra.mxu2 %v3716_v18  ;;  %v3764_v3 = vld [vmem:[#allocation17 + $0x380] sm:$0xff]  ;;  %v3326_v4 = vadd.f32 %v3325_v63, %v3306_v2  ;;  %v3385_v11 = vpop.f32.mrf.mxu3  ;;  %v3405_v18 = vpop.f32.mrf.mxu0  ;;  %v3821_v63 = vld [vmem:[#allocation17 + $0x548] sm:$0xff]  ;;  %v3818_v2 = vld [vmem:[#allocation17 + $0x530] sm:$0xff] }
 0x3f4   :  { %3982 = vmatpush.msra.mxu3 %v3764_v3 }
 0x3f5   :  { %3865 = vmatpush.msrb.mxu1 %v3658_v5  ;;  %3963 = vmatpush.msra.mxu2 %v3713_v20  ;;  %v3241_v5 = vperm.slane %v5004_v37, 1  ;;  %v3755_v20 = vld [vmem:[#allocation17 + $0x338] sm:$0xff] }
 0x3f6   :  { %3983 = vmatpush.msra.mxu3 %v3761_v10  ;;  %v3654_v10 = vld [vmem:[#allocation17 + $0x10] sm:$0xff] }
 0x3f7   :  { %3866 = vmatpush.msrb.mxu1 %v3655_v7  ;;  %3964 = vmatpush.msra.mxu2 %v3710_v23  ;;  %v3365_v7 = vpop.f32.mrf.mxu2  ;;  %v3802_v23 = vld [vmem:[#allocation17 + $0x4b0] sm:$0xff] }
 0x3f8   :  { %3984 = vmatpush.msra.mxu3 %v3758_v22  ;;  %v3809_v22 = vld [vmem:[#allocation17 + $0x4e8] sm:$0xff] }
 0x3f9   :  { %3867 = vmatpush.msrb.mxu1 %v3652_v8  ;;  %3965 = vmatpush.msra.mxu2 %v3707_v28  ;;  %v3799_v28 = vld [vmem:[#allocation17 + $0x498] sm:$0xff] }
 0x3fa   :  { %3985 = vmatpush.msra.mxu3 %v3755_v20 }
 0x3fb   :  { %3932 = vmatpush.msra.mxu1 %v3698_v9  ;;  %3966 = vmatpush.msra.mxu2 %v3704_v33  ;;  %v3811_v9 = vld [vmem:[#allocation17 + $0x4f8] sm:$0xff] }
 0x3fc   :  { %3922 = vmatpush.msra.mxu0 %v3811_v9 }
 0x3fd   :  { %3933 = vmatpush.msra.mxu1 %v3695_v12  ;;  %3967 = vmatpush.msra.mxu2 %v3701_v58  ;;  %v3842_v58 = vld [vmem:[#allocation17 + $0x5f0] sm:$0xff] }
 0x3fe   :  { %3923 = vmatpush.msra.mxu0 %v3808_v17 }
 0x3ff   :  { %3934 = vmatpush.msra.mxu1 %v3692_v60  ;;  %v3366_v60 = vadd.f32 %v3365_v7, %v3241_v5  ;;  %v3657_v5 = vld [vmem:[#allocation17 + $0x28] sm:$0xff]  ;;  %v3720_v7 = vld [vmem:[#allocation17 + $0x220] sm:$0xff] }
 0x400   :  { %3924 = vmatpush.msra.mxu0 %v3805_v26  ;;  %v3806_v26 = vld [vmem:[#allocation17 + $0x4d0] sm:$0xff] }
 0x401   :  { %3935 = vmatpush.msra.mxu1 %v3689_v19  ;;  %v3696_v19 = vld [vmem:[#allocation17 + $0x160] sm:$0xff] }
 0x402   :  { %3925 = vmatpush.msra.mxu0 %v3802_v23 }
 0x403   :  { %3936 = vmatpush.msra.mxu1 %v3686_v15  ;;  %v3386_v15 = vadd.f32 %v3385_v11, %v3366_v60 }
 0x404   :  { %3926 = vmatpush.msra.mxu0 %v3799_v28  ;;  %v3800_v28 = vld [vmem:[#allocation17 + $0x4a0] sm:$0xff] }
 0x405   :  { %3937 = vmatpush.msra.mxu1 %v3683_v24  ;;  %v3752_v24 = vld [vmem:[#allocation17 + $0x320] sm:$0xff]  ;;  %v3406_v25 = vadd.f32 %v3405_v18, %v3386_v15  ;;  %v3714_v18 = vld [vmem:[#allocation17 + $0x1f0] sm:$0xff]  ;;  %v3711_v15 = vld [vmem:[#allocation17 + $0x1d8] sm:$0xff] }
 0x406   :  { %3986 = vmatpush.msra.mxu3 %v3752_v24  ;;  %v3795_v24 = vld [vmem:[#allocation17 + $0x478] sm:$0xff] }
 0x407   :  { %3938 = vmatpush.msra.mxu1 %v3680_v29 }
 0x408   :  { %3987 = vmatpush.msra.mxu3 %v3749_v31  ;;  %v3797_v31 = vld [vmem:[#allocation17 + $0x488] sm:$0xff] }
 0x409   :  { %3939 = vmatpush.msra.mxu1 %v3677_v36  ;;  %v3796_v36 = vld [vmem:[#allocation17 + $0x480] sm:$0xff] }
 0x40a   :  { %3927 = vmatpush.msra.mxu0 %v3796_v36  ;;  %v3780_v36 = vld [vmem:[#allocation17 + $0x400] sm:$0xff] }
 0x40b   :  { %3940 = vmatpush.msra.mxu1 %v3674_v38 }
 0x40c   :  { %3992 = vmatpush.msrb.mxu0 %v3842_v58  ;;  %v3777_v58 = vld [vmem:[#allocation17 + $0x3e8] sm:$0xff] }
 0x40d   :  { %3941 = vmatpush.msra.mxu1 %v3671_v44  ;;  %v3681_v44 = vld [vmem:[#allocation17 + $0xe8] sm:$0xff] }
 0x40e   :  { %3993 = vmatpush.msrb.mxu0 %v3839_v43  ;;  %v3243_v43 = vperm.slane %v5004_v37, 3 }
 0x40f   :  { %3942 = vmatpush.msra.mxu1 %v3668_v48  ;;  %v3741_v48 = vld [vmem:[#allocation17 + $0x2c8] sm:$0xff] }
 0x410   :  { %3994 = vmatpush.msrb.mxu0 %v3836_v46  ;;  %v3762_v46 = vld [vmem:[#allocation17 + $0x370] sm:$0xff] }
 0x411   :  { %3943 = vmatpush.msra.mxu1 %v3665_v6  ;;  %v3672_v6 = vld [vmem:[#allocation17 + $0xa0] sm:$0xff] }
 0x412   :  { %3995 = vmatpush.msrb.mxu0 %v3833_v39 }
 0x413   :  { %3944 = vmatpush.msra.mxu1 %v3662_v47  ;;  %v3824_v47 = vld [vmem:[#allocation17 + $0x560] sm:$0xff] }
 0x414   :  { %3996 = vmatpush.msrb.mxu0 %v3830_v51 }
 0x415   :  { %3945 = vmatpush.msra.mxu1 %v3659_v1  ;;  %v3465_v1 = vpop.f32.mrf.mxu3 }
 0x416   :  { %v3345_v13 = vpop.f32.mrf.mxu1  ;;  %3997 = vmatpush.msrb.mxu0 %v3827_v53  ;;  %v3466_v3 = vadd.f32 %v3465_v1, %v3242_v27  ;;  %v3840_v27 = vld [vmem:[#allocation17 + $0x5e0] sm:$0xff]  ;;  %v3831_v1 = vld [vmem:[#allocation17 + $0x598] sm:$0xff] }
 0x417   :  { %3946 = vmatpush.msra.mxu1 %v3656_v16  ;;  %v3346_v8 = vadd.f32 %v3345_v13, %v3326_v4  ;;  %v3485_v16 = vpop.f32.mrf.mxu0  ;;  %v3723_v4 = vld [vmem:[#allocation17 + $0x238] sm:$0xff] }
 0x418   :  { %3998 = vmatpush.msrb.mxu0 %v3824_v47  ;;  %v3486_v13 = vadd.f32 %v3485_v16, %v3466_v3  ;;  %v3819_v16 = vld [vmem:[#allocation17 + $0x538] sm:$0xff]  ;;  %v3813_v3 = vld [vmem:[#allocation17 + $0x508] sm:$0xff] }
 0x419   :  { %3947 = vmatpush.msra.mxu1 %v3653_v14  ;;  %v5008_v12 = vmax.f32 %v3346_v8, 0.0  ;;  %v3815_v14 = vld [vmem:[#allocation17 + $0x518] sm:$0xff]  ;;  %v3812_v8 = vld [vmem:[#allocation17 + $0x500] sm:$0xff] }
 0x41a   :  { %3999 = vmatpush.msrb.mxu0 %v3821_v63  ;;  %v3834_v63 = vld [vmem:[#allocation17 + $0x5b0] sm:$0xff] }
 0x41b   :  { %3868 = vmatmul.f32.vlgmr.msrb.gmra.mxu1 %v5008_v12 }
 0x41c   :  { %4012 = vmatpush.msrb.mxu1 %v3699_v59  ;;  %v3445_v54 = vpop.f32.mrf.mxu2  ;;  %4000 = vmatpush.msrb.mxu0 %v3818_v2  ;;  %v3717_v59 = vld [vmem:[#allocation17 + $0x208] sm:$0xff]  ;;  %v3822_v2 = vld [vmem:[#allocation17 + $0x550] sm:$0xff] }
 0x41e   :  { %4013 = vmatpush.msrb.mxu1 %v3696_v19  ;;  %4001 = vmatpush.msrb.mxu0 %v3815_v14  ;;  %v3545_v19 = vpop.f32.mrf.mxu3  ;;  %v3807_v14 = vld [vmem:[#allocation17 + $0x4d8] sm:$0xff] }
 0x41f   :  { %v3425_v29 = vpop.f32.mrf.mxu1 }
 0x420   :  { %v3426_v33 = vadd.f32 %v3425_v29, %v3406_v25  ;;  %4014 = vmatpush.msrb.mxu1 %v3693_v21  ;;  %4002 = vmatpush.msrb.mxu0 %v3812_v8  ;;  %v3803_v21 = vld [vmem:[#allocation17 + $0x4b8] sm:$0xff]  ;;  %v3708_v25 = vld [vmem:[#allocation17 + $0x1c0] sm:$0xff] }
 0x421   :  { %v3792_v29 = vld [vmem:[#allocation17 + $0x460] sm:$0xff]  ;;  %v4125_v8 = vld [vmem:[#allocation20 + $0xf0] sm:$0xff] }
 0x422   :  { %v3446_v38 = vadd.f32 %v3445_v54, %v3426_v33  ;;  %4015 = vmatpush.msrb.mxu1 %v3690_v30  ;;  %4003 = vmatpush.msrb.mxu0 %v3809_v22  ;;  %v3705_v30 = vld [vmem:[#allocation17 + $0x1a8] sm:$0xff]  ;;  %v3702_v33 = vld [vmem:[#allocation17 + $0x190] sm:$0xff] }
 0x423   :  { %3948 = vmatmul.f32.vlgmr.msra.gmra.mxu1 %v5008_v12  ;;  %v3786_v54 = vld [vmem:[#allocation17 + $0x430] sm:$0xff] }
 0x424   :  { %v5012_v41 = vmax.f32 %v3446_v38, 0.0  ;;  %4016 = vmatpush.msrb.mxu1 %v3687_v35  ;;  %4004 = vmatpush.msrb.mxu0 %v3806_v26  ;;  %v3783_v35 = vld [vmem:[#allocation17 + $0x418] sm:$0xff]  ;;  %v3774_v38 = vld [vmem:[#allocation17 + $0x3d0] sm:$0xff] }
 0x425   :  { %v3525_v17 = vpop.f32.mrf.mxu2  ;;  %v4113_v22 = vld [vmem:[#allocation20 + $0x90] sm:$0xff] }
 0x426   :  { %3888 = vmatmul.f32.vlgmr.msrb.gmra.mxu2 %v5012_v41  ;;  %4017 = vmatpush.msrb.mxu1 %v3684_v40  ;;  %v3771_v40 = vld [vmem:[#allocation17 + $0x3b8] sm:$0xff] }
 0x427   :  { %4032 = vmatpush.msrb.mxu2 %v3747_v42  ;;  %4005 = vmatpush.msrb.mxu0 %v3803_v21  ;;  %v3768_v42 = vld [vmem:[#allocation17 + $0x3a0] sm:$0xff]  ;;  %v4105_v26 = vld [vmem:[#allocation20 + $0x50] sm:$0xff] }
 0x428   :  { %4018 = vmatpush.msrb.mxu1 %v3681_v44  ;;  %v3765_v44 = vld [vmem:[#allocation17 + $0x388] sm:$0xff]  ;;  %v4126_v21 = vld [vmem:[#allocation20 + $0xf8] sm:$0xff] }
 0x429   :  { %4033 = vmatpush.msrb.mxu2 %v3744_v45  ;;  %4006 = vmatpush.msrb.mxu0 %v3800_v28  ;;  %v3565_v45 = vpop.f32.mrf.mxu0  ;;  %v4099_v28 = vld [vmem:[#allocation20 + $0x20] sm:$0xff] }
 0x42a   :  { %4019 = vmatpush.msrb.mxu1 %v3678_v61  ;;  %v3759_v61 = vld [vmem:[#allocation17 + $0x358] sm:$0xff] }
 0x42b   :  { %4034 = vmatpush.msrb.mxu2 %v3741_v48  ;;  %4007 = vmatpush.msrb.mxu0 %v3797_v31  ;;  %v4097_v31 = vld [vmem:[#allocation20 + $0x10] sm:$0xff] }
 0x42c   :  { %4020 = vmatpush.msrb.mxu1 %v3675_v49  ;;  %v3756_v49 = vld [vmem:[#allocation17 + $0x340] sm:$0xff] }
 0x42d   :  { %4035 = vmatpush.msrb.mxu2 %v3738_v50 }
 0x42e   :  { %3968 = vmatmul.f32.vlgmr.msra.gmra.mxu2 %v5012_v41  ;;  %4021 = vmatpush.msrb.mxu1 %v3672_v6  ;;  %v3753_v6 = vld [vmem:[#allocation17 + $0x328] sm:$0xff] }
 0x42f   :  { %4036 = vmatpush.msrb.mxu2 %v3735_v52  ;;  %v3625_v52 = vpop.f32.mrf.mxu3 }
 0x430   :  { %4022 = vmatpush.msrb.mxu1 %v3669_v55  ;;  %v3750_v55 = vld [vmem:[#allocation17 + $0x310] sm:$0xff] }
 0x431   :  { %4037 = vmatpush.msrb.mxu2 %v3732_v56 }
 0x432   :  { %4023 = vmatpush.msrb.mxu1 %v3666_v57  ;;  %v3843_v57 = vld [vmem:[#allocation17 + $0x5f8] sm:$0xff] }
 0x433   :  { %4038 = vmatpush.msrb.mxu2 %v3729_v62  ;;  %v3837_v62 = vld [vmem:[#allocation17 + $0x5c8] sm:$0xff] }
 0x434   :  { %4024 = vmatpush.msrb.mxu1 %v3663_v0  ;;  %v3828_v0 = vld [vmem:[#allocation17 + $0x580] sm:$0xff] }
 0x435   :  { %4039 = vmatpush.msrb.mxu2 %v3726_v34  ;;  %v3825_v34 = vld [vmem:[#allocation17 + $0x568] sm:$0xff] }
 0x436   :  { %4025 = vmatpush.msrb.mxu1 %v3660_v32  ;;  %v3816_v32 = vld [vmem:[#allocation17 + $0x520] sm:$0xff] }
 0x437   :  { %v3505_v9 = vpop.f32.mrf.mxu1  ;;  %4040 = vmatpush.msrb.mxu2 %v3723_v4  ;;  %v3810_v4 = vld [vmem:[#allocation17 + $0x4f0] sm:$0xff] }
 0x438   :  { %v3506_v11 = vadd.f32 %v3505_v9, %v3486_v13  ;;  %4026 = vmatpush.msrb.mxu1 %v3657_v5  ;;  %v3804_v5 = vld [vmem:[#allocation17 + $0x4c0] sm:$0xff]  ;;  %v3801_v13 = vld [vmem:[#allocation17 + $0x4a8] sm:$0xff] }
 0x439   :  { %4041 = vmatpush.msrb.mxu2 %v3720_v7  ;;  %v3798_v7 = vld [vmem:[#allocation17 + $0x490] sm:$0xff]  ;;  %v4123_v9 = vld [vmem:[#allocation20 + $0xe0] sm:$0xff] }
 0x43a   :  { %v3526_v60 = vadd.f32 %v3525_v17, %v3506_v11  ;;  %4027 = vmatpush.msrb.mxu1 %v3654_v10  ;;  %v4121_v10 = vld [vmem:[#allocation20 + $0xd0] sm:$0xff]  ;;  %v4119_v11 = vld [vmem:[#allocation20 + $0xc0] sm:$0xff] }
 0x43b   :  { %4042 = vmatpush.msrb.mxu2 %v3717_v59  ;;  %4028 = vmatmul.f32.vlgmr.msrb.gmra.mxu1 %v5008_v12  ;;  %v3789_v12 = vld [vmem:[#allocation17 + $0x448] sm:$0xff]  ;;  %v4117_v59 = vld [vmem:[#allocation20 + $0xb0] sm:$0xff] }
 0x43c   :  { %v3546_v20 = vadd.f32 %v3545_v19, %v3526_v60  ;;  %4197 = vmatpush.msra.mxu1 %v4125_v8  ;;  %v4115_v17 = vld [vmem:[#allocation20 + $0xa0] sm:$0xff]  ;;  %v4188_v8 = vld [vmem:[#allocation20 + $0x2e8] sm:$0xff] }
 0x43d   :  { %4043 = vmatpush.msrb.mxu2 %v3714_v18  ;;  %v4111_v60 = vld [vmem:[#allocation20 + $0x80] sm:$0xff]  ;;  %v4109_v18 = vld [vmem:[#allocation20 + $0x70] sm:$0xff] }
 0x43e   :  { %v3650_v23 = vmax.f32 %v3546_v20, 0.0  ;;  %v3605_v50 = vpop.f32.mrf.mxu2  ;;  %v3645_v37 = vpop.f32.mrf.mxu0  ;;  %4198 = vmatpush.msra.mxu1 %v4123_v9  ;;  %v4107_v19 = vld [vmem:[#allocation20 + $0x60] sm:$0xff]  ;;  %v4132_v9 = vld [vmem:[#allocation20 + $0x128] sm:$0xff] }
 0x43f   :  { %4044 = vmatpush.msrb.mxu2 %v3711_v15  ;;  %v4103_v20 = vld [vmem:[#allocation20 + $0x40] sm:$0xff]  ;;  %v4157_v15 = vld [vmem:[#allocation20 + $0x1f0] sm:$0xff] }
 0x440   :  { %3908 = vmatmul.f32.vlgmr.msrb.gmra.mxu3 %v3650_v23  ;;  %4199 = vmatpush.msra.mxu1 %v4121_v10  ;;  %v4185_v10 = vld [vmem:[#allocation20 + $0x2d0] sm:$0xff] }
 0x441   :  { %4052 = vmatpush.msrb.mxu3 %v3795_v24  ;;  %4045 = vmatpush.msrb.mxu2 %v3708_v25  ;;  %v4155_v24 = vld [vmem:[#allocation20 + $0x1e0] sm:$0xff]  ;;  %v4124_v25 = vld [vmem:[#allocation20 + $0xe8] sm:$0xff] }
 0x442   :  { %4200 = vmatpush.msra.mxu1 %v4119_v11  ;;  %v4186_v11 = vld [vmem:[#allocation20 + $0x2d8] sm:$0xff] }
 0x443   :  { %4053 = vmatpush.msrb.mxu3 %v3792_v29  ;;  %4046 = vmatpush.msrb.mxu2 %v3705_v30  ;;  %v4153_v29 = vld [vmem:[#allocation20 + $0x1d0] sm:$0xff]  ;;  %v4122_v30 = vld [vmem:[#allocation20 + $0xd8] sm:$0xff] }
 0x444   :  { %4201 = vmatpush.msra.mxu1 %v4117_v59  ;;  %v4130_v59 = vld [vmem:[#allocation20 + $0x118] sm:$0xff] }
 0x445   :  { %4054 = vmatpush.msrb.mxu3 %v3789_v12  ;;  %4047 = vmatpush.msrb.mxu2 %v3702_v33  ;;  %v4151_v12 = vld [vmem:[#allocation20 + $0x1c0] sm:$0xff]  ;;  %v4120_v33 = vld [vmem:[#allocation20 + $0xc8] sm:$0xff] }
 0x446   :  { %4048 = vmatmul.f32.vlgmr.msrb.gmra.mxu2 %v5012_v41  ;;  %v3566_v41 = vadd.f32 %v3565_v45, %v3243_v43  ;;  %4202 = vmatpush.msra.mxu1 %v4115_v17  ;;  %v4145_v43 = vld [vmem:[#allocation20 + $0x190] sm:$0xff]  ;;  %v4154_v45 = vld [vmem:[#allocation20 + $0x1d8] sm:$0xff]  ;;  %v4183_v17 = vld [vmem:[#allocation20 + $0x2c0] sm:$0xff] }
 0x447   :  { %4055 = vmatpush.msrb.mxu3 %v3786_v54  ;;  %4217 = vmatpush.msra.mxu2 %v4157_v15  ;;  %v4095_v54 = vld [vmem:[#allocation20] sm:$0xff]  ;;  %v4177_v15 = vld [vmem:[#allocation20 + $0x290] sm:$0xff] }
 0x448   :  { %3988 = vmatmul.f32.vlgmr.msra.gmra.mxu3 %v3650_v23  ;;  %4203 = vmatpush.msra.mxu1 %v4113_v22  ;;  %v4184_v22 = vld [vmem:[#allocation20 + $0x2c8] sm:$0xff] }
 0x449   :  { %4056 = vmatpush.msrb.mxu3 %v3783_v35  ;;  %4218 = vmatpush.msra.mxu2 %v4155_v24  ;;  %v4149_v35 = vld [vmem:[#allocation20 + $0x1b0] sm:$0xff]  ;;  %v4176_v24 = vld [vmem:[#allocation20 + $0x288] sm:$0xff] }
 0x44a   :  { %4204 = vmatpush.msra.mxu1 %v4111_v60  ;;  %v4128_v60 = vld [vmem:[#allocation20 + $0x108] sm:$0xff] }
 0x44b   :  { %4057 = vmatpush.msrb.mxu3 %v3780_v36  ;;  %4219 = vmatpush.msra.mxu2 %v4153_v29  ;;  %v4118_v36 = vld [vmem:[#allocation20 + $0xb8] sm:$0xff] }
 0x44c   :  { %4205 = vmatpush.msra.mxu1 %v4109_v18  ;;  %v4181_v18 = vld [vmem:[#allocation20 + $0x2b0] sm:$0xff]  ;;  %v4174_v29 = vld [vmem:[#allocation20 + $0x278] sm:$0xff] }
 0x44d   :  { %4058 = vmatpush.msrb.mxu3 %v3777_v58  ;;  %4220 = vmatpush.msra.mxu2 %v4151_v12  ;;  %v4158_v58 = vld [vmem:[#allocation20 + $0x1f8] sm:$0xff]  ;;  %v4172_v12 = vld [vmem:[#allocation20 + $0x268] sm:$0xff] }
 0x44e   :  { %4206 = vmatpush.msra.mxu1 %v4107_v19  ;;  %v4182_v19 = vld [vmem:[#allocation20 + $0x2b8] sm:$0xff] }
 0x44f   :  { %4059 = vmatpush.msrb.mxu3 %v3774_v38  ;;  %4221 = vmatpush.msra.mxu2 %v4149_v35  ;;  %v4147_v38 = vld [vmem:[#allocation20 + $0x1a0] sm:$0xff] }
 0x450   :  { %4207 = vmatpush.msra.mxu1 %v4105_v26  ;;  %v4179_v26 = vld [vmem:[#allocation20 + $0x2a0] sm:$0xff] }
 0x451   :  { %4060 = vmatpush.msrb.mxu3 %v3771_v40  ;;  %v4116_v40 = vld [vmem:[#allocation20 + $0xa8] sm:$0xff]  ;;  %4222 = vmatpush.msra.mxu2 %v4147_v38 }
 0x452   :  { %4208 = vmatpush.msra.mxu1 %v4103_v20  ;;  %v4180_v20 = vld [vmem:[#allocation20 + $0x2a8] sm:$0xff] }
 0x453   :  { %4061 = vmatpush.msrb.mxu3 %v3768_v42  ;;  %v4156_v42 = vld [vmem:[#allocation20 + $0x1e8] sm:$0xff]  ;;  %4223 = vmatpush.msra.mxu2 %v4145_v43  ;;  %v4165_v43 = vld [vmem:[#allocation20 + $0x230] sm:$0xff] }
 0x455   :  { %4062 = vmatpush.msrb.mxu3 %v3765_v44  ;;  %v4114_v44 = vld [vmem:[#allocation20 + $0x98] sm:$0xff] }
 0x457   :  { %v3585_v48 = vpop.f32.mrf.mxu1  ;;  %4063 = vmatpush.msrb.mxu3 %v3762_v46  ;;  %v4143_v46 = vld [vmem:[#allocation20 + $0x180] sm:$0xff] }
 0x458   :  { %v3586_v39 = vadd.f32 %v3585_v48, %v3566_v41  ;;  %v4112_v41 = vld [vmem:[#allocation20 + $0x88] sm:$0xff]  ;;  %v4141_v48 = vld [vmem:[#allocation20 + $0x170] sm:$0xff]  ;;  %4224 = vmatpush.msra.mxu2 %v4143_v46 }
 0x459   :  { %4064 = vmatpush.msrb.mxu3 %v3759_v61  ;;  %v4152_v61 = vld [vmem:[#allocation20 + $0x1c8] sm:$0xff] }
 0x45a   :  { %v3606_v51 = vadd.f32 %v3605_v50, %v3586_v39  ;;  %v4110_v39 = vld [vmem:[#allocation20 + $0x78] sm:$0xff]  ;;  %v4139_v50 = vld [vmem:[#allocation20 + $0x160] sm:$0xff]  ;;  %4225 = vmatpush.msra.mxu2 %v4141_v48  ;;  %v4164_v48 = vld [vmem:[#allocation20 + $0x228] sm:$0xff] }
 0x45b   :  { %4065 = vmatpush.msrb.mxu3 %v3756_v49  ;;  %v4150_v49 = vld [vmem:[#allocation20 + $0x1b8] sm:$0xff] }
 0x45c   :  { %v3626_v53 = vadd.f32 %v3625_v52, %v3606_v51  ;;  %v4108_v51 = vld [vmem:[#allocation20 + $0x68] sm:$0xff]  ;;  %v4137_v52 = vld [vmem:[#allocation20 + $0x150] sm:$0xff]  ;;  %4226 = vmatpush.msra.mxu2 %v4139_v50 }
 0x45d   :  { %4066 = vmatpush.msrb.mxu3 %v3753_v6  ;;  %v4148_v6 = vld [vmem:[#allocation20 + $0x1a8] sm:$0xff] }
 0x45e   :  { %v3646_v56 = vadd.f32 %v3645_v37, %v3626_v53  ;;  %v4106_v53 = vld [vmem:[#allocation20 + $0x58] sm:$0xff]  ;;  %v4135_v37 = vld [vmem:[#allocation20 + $0x140] sm:$0xff]  ;;  %4227 = vmatpush.msra.mxu2 %v4137_v52 }
 0x45f   :  { %4067 = vmatpush.msrb.mxu3 %v3750_v55  ;;  %v4146_v55 = vld [vmem:[#allocation20 + $0x198] sm:$0xff] }
 0x460   :  { %v3651_v47 = vmax.f32 %v3646_v56, 0.0  ;;  %4068 = vmatmul.f32.vlgmr.msrb.gmra.mxu3 %v3650_v23  ;;  %v4101_v23 = vld [vmem:[#allocation20 + $0x30] sm:$0xff]  ;;  %v4104_v56 = vld [vmem:[#allocation20 + $0x48] sm:$0xff]  ;;  %4228 = vmatpush.msra.mxu2 %v4135_v37  ;;  %v4159_v37 = vld [vmem:[#allocation20 + $0x200] sm:$0xff] }
 0x461   :  { %4209 = vmatpush.msra.mxu1 %v4101_v23  ;;  %v4175_v23 = vld [vmem:[#allocation20 + $0x280] sm:$0xff] }
 0x462   :  { %3928 = vmatmul.f32.vlgmr.msra.gmra.mxu0 %v3651_v47 }
 0x463   :  { %4072 = vmatpush.msra.mxu0 %v3843_v57  ;;  %4210 = vmatpush.msra.mxu1 %v4099_v28  ;;  %v4133_v57 = vld [vmem:[#allocation20 + $0x130] sm:$0xff]  ;;  %v3844_v28 = vld [vmem:[#allocation19] sm:$0x7] }
 0x464   :  { %4229 = vmatpush.msra.mxu2 %v4133_v57  ;;  %v3847_v46 = vperm.slane %v3844_v28, 1 }
 0x465   :  { %4073 = vmatpush.msra.mxu0 %v3840_v27  ;;  %4211 = vmatpush.msra.mxu1 %v4097_v31  ;;  %v4102_v27 = vld [vmem:[#allocation20 + $0x38] sm:$0xff] }
 0x467   :  { %4074 = vmatpush.msra.mxu0 %v3837_v62  ;;  %4212 = vmatpush.msra.mxu1 %v4095_v54  ;;  %v4142_v62 = vld [vmem:[#allocation20 + $0x178] sm:$0xff]  ;;  %v4169_v54 = vld [vmem:[#allocation20 + $0x250] sm:$0xff] }
 0x469   :  { %4075 = vmatpush.msra.mxu0 %v3834_v63  ;;  %4277 = vmatpush.msrb.mxu1 %v4158_v58  ;;  %v4131_v63 = vld [vmem:[#allocation20 + $0x120] sm:$0xff] }
 0x46a   :  { %4008 = vmatmul.f32.vlgmr.msrb.gmra.mxu0 %v3651_v47  ;;  %4230 = vmatpush.msra.mxu2 %v4131_v63  ;;  %v4167_v58 = vld [vmem:[#allocation20 + $0x240] sm:$0xff] }
 0x46b   :  { %4076 = vmatpush.msra.mxu0 %v3831_v1  ;;  %4278 = vmatpush.msrb.mxu1 %v4156_v42  ;;  %v4100_v1 = vld [vmem:[#allocation20 + $0x28] sm:$0xff] }
 0x46d   :  { %4077 = vmatpush.msra.mxu0 %v3828_v0  ;;  %4279 = vmatpush.msrb.mxu1 %v4154_v45  ;;  %v4140_v0 = vld [vmem:[#allocation20 + $0x168] sm:$0xff] }
 0x46f   :  { %4078 = vmatpush.msra.mxu0 %v3825_v34  ;;  %4280 = vmatpush.msrb.mxu1 %v4152_v61  ;;  %v4129_v34 = vld [vmem:[#allocation20 + $0x110] sm:$0xff]  ;;  %v4163_v61 = vld [vmem:[#allocation20 + $0x220] sm:$0xff] }
 0x470   :  { %4231 = vmatpush.msra.mxu2 %v4129_v34 }
 0x471   :  { %4079 = vmatpush.msra.mxu0 %v3822_v2  ;;  %4281 = vmatpush.msrb.mxu1 %v4150_v49  ;;  %v4098_v2 = vld [vmem:[#allocation20 + $0x18] sm:$0xff] }
 0x473   :  { %4080 = vmatpush.msra.mxu0 %v3819_v16  ;;  %4282 = vmatpush.msrb.mxu1 %v4148_v6  ;;  %v4138_v16 = vld [vmem:[#allocation20 + $0x158] sm:$0xff] }
 0x474   :  { %v4162_v6 = vld [vmem:[#allocation20 + $0x218] sm:$0xff] }
 0x475   :  { %4081 = vmatpush.msra.mxu0 %v3816_v32  ;;  %4283 = vmatpush.msrb.mxu1 %v4146_v55  ;;  %v4127_v32 = vld [vmem:[#allocation20 + $0x100] sm:$0xff] }
 0x476   :  { %4232 = vmatpush.msra.mxu2 %v4127_v32 }
 0x477   :  { %4082 = vmatpush.msra.mxu0 %v3813_v3  ;;  %v4096_v3 = vld [vmem:[#allocation20 + $0x8] sm:$0xff] }
 0x479   :  { %4083 = vmatpush.msra.mxu0 %v3810_v4  ;;  %v4136_v4 = vld [vmem:[#allocation20 + $0x148] sm:$0xff] }
 0x47b   :  { %4084 = vmatpush.msra.mxu0 %v3807_v14  ;;  %v4189_v14 = vld [vmem:[#allocation20 + $0x2f0] sm:$0xff] }
 0x47c   :  { %4237 = vmatpush.msra.mxu3 %v4189_v14 }
 0x47d   :  { %4085 = vmatpush.msra.mxu0 %v3804_v5  ;;  %v4190_v5 = vld [vmem:[#allocation20 + $0x2f8] sm:$0xff] }
 0x47e   :  { %4297 = vmatpush.msrb.mxu2 %v4190_v5 }
 0x47f   :  { %4086 = vmatpush.msra.mxu0 %v3801_v13  ;;  %v4134_v13 = vld [vmem:[#allocation20 + $0x138] sm:$0xff] }
 0x480   :  { %4298 = vmatpush.msrb.mxu2 %v4188_v8  ;;  %v4191_v8 = vld [vmem:[#allocation22] sm:$0x3] }
 0x481   :  { %4087 = vmatpush.msra.mxu0 %v3798_v7  ;;  %v4187_v7 = vld [vmem:[#allocation20 + $0x2e0] sm:$0xff] }
 0x482   :  { %4088 = vmatmul.f32.vlgmr.msra.gmra.mxu0 %v3651_v47  ;;  %v4144_v47 = vld [vmem:[#allocation20 + $0x188] sm:$0xff]  ;;  %4238 = vmatpush.msra.mxu3 %v4187_v7 }
 0x483   :  { %4257 = vmatpush.msrb.mxu0 %v4126_v21  ;;  %4284 = vmatpush.msrb.mxu1 %v4144_v47  ;;  %v4178_v21 = vld [vmem:[#allocation20 + $0x298] sm:$0xff] }
 0x484   :  { %4239 = vmatpush.msra.mxu3 %v4185_v10  ;;  %4299 = vmatpush.msrb.mxu2 %v4186_v11  ;;  %v4193_v10 = vperm.slane %v4191_v8, 0  ;;  %v4194_v11 = vperm.slane %v4191_v8, 1 }
 0x485   :  { %4258 = vmatpush.msrb.mxu0 %v4124_v25  ;;  %4285 = vmatpush.msrb.mxu1 %v4142_v62  ;;  %v4173_v25 = vld [vmem:[#allocation20 + $0x270] sm:$0xff] }
 0x486   :  { %4240 = vmatpush.msra.mxu3 %v4183_v17  ;;  %4300 = vmatpush.msrb.mxu2 %v4184_v22 }
 0x487   :  { %4259 = vmatpush.msrb.mxu0 %v4122_v30  ;;  %4286 = vmatpush.msrb.mxu1 %v4140_v0  ;;  %v4171_v30 = vld [vmem:[#allocation20 + $0x260] sm:$0xff]  ;;  %v3848_v0 = vperm.slane %v3844_v28, 2 }
 0x488   :  { %4241 = vmatpush.msra.mxu3 %v4181_v18  ;;  %4301 = vmatpush.msrb.mxu2 %v4182_v19 }
 0x489   :  { %4260 = vmatpush.msrb.mxu0 %v4120_v33  ;;  %4287 = vmatpush.msrb.mxu1 %v4138_v16  ;;  %v3846_v33 = vperm.slane %v3844_v28, 0 }
 0x48a   :  { %4242 = vmatpush.msra.mxu3 %v4179_v26  ;;  %4302 = vmatpush.msrb.mxu2 %v4180_v20 }
 0x48b   :  { %4261 = vmatpush.msrb.mxu0 %v4118_v36  ;;  %4288 = vmatpush.msrb.mxu1 %v4136_v4  ;;  %v4170_v36 = vld [vmem:[#allocation20 + $0x258] sm:$0xff] }
 0x48c   :  { %4243 = vmatpush.msra.mxu3 %v4177_v15  ;;  %4303 = vmatpush.msrb.mxu2 %v4178_v21 }
 0x48d   :  { %4262 = vmatpush.msrb.mxu0 %v4116_v40  ;;  %4289 = vmatpush.msrb.mxu1 %v4134_v13  ;;  %v4168_v40 = vld [vmem:[#allocation20 + $0x248] sm:$0xff] }
 0x48e   :  { %4244 = vmatpush.msra.mxu3 %v4175_v23  ;;  %4304 = vmatpush.msrb.mxu2 %v4176_v24 }
 0x48f   :  { %4263 = vmatpush.msrb.mxu0 %v4114_v44  ;;  %4290 = vmatpush.msrb.mxu1 %v4132_v9  ;;  %v4166_v44 = vld [vmem:[#allocation20 + $0x238] sm:$0xff] }
 0x490   :  { %4245 = vmatpush.msra.mxu3 %v4173_v25  ;;  %4305 = vmatpush.msrb.mxu2 %v4174_v29 }
 0x491   :  { %4264 = vmatpush.msrb.mxu0 %v4112_v41  ;;  %4291 = vmatpush.msrb.mxu1 %v4130_v59 }
 0x492   :  { %4246 = vmatpush.msra.mxu3 %v4171_v30  ;;  %4306 = vmatpush.msrb.mxu2 %v4172_v12 }
 0x493   :  { %4265 = vmatpush.msrb.mxu0 %v4110_v39  ;;  %4292 = vmatpush.msrb.mxu1 %v4128_v60 }
 0x494   :  { %4247 = vmatpush.msra.mxu3 %v4169_v54  ;;  %4307 = vmatpush.msrb.mxu2 %v4170_v36 }
 0x495   :  { %4266 = vmatpush.msrb.mxu0 %v4108_v51  ;;  %v4161_v51 = vld [vmem:[#allocation20 + $0x210] sm:$0xff] }
 0x496   :  { %4248 = vmatpush.msra.mxu3 %v4167_v58  ;;  %4308 = vmatpush.msrb.mxu2 %v4168_v40 }
 0x497   :  { %4267 = vmatpush.msrb.mxu0 %v4106_v53 }
 0x498   :  { %v3869_v31 = vpop.f32.mrf.mxu1  ;;  %4249 = vmatpush.msra.mxu3 %v4165_v43  ;;  %4309 = vmatpush.msrb.mxu2 %v4166_v44 }
 0x499   :  { %4268 = vmatpush.msrb.mxu0 %v4104_v56  ;;  %v3870_v42 = vadd.f32 %v3869_v31, %v3846_v33  ;;  %v4160_v56 = vld [vmem:[#allocation20 + $0x208] sm:$0xff] }
 0x49a   :  { %4250 = vmatpush.msra.mxu3 %v4163_v61  ;;  %4310 = vmatpush.msrb.mxu2 %v4164_v48 }
 0x49b   :  { %4269 = vmatpush.msrb.mxu0 %v4102_v27 }
 0x49c   :  { %4251 = vmatpush.msra.mxu3 %v4161_v51  ;;  %4311 = vmatpush.msrb.mxu2 %v4162_v6 }
 0x49d   :  { %4270 = vmatpush.msrb.mxu0 %v4100_v1 }
 0x49e   :  { %4252 = vmatpush.msra.mxu3 %v4159_v37  ;;  %4312 = vmatpush.msrb.mxu2 %v4160_v56 }
 0x49f   :  { %4271 = vmatpush.msrb.mxu0 %v4098_v2 }
 0x4a0   :  { %v3949_v39 = vpop.f32.mrf.mxu1 }
 0x4a1   :  { %4272 = vmatpush.msrb.mxu0 %v4096_v3  ;;  %v3950_v53 = vadd.f32 %v3949_v39, %v3847_v46 }
 0x4a9   :  { %v3889_v35 = vpop.f32.mrf.mxu2 }
 0x4aa   :  { %v3890_v45 = vadd.f32 %v3889_v35, %v3870_v42 }
 0x4b1   :  { %v3969_v52 = vpop.f32.mrf.mxu2 }
 0x4b2   :  { %v3970_v57 = vadd.f32 %v3969_v52, %v3950_v53 }
 0x4b8   :  { %v4029_v34 = vpop.f32.mrf.mxu1 }
 0x4b9   :  { %v4030_v16 = vadd.f32 %v4029_v34, %v3848_v0 }
 0x4c3   :  { %v3909_v38 = vpop.f32.mrf.mxu3 }
 0x4c4   :  { %v3910_v41 = vadd.f32 %v3909_v38, %v3890_v45 }
 0x4c9   :  { %v4049_v2 = vpop.f32.mrf.mxu2 }
 0x4ca   :  { %v4050_v3 = vadd.f32 %v4049_v2, %v4030_v16 }
 0x4cb   :  { %v3989_v47 = vpop.f32.mrf.mxu3 }
 0x4cc   :  { %v3990_v27 = vadd.f32 %v3989_v47, %v3970_v57 }
 0x4df   :  { %v3929_v49 = vpop.f32.mrf.mxu0 }
 0x4e0   :  { %v3930_v50 = vadd.f32 %v3929_v49, %v3910_v41 }
 0x4e2   :  { %v4092_v55 = vmax.f32 %v3930_v50, 0.0 }
 0x4e3   :  { %v4069_v32 = vpop.f32.mrf.mxu3 }
 0x4e4   :  { %4213 = vmatmul.f32.vlgmr.msra.gmra.mxu1 %v4092_v55  ;;  %4273 = vmatmul.f32.vlgmr.msrb.gmra.mxu0 %v4092_v55  ;;  %v4070_v4 = vadd.f32 %v4069_v32, %v4050_v3 }
 0x4e7   :  { %v4009_v62 = vpop.f32.mrf.mxu0 }
 0x4e8   :  { %v4010_v63 = vadd.f32 %v4009_v62, %v3990_v27 }
 0x4ea   :  { %v4093_v1 = vmax.f32 %v4010_v63, 0.0 }
 0x4ec   :  { %4233 = vmatmul.f32.vlgmr.msra.gmra.mxu2 %v4093_v1  ;;  %4293 = vmatmul.f32.vlgmr.msrb.gmra.mxu1 %v4093_v1 }
 0x4ff   :  { %v4089_v14 = vpop.f32.mrf.mxu0 }
 0x500   :  { %v4090_v5 = vadd.f32 %v4089_v14, %v4070_v4 }
 0x502   :  { %v4094_v13 = vmax.f32 %v4090_v5, 0.0 }
 0x504   :  { %4253 = vmatmul.f32.vlgmr.msra.gmra.mxu3 %v4094_v13  ;;  %4313 = vmatmul.f32.vlgmr.msrb.gmra.mxu2 %v4094_v13 }
 0x561   :  { %v4214_v7 = vpop.f32.mrf.mxu1  ;;  %v4274_v59 = vpop.f32.mrf.mxu0 }
 0x562   :  { %v4215_v22 = vadd.f32 %v4214_v7, %v4193_v10  ;;  %v4275_v60 = vadd.f32 %v4274_v59, %v4194_v11 }
 0x569   :  { %v4294_v17 = vpop.f32.mrf.mxu1 }
 0x56a   :  { %v4295_v18 = vadd.f32 %v4294_v17, %v4275_v60 }
 0x56f   :  { %v4234_v9 = vpop.f32.mrf.mxu2 }
 0x570   :  { %v4235_v19 = vadd.f32 %v4234_v9, %v4215_v22 }
 0x587   :  { %v4254_v26 = vpop.f32.mrf.mxu3  ;;  %v4314_v20 = vpop.f32.mrf.mxu2 }
 0x588   :  { %v4255_v15 = vadd.f32 %v4254_v26, %v4235_v19  ;;  %v4315_v21 = vadd.f32 %v4314_v20, %v4295_v18 }
 0x58a   :  { %4317 = vst [vmem:[#allocation23] sm:$0xff] %v4255_v15 }
 0x58b   :  { %4318 = vst [vmem:[#allocation23 + $0x8] sm:$0xff] %v4315_v21 }
 0x58c   :  { %4329 = dma.vmem_to_hbm [thread:$0]  %s4325_s12, 256, %s4327_s15, [#allocation4]  }
 0x58d   :  { %4717 = dma.done.wait [#allocation4], 256  }
 0x58e   :  { %4718 = vsyncadd [#allocation4], 4294967040 }
 0x58f   :  { %4334 = vsyncpa [#allocation3], 1 }
 0x590   :  { %4335 = vsyncpa [#allocation6], 1 }
 0x591   :  { %4336 = vsyncpa [#allocation9], 1 }
 0x592   :  { %4337 = vsyncpa [#allocation12], 1 }
 0x593   :  { %4338 = vsyncpa [#allocation15], 1 }
 0x594   :  { %4339 = vsyncpa [#allocation18], 1 }
 0x595   :  { %4340 = vsyncpa [#allocation21], 1 }
 0x596   :  { %4341 = vsyncpa [#allocation4], 1 }

</bundles_post_ra>
